<compile_context>
chip_gen: v5e
topology: v5e:2x2
jax: 0.10.0
libtpu: 0.0.40
codegen_flags: <defaults>
</compile_context>

<pallas_src>
import math

import jax
import jax.numpy as jnp
from jax.experimental import pallas as pl
from jax.experimental.pallas import tpu as pltpu

# -------------------- module __init__ constants / config ---------------------
MUS    = [-0.9, -0.7, -0.5, -0.3, -0.1, 0.1, 0.3, 0.5, 0.7, 0.9, 1.0]
SIGMAS = [0.1, 0.1, 0.1, 0.1, 0.1, 0.1, 0.1, 0.1, 0.1, 0.1, 0.001]
K = len(MUS)                     # RbfKernelBank.count()

CONFIG = dict(maxngram=2, filters=16, crossmatch=True,
              singlefc=True, scoretanh=False, gradkernels=True)
PAD = 0                          # extractor.pad

_HI = jax.lax.Precision.HIGHEST  # used by the pure-JAX reference only


def _round_up(x, m):
    return ((x + m - 1) // m) * m


# --------------------------- VMEM / block sizing ------------------------------
def _vmem_bytes_estimate(bblk, QP, DP, E, NG, F, Q, D):
    NGF, NGQ, NGD = NG * F, NG * Q, NG * D
    fb = 4
    est = 2 * bblk * (QP + DP) * E * fb              # double-buffered x blocks
    est += bblk * (QP + DP) * 128 * fb               # masks (lane-padded)
    est += 2 * (NG * E * NGF + NGF + K * NG * NGQ) * fb
    est += bblk * (QP + DP) * NGF * NG * fb          # per-tap conv outputs
    est += bblk * (NGQ + NGD) * max(F, 128) * fb     # concat scratch (lane pad)
    est += 8 * bblk * NGQ * max(NGD, 128) * fb       # sim + RBF temporaries
    return est


def _pick_bblk(B, QP, DP, E, NG, F, Q, D):
    # Prefer >=2 grid steps (pipelining + both v7x TensorCores busy), block
    # capped at 8 and shrunk until the working set stays well under the v7x
    # 64 MiB VMEM ceiling.
    bblk = max(1, min(8, -(-B // 2)))
    while bblk > 1 and _vmem_bytes_estimate(bblk, QP, DP, E, NG, F, Q, D) > 40 * 2**20:
        bblk = max(1, bblk // 2)
    return bblk


# ------------------------------ fused Pallas kernel ---------------------------
def _make_kernel(Bblk, QP, DP, Q, D, NG, F):
    """Per-grid-step fused kernel over a block of Bblk batch elements.

    Ref order: xq (Bblk,QP,E), xd (Bblk,DP,E), mq (Bblk,QP,1), md (Bblk,DP,1),
               Wp (NG,E,NG*F), bp (1,NG*F), wt (K,NG,NG*Q,1), bias (1,1) SMEM,
               out (1,Bblk,1), scratch a_cat (Bblk,NG*Q,F), b_cat (Bblk,NG*D,F).
    """
    NGF, NGQ, NGD = NG * F, NG * Q, NG * D

    # RBF shared-sigma recurrence constants (Python floats -> literals; nothing
    # non-scalar is closure-captured).
    COEF = -0.5 / (SIGMAS[0] * SIGMAS[0])            # -50   (sigma = 0.1 bank)
    STEP = MUS[1] - MUS[0]                           # 0.2
    RATE = -2.0 * COEF * STEP                        # 20
    C_UP = [math.exp(-RATE * MUS[k] + COEF * STEP * STEP) for k in range(4, 9)]
    C_DN = [math.exp(RATE * MUS[k] + COEF * STEP * STEP) for k in range(4, 0, -1)]
    COEF_EXACT = -0.5 / (SIGMAS[10] * SIGMAS[10])    # -5e5  (mu = 1.0 kernel)

    def kernel(xq_ref, xd_ref, mq_ref, md_ref, wp_ref, bp_ref, wt_ref,
               bias_ref, o_ref, acat_ref, bcat_ref):
        E = xq_ref.shape[-1]
        # leading-dim merge is layout-preserving (QP/DP multiples of 8)
        xqf = xq_ref[...].reshape(Bblk * QP, E)
        xdf = xd_ref[...].reshape(Bblk * DP, E)

        # Fused NG-tap conv (all n-gram convs packed into NG*F channels):
        # NG full-slab matmuls, M = Bblk*QP / Bblk*DP, f32 MXU accumulate.
        yq = [jnp.dot(xqf, wp_ref[j], preferred_element_type=jnp.float32)
              for j in range(NG)]
        yd = [jnp.dot(xdf, wp_ref[j], preferred_element_type=jnp.float32)
              for j in range(NG)]
        b_row = bp_ref[...]                          # (1, NG*F)

        # Per-element tap-shifted sum, bias, pad-mask, per-ngram L2 normalize,
        # packed into the row-concatenated sim operands.
        for p in range(Bblk):
            rep = yq[0][p * QP:p * QP + Q, :]
            for j in range(1, NG):
                rep = rep + yq[j][p * QP + j:p * QP + j + Q, :]
            rep = (rep + b_row) * mq_ref[p, 0:Q, :]
            for t in range(NG):
                blk = rep[:, t * F:(t + 1) * F]
                inv = jax.lax.rsqrt(
                    jnp.sum(blk * blk, axis=-1, keepdims=True) + 1e-18)
                acat_ref[p, t * Q:(t + 1) * Q, :] = blk * inv

            repd = yd[0][p * DP:p * DP + D, :]
            for j in range(1, NG):
                repd = repd + yd[j][p * DP + j:p * DP + j + D, :]
            repd = (repd + b_row) * md_ref[p, 0:D, :]
            for t in range(NG):
                blk = repd[:, t * F:(t + 1) * F]
                inv = jax.lax.rsqrt(
                    jnp.sum(blk * blk, axis=-1, keepdims=True) + 1e-18)
                bcat_ref[p, t * D:(t + 1) * D, :] = blk * inv

        # All NG^2 cosine sims in one batched matmul; contraction on the last
        # axes of both operands, so no transposed copy is materialized.
        sim = jnp.einsum("bqf,bdf->bqd", acat_ref[...], bcat_ref[...],
                         preferred_element_type=jnp.float32)  # (Bblk,NGQ,NGD)

        # validity per (query row, doc-view): sum over that view's D columns.
        valid = [jnp.sum(sim[:, :, ib * D:(ib + 1) * D], axis=-1,
                         keepdims=True) != 0.0 for ib in range(NG)]

        def pool(acc, kern, k):
            # sum over D, log, weighted accumulate -- per doc-view block.
            for ib in range(NG):
                ks = jnp.sum(kern[:, :, ib * D:(ib + 1) * D], axis=-1,
                             keepdims=True)
                logk = jnp.where(valid[ib], jnp.log(ks + 1e-6), 0.0)
                term = wt_ref[k, ib] * logk          # (NGQ,1)*(Bblk,NGQ,1)
                acc = term if acc is None else acc + term
            return acc

        # RBF bank: 4 exps instead of 11; the sigma=0.1 kernels are generated
        # by the exact recurrence from the mu=-0.1 anchor in both directions.
        r = jnp.exp(RATE * sim)
        rinv = jnp.exp(-RATE * sim)
        d4 = sim - MUS[4]
        e4 = jnp.exp(COEF * d4 * d4)

        acc = pool(None, e4, 4)
        up = e4
        for i, k in enumerate(range(5, 10)):
            up = up * r * C_UP[i]
            acc = pool(acc, up, k)
        dn = e4
        for i, k in enumerate(range(3, -1, -1)):
            dn = dn * rinv * C_DN[i]
            acc = pool(acc, dn, k)
        d10 = sim - MUS[10]
        e10 = jnp.exp(COEF_EXACT * d10 * d10)        # exact-match kernel
        acc = pool(acc, e10, 10)

        score = jnp.sum(acc, axis=1) + bias_ref[0, 0]     # (Bblk, 1)
        o_ref[0] = score

    return kernel


def convknrm_forward(params, sentence, query_sentence, query_idf=None, bblk=None):
    """Mirrors ConvKNRM_class.forward(sentence, query_sentence, query_idf).

    query_idf is accepted for interface parity -- the reference forward never
    uses it.  Config path: singlefc=True, scoretanh=False.
    """
    assert CONFIG["singlefc"] and not CONFIG["scoretanh"]
    # TODO(synk): singlefc=False (Linear->Tanh->Linear) and scoretanh=True combine
    # variants are not wired up; the config above selects the single-FC path.
    emb = params["emb"]
    NG = CONFIG["maxngram"]
    crossmatch = CONFIG["crossmatch"]
    B, Q = query_sentence.shape
    D = sentence.shape[1]
    VOCAB, E = emb.shape
    F = params["convs"][0][0].shape[-1]
    NGF, NGQ, NGD = NG * F, NG * Q, NG * D
    VIEWS = NG * NG if crossmatch else NG
    pad = NG - 1

    QP = _round_up(Q + pad, 8)
    DP = _round_up(D + pad, 8)
    if bblk is None:
        bblk = _pick_bblk(B, QP, DP, E, NG, F, Q, D)
    Bp = _round_up(B, bblk)
    nblk = Bp // bblk

    # Padded [tokens | zero-row] slabs built with a single gather each: the
    # ConstantPad1d((0, n-1), 0) zeros (and batch padding) come from an
    # appended all-zero embedding row, so no separate zero-slab HBM pass.
    emb_z = jnp.concatenate([emb.astype(jnp.float32),
                             jnp.zeros((1, E), jnp.float32)], axis=0)
    ZROW = VOCAB
    qtok = jnp.full((Bp, QP), ZROW, jnp.int32).at[:B, :Q].set(query_sentence)
    dtok = jnp.full((Bp, DP), ZROW, jnp.int32).at[:B, :D].set(sentence)
    xq = emb_z[qtok]                                   # (Bp, QP, E)
    xd = emb_z[dtok]                                   # (Bp, DP, E)

    mq = jnp.zeros((Bp, QP, 1), jnp.float32).at[:B, :Q, 0].set(
        (query_sentence != PAD).astype(jnp.float32))
    md = jnp.zeros((Bp, DP, 1), jnp.float32).at[:B, :D, 0].set(
        (sentence != PAD).astype(jnp.float32))

    # all NG convs packed into one NG-tap conv with NG*F output channels
    Wp = jnp.zeros((NG, E, NGF), jnp.float32)
    bs = []
    for t, (w, b) in enumerate(params["convs"]):
        n = w.shape[0]
        Wp = Wp.at[0:n, :, t * F:(t + 1) * F].set(w.astype(jnp.float32))
        bs.append(b.astype(jnp.float32))
    bp = jnp.concatenate(bs).reshape(1, NGF)

    # Combine weights broadcast to a (K, NG, NG*Q, 1) tile: entry [k, ib, r]
    # is the weight of kernel k for view (ia=r//Q, ib); zeroed for skipped
    # views if crossmatch=False.  torch flattened feature index = k*VIEWS + v.
    W2 = params["W"].reshape(K, VIEWS)
    k_idx = jnp.arange(K)[:, None, None]
    ib_idx = jnp.arange(NG)[None, :, None]
    ia_idx = (jnp.arange(NGQ) // Q)[None, None, :]
    if crossmatch:
        wt = W2[k_idx, ia_idx * NG + ib_idx]
    else:
        wt = jnp.where(ia_idx == ib_idx, W2[k_idx, ia_idx], 0.0)
    wt = wt[..., None].astype(jnp.float32)             # (K, NG, NGQ, 1)
    bias11 = params["b"].reshape(1, 1).astype(jnp.float32)

    kernel = _make_kernel(bblk, QP, DP, Q, D, NG, F)

    vmem_limit = int(min(48 * 2**20,                   # fits v7x's 64 MiB VMEM
                         max(8 * 2**20,
                             2 * _vmem_bytes_estimate(bblk, QP, DP, E, NG, F, Q, D))))

    out = pl.pallas_call(
        kernel,
        out_shape=jax.ShapeDtypeStruct((nblk, bblk, 1), jnp.float32),
        grid=(nblk,),
        in_specs=[
            pl.BlockSpec((bblk, QP, E), lambda i: (i, 0, 0)),
            pl.BlockSpec((bblk, DP, E), lambda i: (i, 0, 0)),
            pl.BlockSpec((bblk, QP, 1), lambda i: (i, 0, 0)),
            pl.BlockSpec((bblk, DP, 1), lambda i: (i, 0, 0)),
            pl.BlockSpec((NG, E, NGF), lambda i: (0, 0, 0)),
            pl.BlockSpec((1, NGF), lambda i: (0, 0)),
            pl.BlockSpec((K, NG, NGQ, 1), lambda i: (0, 0, 0, 0)),
            pl.BlockSpec(memory_space=pltpu.MemorySpace.SMEM),      # bias (1,1)
        ],
        out_specs=pl.BlockSpec((1, bblk, 1), lambda i: (i, 0, 0)),
        scratch_shapes=[pltpu.VMEM((bblk, NGQ, F), jnp.float32),
                        pltpu.VMEM((bblk, NGD, F), jnp.float32)],
        compiler_params=pltpu.CompilerParams(
            dimension_semantics=("parallel",),
            vmem_limit_bytes=vmem_limit),
    )(xq, xd, mq, md, Wp, bp, wt, bias11)
    return out.reshape(Bp, 1)[:B]


# ------------------------------- parameters -----------------------------------
def init_params(key, vocab, emb_dim, filters):
    maxngram = CONFIG["maxngram"]
    views = maxngram ** 2 if CONFIG["crossmatch"] else maxngram
    kv = K * views
    keys = jax.random.split(key, 2 * maxngram + 3)
    emb = jax.random.normal(keys[0], (vocab, emb_dim), jnp.float32) * 0.1
    convs = []
    for n in range(1, maxngram + 1):
        w = jax.random.normal(keys[2 * n - 1], (n, emb_dim, filters),
                              jnp.float32) / jnp.sqrt(emb_dim * n)
        b = jax.random.normal(keys[2 * n], (filters,), jnp.float32) * 0.01
        convs.append((w, b))
    W = jax.random.normal(keys[-2], (1, kv), jnp.float32) / jnp.sqrt(kv)
    bcomb = jax.random.normal(keys[-1], (1,), jnp.float32) * 0.01
    return dict(emb=emb, convs=convs, W=W, b=bcomb)


# --------------------------- pure-JAX reference --------------------------------
def _conv1d_same_ref(x, w, bias):
    B, L, Cin = x.shape
    n, _, Cout = w.shape
    xp = jnp.pad(x, ((0, 0), (0, n - 1), (0, 0)))
    out = jnp.zeros((B, L, Cout), jnp.float32)
    for j in range(n):
        out = out + jnp.einsum("blc,cf->blf", xp[:, j:j + L, :], w[j],
                               precision=_HI)
    return out + bias[None, None, :]


def reference_forward(params, sentence, query_sentence):
    emb = params["emb"]
    a_emb, b_emb = emb[query_sentence], emb[sentence]
    a_reps = [_conv1d_same_ref(a_emb, w, b) for (w, b) in params["convs"]]
    b_reps = [_conv1d_same_ref(b_emb, w, b) for (w, b) in params["convs"]]
    B, Q = query_sentence.shape
    D = sentence.shape[1]
    pairs = ([(a, bb) for a in a_reps for bb in b_reps] if CONFIG["crossmatch"]
             else list(zip(a_reps, b_reps)))
    sims = []
    for a, bb in pairs:
        an = jnp.linalg.norm(a, axis=2)[:, :, None] + 1e-9
        bn = jnp.linalg.norm(bb, axis=2)[:, None, :] + 1e-9
        s = jnp.einsum("bqf,bdf->bqd", a, bb, precision=_HI) / (an * bn)
        s = jnp.where((query_sentence == PAD)[:, :, None], 0.0, s)
        s = jnp.where((sentence == PAD)[:, None, :], 0.0, s)
        sims.append(s)
    sim = jnp.stack(sims, axis=1)                                   # (B, V, Q, D)
    V = sim.shape[1]
    mus = jnp.asarray(MUS, jnp.float32).reshape(1, K, 1, 1, 1)
    sig = jnp.asarray(SIGMAS, jnp.float32).reshape(1, K, 1, 1, 1)
    kern = jnp.exp(-0.5 * (sim[:, None] - mus) ** 2 / sig / sig)    # (B,K,V,Q,D)
    kern = kern.reshape(B, K * V, Q, D)
    simx = jnp.broadcast_to(sim[:, None], (B, K, V, Q, D)).reshape(B, K * V, Q, D)
    result = kern.sum(axis=3)
    mask = simx.sum(axis=3) != 0.0
    result = jnp.where(mask, jnp.log(result + 1e-6), mask.astype(jnp.float32))
    result = result.sum(axis=2)                                     # (B, K*V)
    return jnp.dot(result, params["W"].T, precision=_HI) + params["b"]


# ----------------------------------- main ---------------------------------------
if __name__ == "__main__":
    VOCAB, EMB, FILTERS = 64, 32, CONFIG["filters"]
    B, QLEN, DLEN = 4, 8, 16

    kq, kd, ki = jax.random.split(jax.random.PRNGKey(0), 3)
    query = jax.random.randint(kq, (B, QLEN), 1, VOCAB).astype(jnp.int32)
    doc = jax.random.randint(kd, (B, DLEN), 1, VOCAB).astype(jnp.int32)
    # introduce PAD tokens at the tail
    qlens = jnp.array([6, 8, 5, 7])
    dlens = jnp.array([12, 16, 9, 14])
    query = jnp.where(jnp.arange(QLEN)[None, :] < qlens[:, None], query, PAD)
    doc = jnp.where(jnp.arange(DLEN)[None, :] < dlens[:, None], doc, PAD)
    query_idf = jax.random.uniform(ki, (B, QLEN), jnp.float32)      # unused by forward

    params = init_params(jax.random.PRNGKey(42), VOCAB, EMB, FILTERS)

    scores = convknrm_forward(params, doc, query, query_idf)
    scores = jax.block_until_ready(scores)

    ref = reference_forward(params, doc, query)
    assert scores.shape == (B, 1), scores.shape
    assert jnp.allclose(scores, ref, rtol=2e-3, atol=2e-3), (scores, ref)
    print("KERNEL_OK")
</pallas_src>

<mosaic_0001>
module attributes {stable_mosaic.version = 11 : i64} {
  func.func @kernel(%arg0: i32, %arg1: memref<2x16x32xf32, #tpu.memory_space<vmem>>, %arg2: memref<2x24x32xf32, #tpu.memory_space<vmem>>, %arg3: memref<2x16x1xf32, #tpu.memory_space<vmem>>, %arg4: memref<2x24x1xf32, #tpu.memory_space<vmem>>, %arg5: memref<2x32x32xf32, #tpu.memory_space<vmem>>, %arg6: memref<1x32xf32, #tpu.memory_space<vmem>>, %arg7: memref<11x2x16x1xf32, #tpu.memory_space<vmem>>, %arg8: memref<1x1xf32, #tpu.memory_space<smem>>, %arg9: memref<1x2x1xf32, #tpu.memory_space<vmem>>, %arg10: memref<2x16x16xf32, #tpu.memory_space<vmem>>, %arg11: memref<2x32x16xf32, #tpu.memory_space<vmem>>) attributes {dimension_semantics = [#tpu.dimension_semantics<parallel>], iteration_bounds = array<i64: 2>, scalar_prefetch = 0 : i64, scratch_operands = 2 : i64, tpu.core_type = #tpu.core_type<tc>, window_params = [{transform_indices = @transform_0, window_bounds = array<i64: 2, 16, 32>}, {transform_indices = @transform_1, window_bounds = array<i64: 2, 24, 32>}, {transform_indices = @transform_2, window_bounds = array<i64: 2, 16, 1>}, {transform_indices = @transform_3, window_bounds = array<i64: 2, 24, 1>}, {pipeline_mode = #tpu.pipeline_mode<synchronous>, transform_indices = @transform_4, window_bounds = array<i64: 2, 32, 32>}, {pipeline_mode = #tpu.pipeline_mode<synchronous>, transform_indices = @transform_5, window_bounds = array<i64: 1, 32>}, {pipeline_mode = #tpu.pipeline_mode<synchronous>, transform_indices = @transform_6, window_bounds = array<i64: 11, 2, 16, 1>}, {transform_indices = @transform_7, window_bounds = array<i64: 1, 1>}, {transform_indices = @transform_8, window_bounds = array<i64: 1, 2, 1>}]} {
    %c0 = arith.constant 0 : index
    %c0_0 = arith.constant 0 : index
    %c0_1 = arith.constant 0 : index
    %0 = vector.load %arg1[%c0, %c0_0, %c0_1] : memref<2x16x32xf32, #tpu.memory_space<vmem>>, vector<2x16x32xf32>
    %1 = vector.shape_cast %0 : vector<2x16x32xf32> to vector<32x32xf32>
    %c0_2 = arith.constant 0 : index
    %c0_3 = arith.constant 0 : index
    %c0_4 = arith.constant 0 : index
    %2 = vector.load %arg2[%c0_2, %c0_3, %c0_4] : memref<2x24x32xf32, #tpu.memory_space<vmem>>, vector<2x24x32xf32>
    %3 = vector.shape_cast %2 : vector<2x24x32xf32> to vector<48x32xf32>
    %c0_5 = arith.constant 0 : index
    %c0_6 = arith.constant 0 : index
    %c0_7 = arith.constant 0 : index
    %4 = vector.load %arg5[%c0_5, %c0_6, %c0_7] : memref<2x32x32xf32, #tpu.memory_space<vmem>>, vector<1x32x32xf32>
    %5 = vector.shape_cast %4 : vector<1x32x32xf32> to vector<32x32xf32>
    %cst = arith.constant dense<0.000000e+00> : vector<32x32xf32>
    %6 = tpu.matmul %1, %5, %cst {dimension_numbers = #tpu.dot_dimension_numbers<[1], [0], [0], [1], [0, 0, 1, 1], [], []>} : vector<32x32xf32>, vector<32x32xf32>, vector<32x32xf32> -> vector<32x32xf32>
    %c1 = arith.constant 1 : index
    %c0_8 = arith.constant 0 : index
    %c0_9 = arith.constant 0 : index
    %7 = vector.load %arg5[%c1, %c0_8, %c0_9] : memref<2x32x32xf32, #tpu.memory_space<vmem>>, vector<1x32x32xf32>
    %8 = vector.shape_cast %7 : vector<1x32x32xf32> to vector<32x32xf32>
    %cst_10 = arith.constant dense<0.000000e+00> : vector<32x32xf32>
    %9 = tpu.matmul %1, %8, %cst_10 {dimension_numbers = #tpu.dot_dimension_numbers<[1], [0], [0], [1], [0, 0, 1, 1], [], []>} : vector<32x32xf32>, vector<32x32xf32>, vector<32x32xf32> -> vector<32x32xf32>
    %c0_11 = arith.constant 0 : index
    %c0_12 = arith.constant 0 : index
    %c0_13 = arith.constant 0 : index
    %10 = vector.load %arg5[%c0_11, %c0_12, %c0_13] : memref<2x32x32xf32, #tpu.memory_space<vmem>>, vector<1x32x32xf32>
    %11 = vector.shape_cast %10 : vector<1x32x32xf32> to vector<32x32xf32>
    %cst_14 = arith.constant dense<0.000000e+00> : vector<48x32xf32>
    %12 = tpu.matmul %3, %11, %cst_14 {dimension_numbers = #tpu.dot_dimension_numbers<[1], [0], [0], [1], [0, 0, 1, 1], [], []>} : vector<48x32xf32>, vector<32x32xf32>, vector<48x32xf32> -> vector<48x32xf32>
    %c1_15 = arith.constant 1 : index
    %c0_16 = arith.constant 0 : index
    %c0_17 = arith.constant 0 : index
    %13 = vector.load %arg5[%c1_15, %c0_16, %c0_17] : memref<2x32x32xf32, #tpu.memory_space<vmem>>, vector<1x32x32xf32>
    %14 = vector.shape_cast %13 : vector<1x32x32xf32> to vector<32x32xf32>
    %cst_18 = arith.constant dense<0.000000e+00> : vector<48x32xf32>
    %15 = tpu.matmul %3, %14, %cst_18 {dimension_numbers = #tpu.dot_dimension_numbers<[1], [0], [0], [1], [0, 0, 1, 1], [], []>} : vector<48x32xf32>, vector<32x32xf32>, vector<48x32xf32> -> vector<48x32xf32>
    %c0_19 = arith.constant 0 : index
    %c0_20 = arith.constant 0 : index
    %16 = vector.load %arg6[%c0_19, %c0_20] : memref<1x32xf32, #tpu.memory_space<vmem>>, vector<1x32xf32>
    %17 = vector.extract_strided_slice %6 {offsets = [0, 0], sizes = [8, 32], strides = [1, 1]} : vector<32x32xf32> to vector<8x32xf32>
    %18 = vector.extract_strided_slice %9 {offsets = [1, 0], sizes = [8, 32], strides = [1, 1]} : vector<32x32xf32> to vector<8x32xf32>
    %19 = arith.addf %17, %18 : vector<8x32xf32>
    %20 = vector.broadcast %16 : vector<1x32xf32> to vector<8x32xf32>
    %21 = arith.addf %19, %20 : vector<8x32xf32>
    %c0_21 = arith.constant 0 : index
    %c0_22 = arith.constant 0 : index
    %c0_23 = arith.constant 0 : index
    %22 = vector.load %arg3[%c0_21, %c0_22, %c0_23] : memref<2x16x1xf32, #tpu.memory_space<vmem>>, vector<1x8x1xf32>
    %23 = vector.shape_cast %22 : vector<1x8x1xf32> to vector<8x1xf32>
    %24 = vector.broadcast %23 : vector<8x1xf32> to vector<8x32xf32>
    %25 = arith.mulf %21, %24 : vector<8x32xf32>
    %26 = vector.extract_strided_slice %25 {offsets = [0, 0], sizes = [8, 16], strides = [1, 1]} : vector<8x32xf32> to vector<8x16xf32>
    %27 = arith.mulf %26, %26 : vector<8x16xf32>
    %cst_24 = arith.constant dense<0.000000e+00> : vector<8xf32>
    %28 = vector.multi_reduction <add>, %27, %cst_24 [1] : vector<8x16xf32> to vector<8xf32>
    %29 = vector.shape_cast %28 : vector<8xf32> to vector<8x1xf32>
    %cst_25 = arith.constant 1.000000e-18 : f32
    %30 = vector.broadcast %cst_25 : f32 to vector<8x1xf32>
    %31 = arith.addf %29, %30 : vector<8x1xf32>
    %32 = math.rsqrt %31 : vector<8x1xf32>
    %33 = vector.broadcast %32 : vector<8x1xf32> to vector<8x16xf32>
    %34 = arith.mulf %26, %33 : vector<8x16xf32>
    %c0_26 = arith.constant 0 : index
    %c0_27 = arith.constant 0 : index
    %c0_28 = arith.constant 0 : index
    %35 = vector.load %arg10[%c0_26, %c0_27, %c0_28] : memref<2x16x16xf32, #tpu.memory_space<vmem>>, vector<1x8x16xf32>
    %36 = vector.shape_cast %35 : vector<1x8x16xf32> to vector<8x16xf32>
    %37 = vector.shape_cast %34 : vector<8x16xf32> to vector<1x8x16xf32>
    tpu.vector_store %arg10[%c0_26, %c0_27, %c0_28], %37 {strides = array<i32>} : memref<2x16x16xf32, #tpu.memory_space<vmem>>, vector<1x8x16xf32>,
    %38 = vector.extract_strided_slice %25 {offsets = [0, 16], sizes = [8, 16], strides = [1, 1]} : vector<8x32xf32> to vector<8x16xf32>
    %39 = arith.mulf %38, %38 : vector<8x16xf32>
    %cst_29 = arith.constant dense<0.000000e+00> : vector<8xf32>
    %40 = vector.multi_reduction <add>, %39, %cst_29 [1] : vector<8x16xf32> to vector<8xf32>
    %41 = vector.shape_cast %40 : vector<8xf32> to vector<8x1xf32>
    %cst_30 = arith.constant 1.000000e-18 : f32
    %42 = vector.broadcast %cst_30 : f32 to vector<8x1xf32>
    %43 = arith.addf %41, %42 : vector<8x1xf32>
    %44 = math.rsqrt %43 : vector<8x1xf32>
    %45 = vector.broadcast %44 : vector<8x1xf32> to vector<8x16xf32>
    %46 = arith.mulf %38, %45 : vector<8x16xf32>
    %c0_31 = arith.constant 0 : index
    %c8 = arith.constant 8 : index
    %c0_32 = arith.constant 0 : index
    %47 = vector.load %arg10[%c0_31, %c8, %c0_32] : memref<2x16x16xf32, #tpu.memory_space<vmem>>, vector<1x8x16xf32>
    %48 = vector.shape_cast %47 : vector<1x8x16xf32> to vector<8x16xf32>
    %49 = vector.shape_cast %46 : vector<8x16xf32> to vector<1x8x16xf32>
    tpu.vector_store %arg10[%c0_31, %c8, %c0_32], %49 {strides = array<i32>} : memref<2x16x16xf32, #tpu.memory_space<vmem>>, vector<1x8x16xf32>,
    %50 = vector.extract_strided_slice %12 {offsets = [0, 0], sizes = [16, 32], strides = [1, 1]} : vector<48x32xf32> to vector<16x32xf32>
    %51 = vector.extract_strided_slice %15 {offsets = [1, 0], sizes = [16, 32], strides = [1, 1]} : vector<48x32xf32> to vector<16x32xf32>
    %52 = arith.addf %50, %51 : vector<16x32xf32>
    %53 = vector.broadcast %16 : vector<1x32xf32> to vector<16x32xf32>
    %54 = arith.addf %52, %53 : vector<16x32xf32>
    %c0_33 = arith.constant 0 : index
    %c0_34 = arith.constant 0 : index
    %c0_35 = arith.constant 0 : index
    %55 = vector.load %arg4[%c0_33, %c0_34, %c0_35] : memref<2x24x1xf32, #tpu.memory_space<vmem>>, vector<1x16x1xf32>
    %56 = vector.shape_cast %55 : vector<1x16x1xf32> to vector<16x1xf32>
    %57 = vector.broadcast %56 : vector<16x1xf32> to vector<16x32xf32>
    %58 = arith.mulf %54, %57 : vector<16x32xf32>
    %59 = vector.extract_strided_slice %58 {offsets = [0, 0], sizes = [16, 16], strides = [1, 1]} : vector<16x32xf32> to vector<16x16xf32>
    %60 = arith.mulf %59, %59 : vector<16x16xf32>
    %cst_36 = arith.constant dense<0.000000e+00> : vector<16xf32>
    %61 = vector.multi_reduction <add>, %60, %cst_36 [1] : vector<16x16xf32> to vector<16xf32>
    %62 = vector.shape_cast %61 : vector<16xf32> to vector<16x1xf32>
    %cst_37 = arith.constant 1.000000e-18 : f32
    %63 = vector.broadcast %cst_37 : f32 to vector<16x1xf32>
    %64 = arith.addf %62, %63 : vector<16x1xf32>
    %65 = math.rsqrt %64 : vector<16x1xf32>
    %66 = vector.broadcast %65 : vector<16x1xf32> to vector<16x16xf32>
    %67 = arith.mulf %59, %66 : vector<16x16xf32>
    %c0_38 = arith.constant 0 : index
    %c0_39 = arith.constant 0 : index
    %c0_40 = arith.constant 0 : index
    %68 = vector.load %arg11[%c0_38, %c0_39, %c0_40] : memref<2x32x16xf32, #tpu.memory_space<vmem>>, vector<1x16x16xf32>
    %69 = vector.shape_cast %68 : vector<1x16x16xf32> to vector<16x16xf32>
    %70 = vector.shape_cast %67 : vector<16x16xf32> to vector<1x16x16xf32>
    tpu.vector_store %arg11[%c0_38, %c0_39, %c0_40], %70 {strides = array<i32>} : memref<2x32x16xf32, #tpu.memory_space<vmem>>, vector<1x16x16xf32>,
    %71 = vector.extract_strided_slice %58 {offsets = [0, 16], sizes = [16, 16], strides = [1, 1]} : vector<16x32xf32> to vector<16x16xf32>
    %72 = arith.mulf %71, %71 : vector<16x16xf32>
    %cst_41 = arith.constant dense<0.000000e+00> : vector<16xf32>
    %73 = vector.multi_reduction <add>, %72, %cst_41 [1] : vector<16x16xf32> to vector<16xf32>
    %74 = vector.shape_cast %73 : vector<16xf32> to vector<16x1xf32>
    %cst_42 = arith.constant 1.000000e-18 : f32
    %75 = vector.broadcast %cst_42 : f32 to vector<16x1xf32>
    %76 = arith.addf %74, %75 : vector<16x1xf32>
    %77 = math.rsqrt %76 : vector<16x1xf32>
    %78 = vector.broadcast %77 : vector<16x1xf32> to vector<16x16xf32>
    %79 = arith.mulf %71, %78 : vector<16x16xf32>
    %c0_43 = arith.constant 0 : index
    %c16 = arith.constant 16 : index
    %c0_44 = arith.constant 0 : index
    %80 = vector.load %arg11[%c0_43, %c16, %c0_44] : memref<2x32x16xf32, #tpu.memory_space<vmem>>, vector<1x16x16xf32>
    %81 = vector.shape_cast %80 : vector<1x16x16xf32> to vector<16x16xf32>
    %82 = vector.shape_cast %79 : vector<16x16xf32> to vector<1x16x16xf32>
    tpu.vector_store %arg11[%c0_43, %c16, %c0_44], %82 {strides = array<i32>} : memref<2x32x16xf32, #tpu.memory_space<vmem>>, vector<1x16x16xf32>,
    %83 = vector.extract_strided_slice %6 {offsets = [16, 0], sizes = [8, 32], strides = [1, 1]} : vector<32x32xf32> to vector<8x32xf32>
    %84 = vector.extract_strided_slice %9 {offsets = [17, 0], sizes = [8, 32], strides = [1, 1]} : vector<32x32xf32> to vector<8x32xf32>
    %85 = arith.addf %83, %84 : vector<8x32xf32>
    %86 = vector.broadcast %16 : vector<1x32xf32> to vector<8x32xf32>
    %87 = arith.addf %85, %86 : vector<8x32xf32>
    %c1_45 = arith.constant 1 : index
    %c0_46 = arith.constant 0 : index
    %c0_47 = arith.constant 0 : index
    %88 = vector.load %arg3[%c1_45, %c0_46, %c0_47] : memref<2x16x1xf32, #tpu.memory_space<vmem>>, vector<1x8x1xf32>
    %89 = vector.shape_cast %88 : vector<1x8x1xf32> to vector<8x1xf32>
    %90 = vector.broadcast %89 : vector<8x1xf32> to vector<8x32xf32>
    %91 = arith.mulf %87, %90 : vector<8x32xf32>
    %92 = vector.extract_strided_slice %91 {offsets = [0, 0], sizes = [8, 16], strides = [1, 1]} : vector<8x32xf32> to vector<8x16xf32>
    %93 = arith.mulf %92, %92 : vector<8x16xf32>
    %cst_48 = arith.constant dense<0.000000e+00> : vector<8xf32>
    %94 = vector.multi_reduction <add>, %93, %cst_48 [1] : vector<8x16xf32> to vector<8xf32>
    %95 = vector.shape_cast %94 : vector<8xf32> to vector<8x1xf32>
    %cst_49 = arith.constant 1.000000e-18 : f32
    %96 = vector.broadcast %cst_49 : f32 to vector<8x1xf32>
    %97 = arith.addf %95, %96 : vector<8x1xf32>
    %98 = math.rsqrt %97 : vector<8x1xf32>
    %99 = vector.broadcast %98 : vector<8x1xf32> to vector<8x16xf32>
    %100 = arith.mulf %92, %99 : vector<8x16xf32>
    %c1_50 = arith.constant 1 : index
    %c0_51 = arith.constant 0 : index
    %c0_52 = arith.constant 0 : index
    %101 = vector.load %arg10[%c1_50, %c0_51, %c0_52] : memref<2x16x16xf32, #tpu.memory_space<vmem>>, vector<1x8x16xf32>
    %102 = vector.shape_cast %101 : vector<1x8x16xf32> to vector<8x16xf32>
    %103 = vector.shape_cast %100 : vector<8x16xf32> to vector<1x8x16xf32>
    tpu.vector_store %arg10[%c1_50, %c0_51, %c0_52], %103 {strides = array<i32>} : memref<2x16x16xf32, #tpu.memory_space<vmem>>, vector<1x8x16xf32>,
    %104 = vector.extract_strided_slice %91 {offsets = [0, 16], sizes = [8, 16], strides = [1, 1]} : vector<8x32xf32> to vector<8x16xf32>
    %105 = arith.mulf %104, %104 : vector<8x16xf32>
    %cst_53 = arith.constant dense<0.000000e+00> : vector<8xf32>
    %106 = vector.multi_reduction <add>, %105, %cst_53 [1] : vector<8x16xf32> to vector<8xf32>
    %107 = vector.shape_cast %106 : vector<8xf32> to vector<8x1xf32>
    %cst_54 = arith.constant 1.000000e-18 : f32
    %108 = vector.broadcast %cst_54 : f32 to vector<8x1xf32>
    %109 = arith.addf %107, %108 : vector<8x1xf32>
    %110 = math.rsqrt %109 : vector<8x1xf32>
    %111 = vector.broadcast %110 : vector<8x1xf32> to vector<8x16xf32>
    %112 = arith.mulf %104, %111 : vector<8x16xf32>
    %c1_55 = arith.constant 1 : index
    %c8_56 = arith.constant 8 : index
    %c0_57 = arith.constant 0 : index
    %113 = vector.load %arg10[%c1_55, %c8_56, %c0_57] : memref<2x16x16xf32, #tpu.memory_space<vmem>>, vector<1x8x16xf32>
    %114 = vector.shape_cast %113 : vector<1x8x16xf32> to vector<8x16xf32>
    %115 = vector.shape_cast %112 : vector<8x16xf32> to vector<1x8x16xf32>
    tpu.vector_store %arg10[%c1_55, %c8_56, %c0_57], %115 {strides = array<i32>} : memref<2x16x16xf32, #tpu.memory_space<vmem>>, vector<1x8x16xf32>,
    %116 = vector.extract_strided_slice %12 {offsets = [24, 0], sizes = [16, 32], strides = [1, 1]} : vector<48x32xf32> to vector<16x32xf32>
    %117 = vector.extract_strided_slice %15 {offsets = [25, 0], sizes = [16, 32], strides = [1, 1]} : vector<48x32xf32> to vector<16x32xf32>
    %118 = arith.addf %116, %117 : vector<16x32xf32>
    %119 = vector.broadcast %16 : vector<1x32xf32> to vector<16x32xf32>
    %120 = arith.addf %118, %119 : vector<16x32xf32>
    %c1_58 = arith.constant 1 : index
    %c0_59 = arith.constant 0 : index
    %c0_60 = arith.constant 0 : index
    %121 = vector.load %arg4[%c1_58, %c0_59, %c0_60] : memref<2x24x1xf32, #tpu.memory_space<vmem>>, vector<1x16x1xf32>
    %122 = vector.shape_cast %121 : vector<1x16x1xf32> to vector<16x1xf32>
    %123 = vector.broadcast %122 : vector<16x1xf32> to vector<16x32xf32>
    %124 = arith.mulf %120, %123 : vector<16x32xf32>
    %125 = vector.extract_strided_slice %124 {offsets = [0, 0], sizes = [16, 16], strides = [1, 1]} : vector<16x32xf32> to vector<16x16xf32>
    %126 = arith.mulf %125, %125 : vector<16x16xf32>
    %cst_61 = arith.constant dense<0.000000e+00> : vector<16xf32>
    %127 = vector.multi_reduction <add>, %126, %cst_61 [1] : vector<16x16xf32> to vector<16xf32>
    %128 = vector.shape_cast %127 : vector<16xf32> to vector<16x1xf32>
    %cst_62 = arith.constant 1.000000e-18 : f32
    %129 = vector.broadcast %cst_62 : f32 to vector<16x1xf32>
    %130 = arith.addf %128, %129 : vector<16x1xf32>
    %131 = math.rsqrt %130 : vector<16x1xf32>
    %132 = vector.broadcast %131 : vector<16x1xf32> to vector<16x16xf32>
    %133 = arith.mulf %125, %132 : vector<16x16xf32>
    %c1_63 = arith.constant 1 : index
    %c0_64 = arith.constant 0 : index
    %c0_65 = arith.constant 0 : index
    %134 = vector.load %arg11[%c1_63, %c0_64, %c0_65] : memref<2x32x16xf32, #tpu.memory_space<vmem>>, vector<1x16x16xf32>
    %135 = vector.shape_cast %134 : vector<1x16x16xf32> to vector<16x16xf32>
    %136 = vector.shape_cast %133 : vector<16x16xf32> to vector<1x16x16xf32>
    tpu.vector_store %arg11[%c1_63, %c0_64, %c0_65], %136 {strides = array<i32>} : memref<2x32x16xf32, #tpu.memory_space<vmem>>, vector<1x16x16xf32>,
    %137 = vector.extract_strided_slice %124 {offsets = [0, 16], sizes = [16, 16], strides = [1, 1]} : vector<16x32xf32> to vector<16x16xf32>
    %138 = arith.mulf %137, %137 : vector<16x16xf32>
    %cst_66 = arith.constant dense<0.000000e+00> : vector<16xf32>
    %139 = vector.multi_reduction <add>, %138, %cst_66 [1] : vector<16x16xf32> to vector<16xf32>
    %140 = vector.shape_cast %139 : vector<16xf32> to vector<16x1xf32>
    %cst_67 = arith.constant 1.000000e-18 : f32
    %141 = vector.broadcast %cst_67 : f32 to vector<16x1xf32>
    %142 = arith.addf %140, %141 : vector<16x1xf32>
    %143 = math.rsqrt %142 : vector<16x1xf32>
    %144 = vector.broadcast %143 : vector<16x1xf32> to vector<16x16xf32>
    %145 = arith.mulf %137, %144 : vector<16x16xf32>
    %c1_68 = arith.constant 1 : index
    %c16_69 = arith.constant 16 : index
    %c0_70 = arith.constant 0 : index
    %146 = vector.load %arg11[%c1_68, %c16_69, %c0_70] : memref<2x32x16xf32, #tpu.memory_space<vmem>>, vector<1x16x16xf32>
    %147 = vector.shape_cast %146 : vector<1x16x16xf32> to vector<16x16xf32>
    %148 = vector.shape_cast %145 : vector<16x16xf32> to vector<1x16x16xf32>
    tpu.vector_store %arg11[%c1_68, %c16_69, %c0_70], %148 {strides = array<i32>} : memref<2x32x16xf32, #tpu.memory_space<vmem>>, vector<1x16x16xf32>,
    %c0_71 = arith.constant 0 : index
    %c0_72 = arith.constant 0 : index
    %c0_73 = arith.constant 0 : index
    %149 = vector.load %arg10[%c0_71, %c0_72, %c0_73] : memref<2x16x16xf32, #tpu.memory_space<vmem>>, vector<2x16x16xf32>
    %c0_74 = arith.constant 0 : index
    %c0_75 = arith.constant 0 : index
    %c0_76 = arith.constant 0 : index
    %150 = vector.load %arg11[%c0_74, %c0_75, %c0_76] : memref<2x32x16xf32, #tpu.memory_space<vmem>>, vector<2x32x16xf32>
    "tpu.trace_start"() <{level = 10 : i32, message = "bqf,bdf->bqd"}> : () -> ()
    %cst_77 = arith.constant dense<0.000000e+00> : vector<2x16x32xf32>
    %151 = tpu.matmul %149, %150, %cst_77 {dimension_numbers = #tpu.dot_dimension_numbers<[2], [2], [1], [1], [0, 0, 0, 1, 1, 1], [0], [0]>} : vector<2x16x16xf32>, vector<2x32x16xf32>, vector<2x16x32xf32> -> vector<2x16x32xf32>
    "tpu.trace_stop"() : () -> ()
    %152 = vector.extract_strided_slice %151 {offsets = [0, 0, 0], sizes = [2, 16, 16], strides = [1, 1, 1]} : vector<2x16x32xf32> to vector<2x16x16xf32>
    %cst_78 = arith.constant dense<0.000000e+00> : vector<2x16xf32>
    %153 = vector.multi_reduction <add>, %152, %cst_78 [2] : vector<2x16x16xf32> to vector<2x16xf32>
    %154 = vector.shape_cast %153 : vector<2x16xf32> to vector<2x16x1xf32>
    %cst_79 = arith.constant 0.000000e+00 : f32
    %155 = vector.broadcast %cst_79 : f32 to vector<2x16x1xf32>
    %156 = arith.cmpf one, %154, %155 : vector<2x16x1xf32>
    %157 = vector.extract_strided_slice %151 {offsets = [0, 0, 16], sizes = [2, 16, 16], strides = [1, 1, 1]} : vector<2x16x32xf32> to vector<2x16x16xf32>
    %cst_80 = arith.constant dense<0.000000e+00> : vector<2x16xf32>
    %158 = vector.multi_reduction <add>, %157, %cst_80 [2] : vector<2x16x16xf32> to vector<2x16xf32>
    %159 = vector.shape_cast %158 : vector<2x16xf32> to vector<2x16x1xf32>
    %cst_81 = arith.constant 0.000000e+00 : f32
    %160 = vector.broadcast %cst_81 : f32 to vector<2x16x1xf32>
    %161 = arith.cmpf one, %159, %160 : vector<2x16x1xf32>
    %cst_82 = arith.constant 2.000000e+01 : f32
    %162 = vector.broadcast %cst_82 : f32 to vector<2x16x32xf32>
    %163 = arith.mulf %162, %151 : vector<2x16x32xf32>
    %164 = math.exp %163 : vector<2x16x32xf32>
    %cst_83 = arith.constant -2.000000e+01 : f32
    %165 = vector.broadcast %cst_83 : f32 to vector<2x16x32xf32>
    %166 = arith.mulf %165, %151 : vector<2x16x32xf32>
    %167 = math.exp %166 : vector<2x16x32xf32>
    %cst_84 = arith.constant -1.000000e-01 : f32
    %168 = vector.broadcast %cst_84 : f32 to vector<2x16x32xf32>
    %169 = arith.subf %151, %168 : vector<2x16x32xf32>
    %cst_85 = arith.constant -5.000000e+01 : f32
    %170 = vector.broadcast %cst_85 : f32 to vector<2x16x32xf32>
    %171 = arith.mulf %170, %169 : vector<2x16x32xf32>
    %172 = arith.mulf %171, %169 : vector<2x16x32xf32>
    %173 = math.exp %172 : vector<2x16x32xf32>
    %174 = vector.extract_strided_slice %173 {offsets = [0, 0, 0], sizes = [2, 16, 16], strides = [1, 1, 1]} : vector<2x16x32xf32> to vector<2x16x16xf32>
    %cst_86 = arith.constant dense<0.000000e+00> : vector<2x16xf32>
    %175 = vector.multi_reduction <add>, %174, %cst_86 [2] : vector<2x16x16xf32> to vector<2x16xf32>
    %176 = vector.shape_cast %175 : vector<2x16xf32> to vector<2x16x1xf32>
    %cst_87 = arith.constant 9.99999997E-7 : f32
    %177 = vector.broadcast %cst_87 : f32 to vector<2x16x1xf32>
    %178 = arith.addf %176, %177 : vector<2x16x1xf32>
    %179 = math.log %178 : vector<2x16x1xf32>
    %cst_88 = arith.constant 0.000000e+00 : f32
    %180 = vector.broadcast %cst_88 : f32 to vector<2x16x1xf32>
    %181 = arith.select %156, %179, %180 : vector<2x16x1xi1>, vector<2x16x1xf32>
    %c4 = arith.constant 4 : index
    %c0_89 = arith.constant 0 : index
    %c0_90 = arith.constant 0 : index
    %c0_91 = arith.constant 0 : index
    %182 = vector.load %arg7[%c4, %c0_89, %c0_90, %c0_91] : memref<11x2x16x1xf32, #tpu.memory_space<vmem>>, vector<1x1x16x1xf32>
    %183 = vector.shape_cast %182 : vector<1x1x16x1xf32> to vector<16x1xf32>
    %184 = vector.shape_cast %183 : vector<16x1xf32> to vector<1x16x1xf32>
    %185 = vector.broadcast %184 : vector<1x16x1xf32> to vector<2x16x1xf32>
    %186 = arith.mulf %185, %181 : vector<2x16x1xf32>
    %187 = vector.extract_strided_slice %173 {offsets = [0, 0, 16], sizes = [2, 16, 16], strides = [1, 1, 1]} : vector<2x16x32xf32> to vector<2x16x16xf32>
    %cst_92 = arith.constant dense<0.000000e+00> : vector<2x16xf32>
    %188 = vector.multi_reduction <add>, %187, %cst_92 [2] : vector<2x16x16xf32> to vector<2x16xf32>
    %189 = vector.shape_cast %188 : vector<2x16xf32> to vector<2x16x1xf32>
    %cst_93 = arith.constant 9.99999997E-7 : f32
    %190 = vector.broadcast %cst_93 : f32 to vector<2x16x1xf32>
    %191 = arith.addf %189, %190 : vector<2x16x1xf32>
    %192 = math.log %191 : vector<2x16x1xf32>
    %cst_94 = arith.constant 0.000000e+00 : f32
    %193 = vector.broadcast %cst_94 : f32 to vector<2x16x1xf32>
    %194 = arith.select %161, %192, %193 : vector<2x16x1xi1>, vector<2x16x1xf32>
    %c4_95 = arith.constant 4 : index
    %c1_96 = arith.constant 1 : index
    %c0_97 = arith.constant 0 : index
    %c0_98 = arith.constant 0 : index
    %195 = vector.load %arg7[%c4_95, %c1_96, %c0_97, %c0_98] : memref<11x2x16x1xf32, #tpu.memory_space<vmem>>, vector<1x1x16x1xf32>
    %196 = vector.shape_cast %195 : vector<1x1x16x1xf32> to vector<16x1xf32>
    %197 = vector.shape_cast %196 : vector<16x1xf32> to vector<1x16x1xf32>
    %198 = vector.broadcast %197 : vector<1x16x1xf32> to vector<2x16x1xf32>
    %199 = arith.mulf %198, %194 : vector<2x16x1xf32>
    %200 = arith.addf %186, %199 : vector<2x16x1xf32>
    %201 = arith.mulf %173, %164 : vector<2x16x32xf32>
    %cst_99 = arith.constant 1.000000e+00 : f32
    %202 = vector.broadcast %cst_99 : f32 to vector<2x16x32xf32>
    %203 = arith.mulf %201, %202 : vector<2x16x32xf32>
    %204 = vector.extract_strided_slice %203 {offsets = [0, 0, 0], sizes = [2, 16, 16], strides = [1, 1, 1]} : vector<2x16x32xf32> to vector<2x16x16xf32>
    %cst_100 = arith.constant dense<0.000000e+00> : vector<2x16xf32>
    %205 = vector.multi_reduction <add>, %204, %cst_100 [2] : vector<2x16x16xf32> to vector<2x16xf32>
    %206 = vector.shape_cast %205 : vector<2x16xf32> to vector<2x16x1xf32>
    %cst_101 = arith.constant 9.99999997E-7 : f32
    %207 = vector.broadcast %cst_101 : f32 to vector<2x16x1xf32>
    %208 = arith.addf %206, %207 : vector<2x16x1xf32>
    %209 = math.log %208 : vector<2x16x1xf32>
    %cst_102 = arith.constant 0.000000e+00 : f32
    %210 = vector.broadcast %cst_102 : f32 to vector<2x16x1xf32>
    %211 = arith.select %156, %209, %210 : vector<2x16x1xi1>, vector<2x16x1xf32>
    %c5 = arith.constant 5 : index
    %c0_103 = arith.constant 0 : index
    %c0_104 = arith.constant 0 : index
    %c0_105 = arith.constant 0 : index
    %212 = vector.load %arg7[%c5, %c0_103, %c0_104, %c0_105] : memref<11x2x16x1xf32, #tpu.memory_space<vmem>>, vector<1x1x16x1xf32>
    %213 = vector.shape_cast %212 : vector<1x1x16x1xf32> to vector<16x1xf32>
    %214 = vector.shape_cast %213 : vector<16x1xf32> to vector<1x16x1xf32>
    %215 = vector.broadcast %214 : vector<1x16x1xf32> to vector<2x16x1xf32>
    %216 = arith.mulf %215, %211 : vector<2x16x1xf32>
    %217 = arith.addf %200, %216 : vector<2x16x1xf32>
    %218 = vector.extract_strided_slice %203 {offsets = [0, 0, 16], sizes = [2, 16, 16], strides = [1, 1, 1]} : vector<2x16x32xf32> to vector<2x16x16xf32>
    %cst_106 = arith.constant dense<0.000000e+00> : vector<2x16xf32>
    %219 = vector.multi_reduction <add>, %218, %cst_106 [2] : vector<2x16x16xf32> to vector<2x16xf32>
    %220 = vector.shape_cast %219 : vector<2x16xf32> to vector<2x16x1xf32>
    %cst_107 = arith.constant 9.99999997E-7 : f32
    %221 = vector.broadcast %cst_107 : f32 to vector<2x16x1xf32>
    %222 = arith.addf %220, %221 : vector<2x16x1xf32>
    %223 = math.log %222 : vector<2x16x1xf32>
    %cst_108 = arith.constant 0.000000e+00 : f32
    %224 = vector.broadcast %cst_108 : f32 to vector<2x16x1xf32>
    %225 = arith.select %161, %223, %224 : vector<2x16x1xi1>, vector<2x16x1xf32>
    %c5_109 = arith.constant 5 : index
    %c1_110 = arith.constant 1 : index
    %c0_111 = arith.constant 0 : index
    %c0_112 = arith.constant 0 : index
    %226 = vector.load %arg7[%c5_109, %c1_110, %c0_111, %c0_112] : memref<11x2x16x1xf32, #tpu.memory_space<vmem>>, vector<1x1x16x1xf32>
    %227 = vector.shape_cast %226 : vector<1x1x16x1xf32> to vector<16x1xf32>
    %228 = vector.shape_cast %227 : vector<16x1xf32> to vector<1x16x1xf32>
    %229 = vector.broadcast %228 : vector<1x16x1xf32> to vector<2x16x1xf32>
    %230 = arith.mulf %229, %225 : vector<2x16x1xf32>
    %231 = arith.addf %217, %230 : vector<2x16x1xf32>
    %232 = arith.mulf %203, %164 : vector<2x16x32xf32>
    %cst_113 = arith.constant 0.0183156393 : f32
    %233 = vector.broadcast %cst_113 : f32 to vector<2x16x32xf32>
    %234 = arith.mulf %232, %233 : vector<2x16x32xf32>
    %235 = vector.extract_strided_slice %234 {offsets = [0, 0, 0], sizes = [2, 16, 16], strides = [1, 1, 1]} : vector<2x16x32xf32> to vector<2x16x16xf32>
    %cst_114 = arith.constant dense<0.000000e+00> : vector<2x16xf32>
    %236 = vector.multi_reduction <add>, %235, %cst_114 [2] : vector<2x16x16xf32> to vector<2x16xf32>
    %237 = vector.shape_cast %236 : vector<2x16xf32> to vector<2x16x1xf32>
    %cst_115 = arith.constant 9.99999997E-7 : f32
    %238 = vector.broadcast %cst_115 : f32 to vector<2x16x1xf32>
    %239 = arith.addf %237, %238 : vector<2x16x1xf32>
    %240 = math.log %239 : vector<2x16x1xf32>
    %cst_116 = arith.constant 0.000000e+00 : f32
    %241 = vector.broadcast %cst_116 : f32 to vector<2x16x1xf32>
    %242 = arith.select %156, %240, %241 : vector<2x16x1xi1>, vector<2x16x1xf32>
    %c6 = arith.constant 6 : index
    %c0_117 = arith.constant 0 : index
    %c0_118 = arith.constant 0 : index
    %c0_119 = arith.constant 0 : index
    %243 = vector.load %arg7[%c6, %c0_117, %c0_118, %c0_119] : memref<11x2x16x1xf32, #tpu.memory_space<vmem>>, vector<1x1x16x1xf32>
    %244 = vector.shape_cast %243 : vector<1x1x16x1xf32> to vector<16x1xf32>
    %245 = vector.shape_cast %244 : vector<16x1xf32> to vector<1x16x1xf32>
    %246 = vector.broadcast %245 : vector<1x16x1xf32> to vector<2x16x1xf32>
    %247 = arith.mulf %246, %242 : vector<2x16x1xf32>
    %248 = arith.addf %231, %247 : vector<2x16x1xf32>
    %249 = vector.extract_strided_slice %234 {offsets = [0, 0, 16], sizes = [2, 16, 16], strides = [1, 1, 1]} : vector<2x16x32xf32> to vector<2x16x16xf32>
    %cst_120 = arith.constant dense<0.000000e+00> : vector<2x16xf32>
    %250 = vector.multi_reduction <add>, %249, %cst_120 [2] : vector<2x16x16xf32> to vector<2x16xf32>
    %251 = vector.shape_cast %250 : vector<2x16xf32> to vector<2x16x1xf32>
    %cst_121 = arith.constant 9.99999997E-7 : f32
    %252 = vector.broadcast %cst_121 : f32 to vector<2x16x1xf32>
    %253 = arith.addf %251, %252 : vector<2x16x1xf32>
    %254 = math.log %253 : vector<2x16x1xf32>
    %cst_122 = arith.constant 0.000000e+00 : f32
    %255 = vector.broadcast %cst_122 : f32 to vector<2x16x1xf32>
    %256 = arith.select %161, %254, %255 : vector<2x16x1xi1>, vector<2x16x1xf32>
    %c6_123 = arith.constant 6 : index
    %c1_124 = arith.constant 1 : index
    %c0_125 = arith.constant 0 : index
    %c0_126 = arith.constant 0 : index
    %257 = vector.load %arg7[%c6_123, %c1_124, %c0_125, %c0_126] : memref<11x2x16x1xf32, #tpu.memory_space<vmem>>, vector<1x1x16x1xf32>
    %258 = vector.shape_cast %257 : vector<1x1x16x1xf32> to vector<16x1xf32>
    %259 = vector.shape_cast %258 : vector<16x1xf32> to vector<1x16x1xf32>
    %260 = vector.broadcast %259 : vector<1x16x1xf32> to vector<2x16x1xf32>
    %261 = arith.mulf %260, %256 : vector<2x16x1xf32>
    %262 = arith.addf %248, %261 : vector<2x16x1xf32>
    %263 = arith.mulf %234, %164 : vector<2x16x32xf32>
    %cst_127 = arith.constant 3.35462624E-4 : f32
    %264 = vector.broadcast %cst_127 : f32 to vector<2x16x32xf32>
    %265 = arith.mulf %263, %264 : vector<2x16x32xf32>
    %266 = vector.extract_strided_slice %265 {offsets = [0, 0, 0], sizes = [2, 16, 16], strides = [1, 1, 1]} : vector<2x16x32xf32> to vector<2x16x16xf32>
    %cst_128 = arith.constant dense<0.000000e+00> : vector<2x16xf32>
    %267 = vector.multi_reduction <add>, %266, %cst_128 [2] : vector<2x16x16xf32> to vector<2x16xf32>
    %268 = vector.shape_cast %267 : vector<2x16xf32> to vector<2x16x1xf32>
    %cst_129 = arith.constant 9.99999997E-7 : f32
    %269 = vector.broadcast %cst_129 : f32 to vector<2x16x1xf32>
    %270 = arith.addf %268, %269 : vector<2x16x1xf32>
    %271 = math.log %270 : vector<2x16x1xf32>
    %cst_130 = arith.constant 0.000000e+00 : f32
    %272 = vector.broadcast %cst_130 : f32 to vector<2x16x1xf32>
    %273 = arith.select %156, %271, %272 : vector<2x16x1xi1>, vector<2x16x1xf32>
    %c7 = arith.constant 7 : index
    %c0_131 = arith.constant 0 : index
    %c0_132 = arith.constant 0 : index
    %c0_133 = arith.constant 0 : index
    %274 = vector.load %arg7[%c7, %c0_131, %c0_132, %c0_133] : memref<11x2x16x1xf32, #tpu.memory_space<vmem>>, vector<1x1x16x1xf32>
    %275 = vector.shape_cast %274 : vector<1x1x16x1xf32> to vector<16x1xf32>
    %276 = vector.shape_cast %275 : vector<16x1xf32> to vector<1x16x1xf32>
    %277 = vector.broadcast %276 : vector<1x16x1xf32> to vector<2x16x1xf32>
    %278 = arith.mulf %277, %273 : vector<2x16x1xf32>
    %279 = arith.addf %262, %278 : vector<2x16x1xf32>
    %280 = vector.extract_strided_slice %265 {offsets = [0, 0, 16], sizes = [2, 16, 16], strides = [1, 1, 1]} : vector<2x16x32xf32> to vector<2x16x16xf32>
    %cst_134 = arith.constant dense<0.000000e+00> : vector<2x16xf32>
    %281 = vector.multi_reduction <add>, %280, %cst_134 [2] : vector<2x16x16xf32> to vector<2x16xf32>
    %282 = vector.shape_cast %281 : vector<2x16xf32> to vector<2x16x1xf32>
    %cst_135 = arith.constant 9.99999997E-7 : f32
    %283 = vector.broadcast %cst_135 : f32 to vector<2x16x1xf32>
    %284 = arith.addf %282, %283 : vector<2x16x1xf32>
    %285 = math.log %284 : vector<2x16x1xf32>
    %cst_136 = arith.constant 0.000000e+00 : f32
    %286 = vector.broadcast %cst_136 : f32 to vector<2x16x1xf32>
    %287 = arith.select %161, %285, %286 : vector<2x16x1xi1>, vector<2x16x1xf32>
    %c7_137 = arith.constant 7 : index
    %c1_138 = arith.constant 1 : index
    %c0_139 = arith.constant 0 : index
    %c0_140 = arith.constant 0 : index
    %288 = vector.load %arg7[%c7_137, %c1_138, %c0_139, %c0_140] : memref<11x2x16x1xf32, #tpu.memory_space<vmem>>, vector<1x1x16x1xf32>
    %289 = vector.shape_cast %288 : vector<1x1x16x1xf32> to vector<16x1xf32>
    %290 = vector.shape_cast %289 : vector<16x1xf32> to vector<1x16x1xf32>
    %291 = vector.broadcast %290 : vector<1x16x1xf32> to vector<2x16x1xf32>
    %292 = arith.mulf %291, %287 : vector<2x16x1xf32>
    %293 = arith.addf %279, %292 : vector<2x16x1xf32>
    %294 = arith.mulf %265, %164 : vector<2x16x32xf32>
    %cst_141 = arith.constant 6.14421242E-6 : f32
    %295 = vector.broadcast %cst_141 : f32 to vector<2x16x32xf32>
    %296 = arith.mulf %294, %295 : vector<2x16x32xf32>
    %297 = vector.extract_strided_slice %296 {offsets = [0, 0, 0], sizes = [2, 16, 16], strides = [1, 1, 1]} : vector<2x16x32xf32> to vector<2x16x16xf32>
    %cst_142 = arith.constant dense<0.000000e+00> : vector<2x16xf32>
    %298 = vector.multi_reduction <add>, %297, %cst_142 [2] : vector<2x16x16xf32> to vector<2x16xf32>
    %299 = vector.shape_cast %298 : vector<2x16xf32> to vector<2x16x1xf32>
    %cst_143 = arith.constant 9.99999997E-7 : f32
    %300 = vector.broadcast %cst_143 : f32 to vector<2x16x1xf32>
    %301 = arith.addf %299, %300 : vector<2x16x1xf32>
    %302 = math.log %301 : vector<2x16x1xf32>
    %cst_144 = arith.constant 0.000000e+00 : f32
    %303 = vector.broadcast %cst_144 : f32 to vector<2x16x1xf32>
    %304 = arith.select %156, %302, %303 : vector<2x16x1xi1>, vector<2x16x1xf32>
    %c8_145 = arith.constant 8 : index
    %c0_146 = arith.constant 0 : index
    %c0_147 = arith.constant 0 : index
    %c0_148 = arith.constant 0 : index
    %305 = vector.load %arg7[%c8_145, %c0_146, %c0_147, %c0_148] : memref<11x2x16x1xf32, #tpu.memory_space<vmem>>, vector<1x1x16x1xf32>
    %306 = vector.shape_cast %305 : vector<1x1x16x1xf32> to vector<16x1xf32>
    %307 = vector.shape_cast %306 : vector<16x1xf32> to vector<1x16x1xf32>
    %308 = vector.broadcast %307 : vector<1x16x1xf32> to vector<2x16x1xf32>
    %309 = arith.mulf %308, %304 : vector<2x16x1xf32>
    %310 = arith.addf %293, %309 : vector<2x16x1xf32>
    %311 = vector.extract_strided_slice %296 {offsets = [0, 0, 16], sizes = [2, 16, 16], strides = [1, 1, 1]} : vector<2x16x32xf32> to vector<2x16x16xf32>
    %cst_149 = arith.constant dense<0.000000e+00> : vector<2x16xf32>
    %312 = vector.multi_reduction <add>, %311, %cst_149 [2] : vector<2x16x16xf32> to vector<2x16xf32>
    %313 = vector.shape_cast %312 : vector<2x16xf32> to vector<2x16x1xf32>
    %cst_150 = arith.constant 9.99999997E-7 : f32
    %314 = vector.broadcast %cst_150 : f32 to vector<2x16x1xf32>
    %315 = arith.addf %313, %314 : vector<2x16x1xf32>
    %316 = math.log %315 : vector<2x16x1xf32>
    %cst_151 = arith.constant 0.000000e+00 : f32
    %317 = vector.broadcast %cst_151 : f32 to vector<2x16x1xf32>
    %318 = arith.select %161, %316, %317 : vector<2x16x1xi1>, vector<2x16x1xf32>
    %c8_152 = arith.constant 8 : index
    %c1_153 = arith.constant 1 : index
    %c0_154 = arith.constant 0 : index
    %c0_155 = arith.constant 0 : index
    %319 = vector.load %arg7[%c8_152, %c1_153, %c0_154, %c0_155] : memref<11x2x16x1xf32, #tpu.memory_space<vmem>>, vector<1x1x16x1xf32>
    %320 = vector.shape_cast %319 : vector<1x1x16x1xf32> to vector<16x1xf32>
    %321 = vector.shape_cast %320 : vector<16x1xf32> to vector<1x16x1xf32>
    %322 = vector.broadcast %321 : vector<1x16x1xf32> to vector<2x16x1xf32>
    %323 = arith.mulf %322, %318 : vector<2x16x1xf32>
    %324 = arith.addf %310, %323 : vector<2x16x1xf32>
    %325 = arith.mulf %296, %164 : vector<2x16x32xf32>
    %cst_156 = arith.constant 1.12535176E-7 : f32
    %326 = vector.broadcast %cst_156 : f32 to vector<2x16x32xf32>
    %327 = arith.mulf %325, %326 : vector<2x16x32xf32>
    %328 = vector.extract_strided_slice %327 {offsets = [0, 0, 0], sizes = [2, 16, 16], strides = [1, 1, 1]} : vector<2x16x32xf32> to vector<2x16x16xf32>
    %cst_157 = arith.constant dense<0.000000e+00> : vector<2x16xf32>
    %329 = vector.multi_reduction <add>, %328, %cst_157 [2] : vector<2x16x16xf32> to vector<2x16xf32>
    %330 = vector.shape_cast %329 : vector<2x16xf32> to vector<2x16x1xf32>
    %cst_158 = arith.constant 9.99999997E-7 : f32
    %331 = vector.broadcast %cst_158 : f32 to vector<2x16x1xf32>
    %332 = arith.addf %330, %331 : vector<2x16x1xf32>
    %333 = math.log %332 : vector<2x16x1xf32>
    %cst_159 = arith.constant 0.000000e+00 : f32
    %334 = vector.broadcast %cst_159 : f32 to vector<2x16x1xf32>
    %335 = arith.select %156, %333, %334 : vector<2x16x1xi1>, vector<2x16x1xf32>
    %c9 = arith.constant 9 : index
    %c0_160 = arith.constant 0 : index
    %c0_161 = arith.constant 0 : index
    %c0_162 = arith.constant 0 : index
    %336 = vector.load %arg7[%c9, %c0_160, %c0_161, %c0_162] : memref<11x2x16x1xf32, #tpu.memory_space<vmem>>, vector<1x1x16x1xf32>
    %337 = vector.shape_cast %336 : vector<1x1x16x1xf32> to vector<16x1xf32>
    %338 = vector.shape_cast %337 : vector<16x1xf32> to vector<1x16x1xf32>
    %339 = vector.broadcast %338 : vector<1x16x1xf32> to vector<2x16x1xf32>
    %340 = arith.mulf %339, %335 : vector<2x16x1xf32>
    %341 = arith.addf %324, %340 : vector<2x16x1xf32>
    %342 = vector.extract_strided_slice %327 {offsets = [0, 0, 16], sizes = [2, 16, 16], strides = [1, 1, 1]} : vector<2x16x32xf32> to vector<2x16x16xf32>
    %cst_163 = arith.constant dense<0.000000e+00> : vector<2x16xf32>
    %343 = vector.multi_reduction <add>, %342, %cst_163 [2] : vector<2x16x16xf32> to vector<2x16xf32>
    %344 = vector.shape_cast %343 : vector<2x16xf32> to vector<2x16x1xf32>
    %cst_164 = arith.constant 9.99999997E-7 : f32
    %345 = vector.broadcast %cst_164 : f32 to vector<2x16x1xf32>
    %346 = arith.addf %344, %345 : vector<2x16x1xf32>
    %347 = math.log %346 : vector<2x16x1xf32>
    %cst_165 = arith.constant 0.000000e+00 : f32
    %348 = vector.broadcast %cst_165 : f32 to vector<2x16x1xf32>
    %349 = arith.select %161, %347, %348 : vector<2x16x1xi1>, vector<2x16x1xf32>
    %c9_166 = arith.constant 9 : index
    %c1_167 = arith.constant 1 : index
    %c0_168 = arith.constant 0 : index
    %c0_169 = arith.constant 0 : index
    %350 = vector.load %arg7[%c9_166, %c1_167, %c0_168, %c0_169] : memref<11x2x16x1xf32, #tpu.memory_space<vmem>>, vector<1x1x16x1xf32>
    %351 = vector.shape_cast %350 : vector<1x1x16x1xf32> to vector<16x1xf32>
    %352 = vector.shape_cast %351 : vector<16x1xf32> to vector<1x16x1xf32>
    %353 = vector.broadcast %352 : vector<1x16x1xf32> to vector<2x16x1xf32>
    %354 = arith.mulf %353, %349 : vector<2x16x1xf32>
    %355 = arith.addf %341, %354 : vector<2x16x1xf32>
    %356 = arith.mulf %173, %167 : vector<2x16x32xf32>
    %cst_170 = arith.constant 0.0183156393 : f32
    %357 = vector.broadcast %cst_170 : f32 to vector<2x16x32xf32>
    %358 = arith.mulf %356, %357 : vector<2x16x32xf32>
    %359 = vector.extract_strided_slice %358 {offsets = [0, 0, 0], sizes = [2, 16, 16], strides = [1, 1, 1]} : vector<2x16x32xf32> to vector<2x16x16xf32>
    %cst_171 = arith.constant dense<0.000000e+00> : vector<2x16xf32>
    %360 = vector.multi_reduction <add>, %359, %cst_171 [2] : vector<2x16x16xf32> to vector<2x16xf32>
    %361 = vector.shape_cast %360 : vector<2x16xf32> to vector<2x16x1xf32>
    %cst_172 = arith.constant 9.99999997E-7 : f32
    %362 = vector.broadcast %cst_172 : f32 to vector<2x16x1xf32>
    %363 = arith.addf %361, %362 : vector<2x16x1xf32>
    %364 = math.log %363 : vector<2x16x1xf32>
    %cst_173 = arith.constant 0.000000e+00 : f32
    %365 = vector.broadcast %cst_173 : f32 to vector<2x16x1xf32>
    %366 = arith.select %156, %364, %365 : vector<2x16x1xi1>, vector<2x16x1xf32>
    %c3 = arith.constant 3 : index
    %c0_174 = arith.constant 0 : index
    %c0_175 = arith.constant 0 : index
    %c0_176 = arith.constant 0 : index
    %367 = vector.load %arg7[%c3, %c0_174, %c0_175, %c0_176] : memref<11x2x16x1xf32, #tpu.memory_space<vmem>>, vector<1x1x16x1xf32>
    %368 = vector.shape_cast %367 : vector<1x1x16x1xf32> to vector<16x1xf32>
    %369 = vector.shape_cast %368 : vector<16x1xf32> to vector<1x16x1xf32>
    %370 = vector.broadcast %369 : vector<1x16x1xf32> to vector<2x16x1xf32>
    %371 = arith.mulf %370, %366 : vector<2x16x1xf32>
    %372 = arith.addf %355, %371 : vector<2x16x1xf32>
    %373 = vector.extract_strided_slice %358 {offsets = [0, 0, 16], sizes = [2, 16, 16], strides = [1, 1, 1]} : vector<2x16x32xf32> to vector<2x16x16xf32>
    %cst_177 = arith.constant dense<0.000000e+00> : vector<2x16xf32>
    %374 = vector.multi_reduction <add>, %373, %cst_177 [2] : vector<2x16x16xf32> to vector<2x16xf32>
    %375 = vector.shape_cast %374 : vector<2x16xf32> to vector<2x16x1xf32>
    %cst_178 = arith.constant 9.99999997E-7 : f32
    %376 = vector.broadcast %cst_178 : f32 to vector<2x16x1xf32>
    %377 = arith.addf %375, %376 : vector<2x16x1xf32>
    %378 = math.log %377 : vector<2x16x1xf32>
    %cst_179 = arith.constant 0.000000e+00 : f32
    %379 = vector.broadcast %cst_179 : f32 to vector<2x16x1xf32>
    %380 = arith.select %161, %378, %379 : vector<2x16x1xi1>, vector<2x16x1xf32>
    %c3_180 = arith.constant 3 : index
    %c1_181 = arith.constant 1 : index
    %c0_182 = arith.constant 0 : index
    %c0_183 = arith.constant 0 : index
    %381 = vector.load %arg7[%c3_180, %c1_181, %c0_182, %c0_183] : memref<11x2x16x1xf32, #tpu.memory_space<vmem>>, vector<1x1x16x1xf32>
    %382 = vector.shape_cast %381 : vector<1x1x16x1xf32> to vector<16x1xf32>
    %383 = vector.shape_cast %382 : vector<16x1xf32> to vector<1x16x1xf32>
    %384 = vector.broadcast %383 : vector<1x16x1xf32> to vector<2x16x1xf32>
    %385 = arith.mulf %384, %380 : vector<2x16x1xf32>
    %386 = arith.addf %372, %385 : vector<2x16x1xf32>
    %387 = arith.mulf %358, %167 : vector<2x16x32xf32>
    %cst_184 = arith.constant 3.35462624E-4 : f32
    %388 = vector.broadcast %cst_184 : f32 to vector<2x16x32xf32>
    %389 = arith.mulf %387, %388 : vector<2x16x32xf32>
    %390 = vector.extract_strided_slice %389 {offsets = [0, 0, 0], sizes = [2, 16, 16], strides = [1, 1, 1]} : vector<2x16x32xf32> to vector<2x16x16xf32>
    %cst_185 = arith.constant dense<0.000000e+00> : vector<2x16xf32>
    %391 = vector.multi_reduction <add>, %390, %cst_185 [2] : vector<2x16x16xf32> to vector<2x16xf32>
    %392 = vector.shape_cast %391 : vector<2x16xf32> to vector<2x16x1xf32>
    %cst_186 = arith.constant 9.99999997E-7 : f32
    %393 = vector.broadcast %cst_186 : f32 to vector<2x16x1xf32>
    %394 = arith.addf %392, %393 : vector<2x16x1xf32>
    %395 = math.log %394 : vector<2x16x1xf32>
    %cst_187 = arith.constant 0.000000e+00 : f32
    %396 = vector.broadcast %cst_187 : f32 to vector<2x16x1xf32>
    %397 = arith.select %156, %395, %396 : vector<2x16x1xi1>, vector<2x16x1xf32>
    %c2 = arith.constant 2 : index
    %c0_188 = arith.constant 0 : index
    %c0_189 = arith.constant 0 : index
    %c0_190 = arith.constant 0 : index
    %398 = vector.load %arg7[%c2, %c0_188, %c0_189, %c0_190] : memref<11x2x16x1xf32, #tpu.memory_space<vmem>>, vector<1x1x16x1xf32>
    %399 = vector.shape_cast %398 : vector<1x1x16x1xf32> to vector<16x1xf32>
    %400 = vector.shape_cast %399 : vector<16x1xf32> to vector<1x16x1xf32>
    %401 = vector.broadcast %400 : vector<1x16x1xf32> to vector<2x16x1xf32>
    %402 = arith.mulf %401, %397 : vector<2x16x1xf32>
    %403 = arith.addf %386, %402 : vector<2x16x1xf32>
    %404 = vector.extract_strided_slice %389 {offsets = [0, 0, 16], sizes = [2, 16, 16], strides = [1, 1, 1]} : vector<2x16x32xf32> to vector<2x16x16xf32>
    %cst_191 = arith.constant dense<0.000000e+00> : vector<2x16xf32>
    %405 = vector.multi_reduction <add>, %404, %cst_191 [2] : vector<2x16x16xf32> to vector<2x16xf32>
    %406 = vector.shape_cast %405 : vector<2x16xf32> to vector<2x16x1xf32>
    %cst_192 = arith.constant 9.99999997E-7 : f32
    %407 = vector.broadcast %cst_192 : f32 to vector<2x16x1xf32>
    %408 = arith.addf %406, %407 : vector<2x16x1xf32>
    %409 = math.log %408 : vector<2x16x1xf32>
    %cst_193 = arith.constant 0.000000e+00 : f32
    %410 = vector.broadcast %cst_193 : f32 to vector<2x16x1xf32>
    %411 = arith.select %161, %409, %410 : vector<2x16x1xi1>, vector<2x16x1xf32>
    %c2_194 = arith.constant 2 : index
    %c1_195 = arith.constant 1 : index
    %c0_196 = arith.constant 0 : index
    %c0_197 = arith.constant 0 : index
    %412 = vector.load %arg7[%c2_194, %c1_195, %c0_196, %c0_197] : memref<11x2x16x1xf32, #tpu.memory_space<vmem>>, vector<1x1x16x1xf32>
    %413 = vector.shape_cast %412 : vector<1x1x16x1xf32> to vector<16x1xf32>
    %414 = vector.shape_cast %413 : vector<16x1xf32> to vector<1x16x1xf32>
    %415 = vector.broadcast %414 : vector<1x16x1xf32> to vector<2x16x1xf32>
    %416 = arith.mulf %415, %411 : vector<2x16x1xf32>
    %417 = arith.addf %403, %416 : vector<2x16x1xf32>
    %418 = arith.mulf %389, %167 : vector<2x16x32xf32>
    %cst_198 = arith.constant 6.14421242E-6 : f32
    %419 = vector.broadcast %cst_198 : f32 to vector<2x16x32xf32>
    %420 = arith.mulf %418, %419 : vector<2x16x32xf32>
    %421 = vector.extract_strided_slice %420 {offsets = [0, 0, 0], sizes = [2, 16, 16], strides = [1, 1, 1]} : vector<2x16x32xf32> to vector<2x16x16xf32>
    %cst_199 = arith.constant dense<0.000000e+00> : vector<2x16xf32>
    %422 = vector.multi_reduction <add>, %421, %cst_199 [2] : vector<2x16x16xf32> to vector<2x16xf32>
    %423 = vector.shape_cast %422 : vector<2x16xf32> to vector<2x16x1xf32>
    %cst_200 = arith.constant 9.99999997E-7 : f32
    %424 = vector.broadcast %cst_200 : f32 to vector<2x16x1xf32>
    %425 = arith.addf %423, %424 : vector<2x16x1xf32>
    %426 = math.log %425 : vector<2x16x1xf32>
    %cst_201 = arith.constant 0.000000e+00 : f32
    %427 = vector.broadcast %cst_201 : f32 to vector<2x16x1xf32>
    %428 = arith.select %156, %426, %427 : vector<2x16x1xi1>, vector<2x16x1xf32>
    %c1_202 = arith.constant 1 : index
    %c0_203 = arith.constant 0 : index
    %c0_204 = arith.constant 0 : index
    %c0_205 = arith.constant 0 : index
    %429 = vector.load %arg7[%c1_202, %c0_203, %c0_204, %c0_205] : memref<11x2x16x1xf32, #tpu.memory_space<vmem>>, vector<1x1x16x1xf32>
    %430 = vector.shape_cast %429 : vector<1x1x16x1xf32> to vector<16x1xf32>
    %431 = vector.shape_cast %430 : vector<16x1xf32> to vector<1x16x1xf32>
    %432 = vector.broadcast %431 : vector<1x16x1xf32> to vector<2x16x1xf32>
    %433 = arith.mulf %432, %428 : vector<2x16x1xf32>
    %434 = arith.addf %417, %433 : vector<2x16x1xf32>
    %435 = vector.extract_strided_slice %420 {offsets = [0, 0, 16], sizes = [2, 16, 16], strides = [1, 1, 1]} : vector<2x16x32xf32> to vector<2x16x16xf32>
    %cst_206 = arith.constant dense<0.000000e+00> : vector<2x16xf32>
    %436 = vector.multi_reduction <add>, %435, %cst_206 [2] : vector<2x16x16xf32> to vector<2x16xf32>
    %437 = vector.shape_cast %436 : vector<2x16xf32> to vector<2x16x1xf32>
    %cst_207 = arith.constant 9.99999997E-7 : f32
    %438 = vector.broadcast %cst_207 : f32 to vector<2x16x1xf32>
    %439 = arith.addf %437, %438 : vector<2x16x1xf32>
    %440 = math.log %439 : vector<2x16x1xf32>
    %cst_208 = arith.constant 0.000000e+00 : f32
    %441 = vector.broadcast %cst_208 : f32 to vector<2x16x1xf32>
    %442 = arith.select %161, %440, %441 : vector<2x16x1xi1>, vector<2x16x1xf32>
    %c1_209 = arith.constant 1 : index
    %c1_210 = arith.constant 1 : index
    %c0_211 = arith.constant 0 : index
    %c0_212 = arith.constant 0 : index
    %443 = vector.load %arg7[%c1_209, %c1_210, %c0_211, %c0_212] : memref<11x2x16x1xf32, #tpu.memory_space<vmem>>, vector<1x1x16x1xf32>
    %444 = vector.shape_cast %443 : vector<1x1x16x1xf32> to vector<16x1xf32>
    %445 = vector.shape_cast %444 : vector<16x1xf32> to vector<1x16x1xf32>
    %446 = vector.broadcast %445 : vector<1x16x1xf32> to vector<2x16x1xf32>
    %447 = arith.mulf %446, %442 : vector<2x16x1xf32>
    %448 = arith.addf %434, %447 : vector<2x16x1xf32>
    %449 = arith.mulf %420, %167 : vector<2x16x32xf32>
    %cst_213 = arith.constant 1.12535176E-7 : f32
    %450 = vector.broadcast %cst_213 : f32 to vector<2x16x32xf32>
    %451 = arith.mulf %449, %450 : vector<2x16x32xf32>
    %452 = vector.extract_strided_slice %451 {offsets = [0, 0, 0], sizes = [2, 16, 16], strides = [1, 1, 1]} : vector<2x16x32xf32> to vector<2x16x16xf32>
    %cst_214 = arith.constant dense<0.000000e+00> : vector<2x16xf32>
    %453 = vector.multi_reduction <add>, %452, %cst_214 [2] : vector<2x16x16xf32> to vector<2x16xf32>
    %454 = vector.shape_cast %453 : vector<2x16xf32> to vector<2x16x1xf32>
    %cst_215 = arith.constant 9.99999997E-7 : f32
    %455 = vector.broadcast %cst_215 : f32 to vector<2x16x1xf32>
    %456 = arith.addf %454, %455 : vector<2x16x1xf32>
    %457 = math.log %456 : vector<2x16x1xf32>
    %cst_216 = arith.constant 0.000000e+00 : f32
    %458 = vector.broadcast %cst_216 : f32 to vector<2x16x1xf32>
    %459 = arith.select %156, %457, %458 : vector<2x16x1xi1>, vector<2x16x1xf32>
    %c0_217 = arith.constant 0 : index
    %c0_218 = arith.constant 0 : index
    %c0_219 = arith.constant 0 : index
    %c0_220 = arith.constant 0 : index
    %460 = vector.load %arg7[%c0_217, %c0_218, %c0_219, %c0_220] : memref<11x2x16x1xf32, #tpu.memory_space<vmem>>, vector<1x1x16x1xf32>
    %461 = vector.shape_cast %460 : vector<1x1x16x1xf32> to vector<16x1xf32>
    %462 = vector.shape_cast %461 : vector<16x1xf32> to vector<1x16x1xf32>
    %463 = vector.broadcast %462 : vector<1x16x1xf32> to vector<2x16x1xf32>
    %464 = arith.mulf %463, %459 : vector<2x16x1xf32>
    %465 = arith.addf %448, %464 : vector<2x16x1xf32>
    %466 = vector.extract_strided_slice %451 {offsets = [0, 0, 16], sizes = [2, 16, 16], strides = [1, 1, 1]} : vector<2x16x32xf32> to vector<2x16x16xf32>
    %cst_221 = arith.constant dense<0.000000e+00> : vector<2x16xf32>
    %467 = vector.multi_reduction <add>, %466, %cst_221 [2] : vector<2x16x16xf32> to vector<2x16xf32>
    %468 = vector.shape_cast %467 : vector<2x16xf32> to vector<2x16x1xf32>
    %cst_222 = arith.constant 9.99999997E-7 : f32
    %469 = vector.broadcast %cst_222 : f32 to vector<2x16x1xf32>
    %470 = arith.addf %468, %469 : vector<2x16x1xf32>
    %471 = math.log %470 : vector<2x16x1xf32>
    %cst_223 = arith.constant 0.000000e+00 : f32
    %472 = vector.broadcast %cst_223 : f32 to vector<2x16x1xf32>
    %473 = arith.select %161, %471, %472 : vector<2x16x1xi1>, vector<2x16x1xf32>
    %c0_224 = arith.constant 0 : index
    %c1_225 = arith.constant 1 : index
    %c0_226 = arith.constant 0 : index
    %c0_227 = arith.constant 0 : index
    %474 = vector.load %arg7[%c0_224, %c1_225, %c0_226, %c0_227] : memref<11x2x16x1xf32, #tpu.memory_space<vmem>>, vector<1x1x16x1xf32>
    %475 = vector.shape_cast %474 : vector<1x1x16x1xf32> to vector<16x1xf32>
    %476 = vector.shape_cast %475 : vector<16x1xf32> to vector<1x16x1xf32>
    %477 = vector.broadcast %476 : vector<1x16x1xf32> to vector<2x16x1xf32>
    %478 = arith.mulf %477, %473 : vector<2x16x1xf32>
    %479 = arith.addf %465, %478 : vector<2x16x1xf32>
    %cst_228 = arith.constant 1.000000e+00 : f32
    %480 = vector.broadcast %cst_228 : f32 to vector<2x16x32xf32>
    %481 = arith.subf %151, %480 : vector<2x16x32xf32>
    %cst_229 = arith.constant -5.000000e+05 : f32
    %482 = vector.broadcast %cst_229 : f32 to vector<2x16x32xf32>
    %483 = arith.mulf %482, %481 : vector<2x16x32xf32>
    %484 = arith.mulf %483, %481 : vector<2x16x32xf32>
    %485 = math.exp %484 : vector<2x16x32xf32>
    %486 = vector.extract_strided_slice %485 {offsets = [0, 0, 0], sizes = [2, 16, 16], strides = [1, 1, 1]} : vector<2x16x32xf32> to vector<2x16x16xf32>
    %cst_230 = arith.constant dense<0.000000e+00> : vector<2x16xf32>
    %487 = vector.multi_reduction <add>, %486, %cst_230 [2] : vector<2x16x16xf32> to vector<2x16xf32>
    %488 = vector.shape_cast %487 : vector<2x16xf32> to vector<2x16x1xf32>
    %cst_231 = arith.constant 9.99999997E-7 : f32
    %489 = vector.broadcast %cst_231 : f32 to vector<2x16x1xf32>
    %490 = arith.addf %488, %489 : vector<2x16x1xf32>
    %491 = math.log %490 : vector<2x16x1xf32>
    %cst_232 = arith.constant 0.000000e+00 : f32
    %492 = vector.broadcast %cst_232 : f32 to vector<2x16x1xf32>
    %493 = arith.select %156, %491, %492 : vector<2x16x1xi1>, vector<2x16x1xf32>
    %c10 = arith.constant 10 : index
    %c0_233 = arith.constant 0 : index
    %c0_234 = arith.constant 0 : index
    %c0_235 = arith.constant 0 : index
    %494 = vector.load %arg7[%c10, %c0_233, %c0_234, %c0_235] : memref<11x2x16x1xf32, #tpu.memory_space<vmem>>, vector<1x1x16x1xf32>
    %495 = vector.shape_cast %494 : vector<1x1x16x1xf32> to vector<16x1xf32>
    %496 = vector.shape_cast %495 : vector<16x1xf32> to vector<1x16x1xf32>
    %497 = vector.broadcast %496 : vector<1x16x1xf32> to vector<2x16x1xf32>
    %498 = arith.mulf %497, %493 : vector<2x16x1xf32>
    %499 = arith.addf %479, %498 : vector<2x16x1xf32>
    %500 = vector.extract_strided_slice %485 {offsets = [0, 0, 16], sizes = [2, 16, 16], strides = [1, 1, 1]} : vector<2x16x32xf32> to vector<2x16x16xf32>
    %cst_236 = arith.constant dense<0.000000e+00> : vector<2x16xf32>
    %501 = vector.multi_reduction <add>, %500, %cst_236 [2] : vector<2x16x16xf32> to vector<2x16xf32>
    %502 = vector.shape_cast %501 : vector<2x16xf32> to vector<2x16x1xf32>
    %cst_237 = arith.constant 9.99999997E-7 : f32
    %503 = vector.broadcast %cst_237 : f32 to vector<2x16x1xf32>
    %504 = arith.addf %502, %503 : vector<2x16x1xf32>
    %505 = math.log %504 : vector<2x16x1xf32>
    %cst_238 = arith.constant 0.000000e+00 : f32
    %506 = vector.broadcast %cst_238 : f32 to vector<2x16x1xf32>
    %507 = arith.select %161, %505, %506 : vector<2x16x1xi1>, vector<2x16x1xf32>
    %c10_239 = arith.constant 10 : index
    %c1_240 = arith.constant 1 : index
    %c0_241 = arith.constant 0 : index
    %c0_242 = arith.constant 0 : index
    %508 = vector.load %arg7[%c10_239, %c1_240, %c0_241, %c0_242] : memref<11x2x16x1xf32, #tpu.memory_space<vmem>>, vector<1x1x16x1xf32>
    %509 = vector.shape_cast %508 : vector<1x1x16x1xf32> to vector<16x1xf32>
    %510 = vector.shape_cast %509 : vector<16x1xf32> to vector<1x16x1xf32>
    %511 = vector.broadcast %510 : vector<1x16x1xf32> to vector<2x16x1xf32>
    %512 = arith.mulf %511, %507 : vector<2x16x1xf32>
    %513 = arith.addf %499, %512 : vector<2x16x1xf32>
    %cst_243 = arith.constant dense<0.000000e+00> : vector<2x1xf32>
    %514 = vector.multi_reduction <add>, %513, %cst_243 [1] : vector<2x16x1xf32> to vector<2x1xf32>
    %c0_244 = arith.constant 0 : index
    %c0_245 = arith.constant 0 : index
    %515 = memref.load %arg8[%c0_244, %c0_245] : memref<1x1xf32, #tpu.memory_space<smem>>
    %516 = vector.broadcast %515 : f32 to vector<2x1xf32>
    %517 = arith.addf %514, %516 : vector<2x1xf32>
    %c0_246 = arith.constant 0 : index
    %c0_247 = arith.constant 0 : index
    %c0_248 = arith.constant 0 : index
    %518 = vector.load %arg9[%c0_246, %c0_247, %c0_248] : memref<1x2x1xf32, #tpu.memory_space<vmem>>, vector<1x2x1xf32>
    %519 = vector.shape_cast %518 : vector<1x2x1xf32> to vector<2x1xf32>
    %520 = vector.shape_cast %517 : vector<2x1xf32> to vector<1x2x1xf32>
    tpu.vector_store %arg9[%c0_246, %c0_247, %c0_248], %520 {strides = array<i32>} : memref<1x2x1xf32, #tpu.memory_space<vmem>>, vector<1x2x1xf32>,
    return
  }
  func.func @transform_0(%arg0: i32) -> (i32, i32, i32) {
    %c0_i32 = arith.constant 0 : i32
    %c0_i32_0 = arith.constant 0 : i32
    %c0_i32_1 = arith.constant 0 : i32
    return %arg0, %c0_i32, %c0_i32_0 : i32, i32, i32
  }
  func.func @transform_1(%arg0: i32) -> (i32, i32, i32) {
    %c0_i32 = arith.constant 0 : i32
    %c0_i32_0 = arith.constant 0 : i32
    %c0_i32_1 = arith.constant 0 : i32
    return %arg0, %c0_i32, %c0_i32_0 : i32, i32, i32
  }
  func.func @transform_2(%arg0: i32) -> (i32, i32, i32) {
    %c0_i32 = arith.constant 0 : i32
    %c0_i32_0 = arith.constant 0 : i32
    %c0_i32_1 = arith.constant 0 : i32
    return %arg0, %c0_i32, %c0_i32_0 : i32, i32, i32
  }
  func.func @transform_3(%arg0: i32) -> (i32, i32, i32) {
    %c0_i32 = arith.constant 0 : i32
    %c0_i32_0 = arith.constant 0 : i32
    %c0_i32_1 = arith.constant 0 : i32
    return %arg0, %c0_i32, %c0_i32_0 : i32, i32, i32
  }
  func.func @transform_4(%arg0: i32) -> (i32, i32, i32) {
    %c0_i32 = arith.constant 0 : i32
    %c0_i32_0 = arith.constant 0 : i32
    %c0_i32_1 = arith.constant 0 : i32
    %c0_i32_2 = arith.constant 0 : i32
    return %c0_i32, %c0_i32_0, %c0_i32_1 : i32, i32, i32
  }
  func.func @transform_5(%arg0: i32) -> (i32, i32) {
    %c0_i32 = arith.constant 0 : i32
    %c0_i32_0 = arith.constant 0 : i32
    %c0_i32_1 = arith.constant 0 : i32
    return %c0_i32, %c0_i32_0 : i32, i32
  }
  func.func @transform_6(%arg0: i32) -> (i32, i32, i32, i32) {
    %c0_i32 = arith.constant 0 : i32
    %c0_i32_0 = arith.constant 0 : i32
    %c0_i32_1 = arith.constant 0 : i32
    %c0_i32_2 = arith.constant 0 : i32
    %c0_i32_3 = arith.constant 0 : i32
    return %c0_i32, %c0_i32_0, %c0_i32_1, %c0_i32_2 : i32, i32, i32, i32
  }
  func.func @transform_7(%arg0: i32) -> (i32, i32) {
    %c0_i32 = arith.constant 0 : i32
    %c0_i32_0 = arith.constant 0 : i32
    %c0_i32_1 = arith.constant 0 : i32
    return %c0_i32, %c0_i32_0 : i32, i32
  }
  func.func @transform_8(%arg0: i32) -> (i32, i32, i32) {
    %c0_i32 = arith.constant 0 : i32
    %c0_i32_0 = arith.constant 0 : i32
    %c0_i32_1 = arith.constant 0 : i32
    return %arg0, %c0_i32, %c0_i32_0 : i32, i32, i32
  }
}

</mosaic_0001>

<bundles_post_ra>
// kernel: tpu_custom_call.1
= control target key start
LH: loop header
LB: loop body
LE: loop exit
PB: predicated region body
PF: predicated region fallthrough
CT: control target
= control target key end

     0   :  { %s2736_s29 = smov 0   ;;  %s3991_s0 = inlined_call_operand.vmem [shape: f32[4,16,32], index: 0, kind: input, shape index: {}]   ;;  %s3992_s1 = inlined_call_operand.vmem [shape: f32[4,24,32], index: 1, kind: input, shape index: {}]   ;;  %s3993_s2 = inlined_call_operand.vmem [shape: f32[4,16,1], index: 2, kind: input, shape index: {}]   ;;  %s3994_s3 = inlined_call_operand.vmem [shape: f32[4,24,1], index: 3, kind: input, shape index: {}]   ;;  %s3995_s4 = inlined_call_operand.vmem [shape: f32[2,32,32], index: 4, kind: input, shape index: {}]   ;;  %s3996_s5 = inlined_call_operand.vmem [shape: f32[1,32], index: 5, kind: input, shape index: {}]   ;;  %s3997_s6 = inlined_call_operand.vmem [shape: f32[11,2,16,1], index: 6, kind: input, shape index: {}]   ;;  %s3998_s7 = inlined_call_operand.<no memory space> [shape: f32[1,1], index: 7, kind: input, shape index: {}]   ;;  %s3999_s8 = inlined_call_operand.vmem [shape: f32[2,2,1], index: 8, kind: output, shape index: {}]  }
   0x1   :  { %13 = sst [smem:[#allocation4]] %s3998_s7 }
   0x2 LB: > { %s2742_s30 = sadd.s32 4294967295, %s2684_s29   ;;  %p2327_p0 = scmp.ge.s32.totalorder %s2684_s29, 1  ;;  %s2684_s29 = sphi %s2736_s29, %s19_s29  }
   0x3   : > { %p301_p1 = scmp.lt.s32.totalorder %s2684_s29, 3 }
   0x5   : > { %p302_p2 = pnand %p2327_p0, %p301_p1 }
   0x7   : > { %305 = sbr.rel (%p302_p2) target bundleno = 1953 (0x7a1), region = 52 }
   0xc   : > { %v2346_v0 = vld [vmem:[%s3995_s4 + $0x38] sm:$0xff]  ;;  %v2345_v1 = vld [vmem:[%s3995_s4 + $0x30] sm:$0xff]  ;;  %s2328_s12 = sshll.u32 %s2742_s30, 1  ;;  %v2344_v4 = vld [vmem:[%s3995_s4 + $0x28] sm:$0xff]  ;;  %vm399_vm0 = vcmask 261120   ;;  %v2686_v11 = vmov 0  }
   0xd   : > { %456 = vmatpush.msra.mxu1 %v2346_v0  ;;  %536 = vmatpush.msra.mxu3 %v2346_v0  ;;  %p354_p3 = scmp.lt.s32.totalorder %s2328_s12, 3  ;;  %v398_v2 = vld [vmem:[%s3995_s4 + $0x18] sm:$0xff]  ;;  %v397_v3 = vld [vmem:[%s3995_s4 + $0x10] sm:$0xff]  ;;  %v396_v5 = vld [vmem:[%s3995_s4 + $0x8] sm:$0xff]  ;;  %vm562_vm1 = vcmask 1046528   ;;  %vm580_vm2 = vcmask 130048  }
   0xe   : > { %424 = vmatpush.msra.mxu0 %v398_v2  ;;  %503 = vmatpush.msra.mxu2 %v398_v2  ;;  %v2343_v6 = vld [vmem:[%s3995_s4 + $0x20] sm:$0xff]  ;;  %s2687_s20 = smov 112   ;;  %s2223_s28 = sld [smem:[#allocation4]] }
   0xf   : > { %457 = vmatpush.msra.mxu1 %v2345_v1  ;;  %537 = vmatpush.msra.mxu3 %v2345_v1  ;;  %s4057_s12 = smov (!%p354_p3, %s2328_s12), 3  ;;  %v395_v7 = vld [vmem:[%s3995_s4] sm:$0xff]  ;;  %p381_p4 = scmp.lt.s32.totalorder %s2742_s30, 1 }
  0x10   : > { %425 = vmatpush.msra.mxu0 %v397_v3  ;;  %504 = vmatpush.msra.mxu2 %v397_v3  ;;  %s2430_s23 = sshll.u32 %s4057_s12, 4  ;;  %s2432_s24 = smul.u32 24, %s4057_s12  ;;  %v2445_v33 = vld [vmem:[%s3996_s5] ss:$0 sm:$0xff] }
  0x11   : > { %458 = vmatpush.msra.mxu1 %v2344_v4  ;;  %538 = vmatpush.msra.mxu3 %v2344_v4  ;;  %s2774_s9 = scalar_lea.vmem %s3991_s0, %s2430_s23  ;;  %s2779_s11 = scalar_lea.vmem %s3993_s2, %s2430_s23 }
  0x12   : > { %426 = vmatpush.msra.mxu0 %v396_v5  ;;  %505 = vmatpush.msra.mxu2 %v396_v5  ;;  %v385_v8 = vld [vmem:[%s2774_s9] sm:$0xff]  ;;  %s2785_s14 = scalar_lea.vmem %s3992_s1, %s2432_s24  ;;  %s2790_s17 = scalar_lea.vmem %s3994_s3, %s2432_s24  ;;  %v386_v13 = vld [vmem:[%s2774_s9 + $0x8] sm:$0xff]  ;;  %v387_v16 = vld [vmem:[%s2774_s9 + $0x10] sm:$0xff] }
  0x13   : > { %459 = vmatpush.msra.mxu1 %v2343_v6  ;;  %539 = vmatpush.msra.mxu3 %v2343_v6  ;;  %v389_v9 = vld [vmem:[%s2785_s14] sm:$0xff]  ;;  %v390_v14 = vld [vmem:[%s2785_s14 + $0x8] sm:$0xff]  ;;  %v391_v17 = vld [vmem:[%s2785_s14 + $0x10] sm:$0xff]  ;;  %s4059_s30 = smov (!%p381_p4, %s2742_s30), 1 }
  0x14   : > { %2347 = vmatmul.msk.f32.vlgmr.msra.gmra.mxu1 %vm399_vm0, %v385_v8  ;;  %427 = vmatpush.msra.mxu0 %v395_v7  ;;  %v572_v10 = vld [vmem:[%s2779_s11] sm:$0xff]  ;;  %v636_v15 = vld [vmem:[%s2790_s17 + $0x8] sm:$0xff]  ;;  %v2363_v18 = vld [vmem:[%s2779_s11 + $0x10] sm:$0xff] }
  0x15   : > { %2357 = vmatmul.msk.f32.vlgmr.msra.gmra.mxu3 %vm399_vm0, %v389_v9  ;;  %2339 = vmatmul.msk.f32.vlgmr.msra.gmra.mxu0 %vm399_vm0, %v385_v8  ;;  %v635_v12 = vld [vmem:[%s2790_s17] sm:$0xff]  ;;  %v388_v19 = vld [vmem:[%s2774_s9 + $0x18] sm:$0xff]  ;;  %v394_v24 = vld [vmem:[%s2785_s14 + $0x28] sm:$0xff] }
  0x16   : > { %506 = vmatpush.msra.mxu2 %v395_v7  ;;  %2443 = vset.pattern.permute.xlu0 %v2686_v11  ;;  %v392_v20 = vld [vmem:[%s2785_s14 + $0x18] sm:$0xff]  ;;  %v393_v22 = vld [vmem:[%s2785_s14 + $0x20] sm:$0xff] }
  0x17   : > { %2351 = vmatmul.msk.f32.vlgmr.msra.gmra.mxu2 %vm399_vm0, %v389_v9  ;;  %575 = vperm.xlu0 %2443, %v572_v10   ;;  %v2364_v21 = vld [vmem:[%s2790_s17 + $0x18] sm:$0xff]  ;;  %v2365_v23 = vld [vmem:[%s2790_s17 + $0x20] sm:$0xff] }
  0x18   : > { %2444 = vset.pattern.permute.xlu2 %v2686_v11 }
  0x19   : > { %639 = vperm.xlu2 %2444, %v635_v12  }
  0x1c   : > { %2348 = vmatmul.msk.f32.gmra.mxu1 %vm399_vm0, %v386_v13 }
  0x1d   : > { %2358 = vmatmul.msk.f32.gmra.mxu3 %vm399_vm0, %v390_v14  ;;  %2340 = vmatmul.msk.f32.gmra.mxu0 %vm399_vm0, %v386_v13 }
  0x1f   : > { %2352 = vmatmul.msk.f32.gmra.mxu2 %vm399_vm0, %v390_v14 }
  0x21   : > { %644 = vperm.xlu2 %2444, %v636_v15  }
  0x24   : > { %2349 = vmatmul.msk.f32.gmra.mxu1 %vm399_vm0, %v387_v16 }
  0x25   : > { %2359 = vmatmul.msk.f32.gmra.mxu3 %vm399_vm0, %v391_v17  ;;  %2341 = vmatmul.msk.f32.gmra.mxu0 %vm399_vm0, %v387_v16 }
  0x27   : > { %2353 = vmatmul.msk.f32.gmra.mxu2 %vm399_vm0, %v391_v17 }
  0x29   : > { %743 = vperm.xlu2 %2444, %v2363_v18  }
  0x2c   : > { %2350 = vmatmul.msk.f32.gmra.mxu1 %vm399_vm0, %v388_v19 }
  0x2d   : > { %2360 = vmatmul.msk.f32.gmra.mxu3 %vm399_vm0, %v392_v20  ;;  %2342 = vmatmul.msk.f32.gmra.mxu0 %vm399_vm0, %v388_v19 }
  0x2f   : > { %2354 = vmatmul.msk.f32.gmra.mxu2 %vm399_vm0, %v392_v20 }
  0x31   : > { %808 = vperm.xlu2 %2444, %v2364_v21  }
  0x35   : > { %2361 = vmatmul.msk.f32.gmra.mxu3 %vm399_vm0, %v393_v22 }
  0x37   : > { %2355 = vmatmul.msk.f32.gmra.mxu2 %vm399_vm0, %v393_v22 }
  0x39   : > { %813 = vperm.xlu2 %2444, %v2365_v23  }
  0x3d   : > { %2362 = vmatmul.msk.f32.gmra.mxu3 %vm399_vm0, %v394_v24 }
  0x3f   : > { %2356 = vmatmul.msk.f32.gmra.mxu2 %vm399_vm0, %v394_v24 }
  0x73   : > { %v640_v37 = vpop.permute.xlu2 %639 }
  0x7b   : > { %v645_v52 = vpop.permute.xlu2 %644 }
  0x83   : > { %v744_v0 = vpop.permute.xlu2 %743 }
  0x89   : > { %v576_v36 = vpop.permute.xlu0 %575 }
  0x8b   : > { %v809_v10 = vpop.permute.xlu2 %808 }
  0x91   : > { %v461_v25 = vpop.f32.mrf.mxu1 }
  0x92   : > { %v429_v26 = vpop.f32.mrf.mxu0  ;;  %v563_v29 = vrot.slane %v461_v25, 1 }
  0x93   : > { %v814_v22 = vpop.permute.xlu2 %813 }
  0x98   : > { %v541_v27 = vpop.f32.mrf.mxu3 }
  0x99   : > { %v464_v28 = vpop.f32.mrf.mxu1  ;;  %v624_v40 = vrot.slane %v541_v27, 1 }
  0x9a   : > { %v564_v30 = vrot.slane %v464_v28, 1  ;;  %v508_v31 = vpop.f32.mrf.mxu2  ;;  %v432_v32 = vpop.f32.mrf.mxu0 }
  0x9c   : > { %v565_v34 = vsel %vm562_vm1, %v563_v29, %v564_v30 }
  0x9d   : > { %v567_v35 = vadd.f32 %v565_v34, %v429_v26 }
  0x9f   : > { %v571_v38 = vadd.f32 %v2445_v33, %v567_v35 }
  0xa0   : > { %v544_v39 = vpop.f32.mrf.mxu3 }
  0xa1   : > { %v625_v41 = vrot.slane %v544_v39, 1  ;;  %v2831_v42 = vmul.f32 %v576_v36, %v571_v38  ;;  %v467_v62 = vpop.f32.mrf.mxu1 }
  0xa2   : > { %v511_v43 = vpop.f32.mrf.mxu2  ;;  %v434_v44 = vpop.f32.mrf.mxu0  ;;  %v733_v12 = vrot.slane %v467_v62, 1 }
  0xa3   : > { %v626_v45 = vsel %vm562_vm1, %v624_v40, %v625_v41  ;;  %v579_v46 = vmul.f32 %v2831_v42, %v2831_v42 }
  0xa4   : > { %v631_v47 = vadd.f32 %v626_v45, %v508_v31 }
  0xa5   : > { %598 = vrot.lane.b32.xlu1 %v579_v46, %s2687_s20  ;;  %v581_v48 = vsel %vm580_vm2, %v579_v46, 0.0 }
  0xa6   : > { %v633_v49 = vadd.f32 %v2445_v33, %v631_v47  ;;  %582 = vadd.xlane.f32.xlu0 %v581_v48 }
  0xa8   : > { %v2838_v50 = vmul.f32 %v640_v37, %v633_v49  ;;  %v547_v51 = vpop.f32.mrf.mxu3 }
  0xa9   : > { %v627_v53 = vrot.slane %v547_v51, 1  ;;  %v470_v8 = vpop.f32.mrf.mxu1 }
  0xaa   : > { %v649_v54 = vmul.f32 %v2838_v50, %v2838_v50  ;;  %v514_v55 = vpop.f32.mrf.mxu2  ;;  %v437_v56 = vpop.f32.mrf.mxu0  ;;  %v734_v13 = vrot.slane %v470_v8, 1 }
  0xab   : > { %v628_v57 = vsel %vm562_vm1, %v625_v41, %v627_v53 }
  0xac   : > { %v632_v58 = vadd.f32 %v628_v57, %v511_v43  ;;  %v651_v59 = vsel %vm580_vm2, %v649_v54, 0.0  ;;  %v735_v17 = vsel %vm562_vm1, %v733_v12, %v734_v13 }
  0xad   : > { %652 = vadd.xlane.f32.xlu2 %v651_v59  ;;  %685 = vrot.lane.b32.xlu1 %v649_v54, %s2687_s20  ;;  %v737_v20 = vadd.f32 %v735_v17, %v434_v44 }
  0xae   : > { %v634_v60 = vadd.f32 %v2445_v33, %v632_v58 }
  0xaf   : > { %v738_v24 = vadd.f32 %v2445_v33, %v737_v20 }
  0xb0   : > { %v550_v61 = vpop.f32.mrf.mxu3  ;;  %v2845_v1 = vmul.f32 %v645_v52, %v634_v60 }
  0xb1   : > { %v792_v2 = vrot.slane %v550_v61, 1  ;;  %v2858_v27 = vmul.f32 %v744_v0, %v738_v24 }
  0xb2   : > { %v516_v63 = vpop.f32.mrf.mxu2  ;;  %v650_v4 = vmul.f32 %v2845_v1, %v2845_v1 }
  0xb3   : > { %v747_v28 = vmul.f32 %v2858_v27, %v2858_v27 }
  0xb4   : > { %v654_v30 = vsel %vm580_vm2, %v650_v4, 0.0 }
  0xb5   : > { %v748_v29 = vsel %vm580_vm2, %v747_v28, 0.0 }
  0xb8   : > { %v553_v3 = vpop.f32.mrf.mxu3 }
  0xb9   : > { %v793_v5 = vrot.slane %v553_v3, 1 }
  0xba   : > { %687 = vrot.lane.b32.xlu0 %v650_v4, %s2687_s20  ;;  %v519_v6 = vpop.f32.mrf.mxu2 }
  0xbb   : > { %v794_v7 = vsel %vm562_vm1, %v792_v2, %v793_v5 }
  0xbc   : > { %v799_v9 = vadd.f32 %v794_v7, %v516_v63 }
  0xbe   : > { %v801_v11 = vadd.f32 %v2445_v33, %v799_v9 }
  0xc0   : > { %v556_v14 = vpop.f32.mrf.mxu3  ;;  %v2864_v31 = vmul.f32 %v809_v10, %v801_v11 }
  0xc1   : > { %v795_v15 = vrot.slane %v556_v14, 1 }
  0xc2   : > { %v522_v16 = vpop.f32.mrf.mxu2  ;;  %v818_v32 = vmul.f32 %v2864_v31, %v2864_v31 }
  0xc3   : > { %v796_v18 = vsel %vm562_vm1, %v793_v5, %v795_v15 }
  0xc4   : > { %v800_v19 = vadd.f32 %v796_v18, %v519_v6  ;;  %v820_v35 = vsel %vm580_vm2, %v818_v32, 0.0 }
  0xc6   : > { %v802_v21 = vadd.f32 %v2445_v33, %v800_v19 }
  0xc8   : > { %v2853_v23 = vmul.f32 %v814_v22, %v802_v21 }
  0xca   : > { %v819_v25 = vmul.f32 %v2853_v23, %v2853_v23 }
  0xcc   : > { %v823_v26 = vsel %vm580_vm2, %v819_v25, 0.0 }
  0xcd   : > { %824 = vadd.xlane.f32.xlu2 %v823_v26 }
  0xd7   : > { %749 = vadd.xlane.f32.xlu1 %v748_v29 }
  0xe4   : > { %655 = vadd.xlane.f32.xlu0 %v654_v30 }
  0xf0   : > { %855 = vrot.lane.b32.xlu1 %v818_v32, %s2687_s20 }
  0xf8   : > { %766 = vrot.lane.b32.xlu0 %v747_v28, %s2687_s20 }
 0x100   : > { %857 = vrot.lane.b32.xlu0 %v819_v25, %s2687_s20 }
 0x117   : > { %v599_v33 = vpop.permute.xlu1 %598 }
 0x118   : > { %v601_v41 = vsel %vm580_vm2, %v599_v33, 0.0 }
 0x119   : > { %v583_v34 = vpop.xlane.xlu0 %582 }
 0x11a   : > { %v584_v36 = vadd.f32 1e-18, %v583_v34  ;;  %821 = vadd.xlane.f32.xlu1 %v820_v35 }
 0x11c   : > { %2446 = vrsqrt.f32 %v584_v36  ;;  %vm591_vm4 = vweird.f32 %v584_v36 }
 0x11f   : > { %v686_v37 = vpop.permute.xlu1 %685 }
 0x120   : > { %v653_v38 = vpop.xlane.xlu2 %652  ;;  %v691_v39 = vsel %vm580_vm2, %v686_v37, 0.0 }
 0x121   : > { %v657_v40 = vadd.f32 1e-18, %v653_v38  ;;  %692 = vadd.xlane.f32.xlu2 %v691_v39 }
 0x122   : > { %v2447_v43 = vpop.eup %2446  ;;  %602 = vadd.xlane.f32.xlu1 %v601_v41 }
 0x123   : > { %v586_v44 = vmul.f32 %v2447_v43, %v584_v36  ;;  %2448 = vrsqrt.f32 %v657_v40  ;;  %vm592_vm3 = vweird.f32 %v2447_v43  ;;  %vm665_vm7 = vweird.f32 %v657_v40 }
 0x124   : > { %vm593_vm5 = vmor %vm591_vm4, %vm592_vm3 }
 0x125   : > { %v587_v45 = vmul.f32 %v2447_v43, %v586_v44 }
 0x127   : > { %v588_v46 = vmul.f32 0.5, %v587_v45 }
 0x129   : > { %v2449_v47 = vpop.eup %2448  ;;  %v589_v48 = vsub.f32 1.5, %v588_v46 }
 0x12a   : > { %v660_v49 = vmul.f32 %v2449_v47, %v657_v40  ;;  %vm666_vm6 = vweird.f32 %v2449_v47 }
 0x12b   : > { %v590_v51 = vmul.f32 %v2447_v43, %v589_v48  ;;  %vm667_vm8 = vmor %vm665_vm7, %vm666_vm6 }
 0x12c   : > { %v661_v52 = vmul.f32 %v2449_v47, %v660_v49  ;;  %v688_v53 = vpop.permute.xlu0 %687 }
 0x12d   : > { %v594_v54 = vsel %vm593_vm5, %v2447_v43, %v590_v51  ;;  %v694_v55 = vsel %vm580_vm2, %v688_v53, 0.0 }
 0x12e   : > { %v595_v56 = vmul.f32 %v594_v54, %v2831_v42  ;;  %v662_v57 = vmul.f32 0.5, %v661_v52  ;;  %695 = vadd.xlane.f32.xlu2 %v694_v55 }
 0x130   : > { %596 = vst.msk [vmem:[#allocation2] sm:$0xff] %vm580_vm2, %v595_v56  ;;  %v663_v58 = vsub.f32 1.5, %v662_v57 }
 0x132   : > { %v664_v59 = vmul.f32 %v2449_v47, %v663_v58 }
 0x134   : > { %v668_v60 = vsel %vm667_vm8, %v2449_v47, %v664_v59 }
 0x135   : > { %v679_v61 = vmul.f32 %v668_v60, %v2838_v50 }
 0x137   : > { %681 = vst.msk [vmem:[#allocation3] sm:$0xff] %vm580_vm2, %v679_v61 }
 0x140   : > { %v825_v62 = vpop.xlane.xlu2 %824 }
 0x141   : > { %v827_v63 = vadd.f32 1e-18, %v825_v62 }
 0x143   : > { %2450 = vrsqrt.f32 %v827_v63  ;;  %vm844_vm10 = vweird.f32 %v827_v63 }
 0x149   : > { %v2451_v0 = vpop.eup %2450 }
 0x14a   : > { %v839_v2 = vmul.f32 %v2451_v0, %v827_v63  ;;  %v750_v3 = vpop.xlane.xlu1 %749  ;;  %vm845_vm9 = vweird.f32 %v2451_v0 }
 0x14b   : > { %v751_v4 = vadd.f32 1e-18, %v750_v3  ;;  %vm846_vm11 = vmor %vm844_vm10, %vm845_vm9 }
 0x14c   : > { %v840_v5 = vmul.f32 %v2451_v0, %v839_v2 }
 0x14d   : > { %2452 = vrsqrt.f32 %v751_v4  ;;  %vm758_vm13 = vweird.f32 %v751_v4 }
 0x14e   : > { %v841_v6 = vmul.f32 0.5, %v840_v5 }
 0x150   : > { %v842_v7 = vsub.f32 1.5, %v841_v6 }
 0x152   : > { %v843_v8 = vmul.f32 %v2451_v0, %v842_v7 }
 0x153   : > { %v2453_v9 = vpop.eup %2452 }
 0x154   : > { %v847_v10 = vsel %vm846_vm11, %v2451_v0, %v843_v8  ;;  %v753_v11 = vmul.f32 %v2453_v9, %v751_v4  ;;  %vm759_vm12 = vweird.f32 %v2453_v9 }
 0x155   : > { %v849_v12 = vmul.f32 %v847_v10, %v2853_v23  ;;  %vm760_vm14 = vmor %vm758_vm13, %vm759_vm12 }
 0x156   : > { %v754_v13 = vmul.f32 %v2453_v9, %v753_v11 }
 0x157   : > { %852 = vst.msk [vmem:[#allocation3 + $0x28] sm:$0xff] %vm580_vm2, %v849_v12  ;;  %v656_v14 = vpop.xlane.xlu0 %655 }
 0x158   : > { %v755_v15 = vmul.f32 0.5, %v754_v13  ;;  %v658_v16 = vadd.f32 1e-18, %v656_v14 }
 0x15a   : > { %v756_v17 = vsub.f32 1.5, %v755_v15  ;;  %2454 = vrsqrt.f32 %v658_v16  ;;  %vm675_vm0 = vweird.f32 %v658_v16 }
 0x15c   : > { %v757_v18 = vmul.f32 %v2453_v9, %v756_v17 }
 0x15e   : > { %v761_v19 = vsel %vm760_vm14, %v2453_v9, %v757_v18 }
 0x15f   : > { %v762_v20 = vmul.f32 %v761_v19, %v2858_v27 }
 0x160   : > { %v2455_v21 = vpop.eup %2454 }
 0x161   : > { %764 = vst.msk [vmem:[#allocation2 + $0x10] sm:$0xff] %vm580_vm2, %v762_v20  ;;  %v670_v22 = vmul.f32 %v2455_v21, %v658_v16  ;;  %vm676_vm15 = vweird.f32 %v2455_v21 }
 0x162   : > { %vm677_vm1 = vmor %vm675_vm0, %vm676_vm15  ;;  %v856_v34 = vpop.permute.xlu1 %855 }
 0x163   : > { %v671_v24 = vmul.f32 %v2455_v21, %v670_v22  ;;  %v861_v37 = vsel %vm580_vm2, %v856_v34, 0.0 }
 0x165   : > { %v672_v25 = vmul.f32 0.5, %v671_v24 }
 0x167   : > { %v673_v26 = vsub.f32 1.5, %v672_v25 }
 0x169   : > { %v674_v28 = vmul.f32 %v2455_v21, %v673_v26 }
 0x16a   : > { %v767_v29 = vpop.permute.xlu0 %766 }
 0x16b   : > { %v678_v30 = vsel %vm677_vm1, %v2455_v21, %v674_v28  ;;  %v769_v32 = vsel %vm580_vm2, %v767_v29, 0.0 }
 0x16c   : > { %v680_v33 = vmul.f32 %v678_v30, %v2845_v1  ;;  %770 = vadd.xlane.f32.xlu0 %v769_v32 }
 0x16e   : > { %682 = vst.msk [vmem:[#allocation3 + $0x8] sm:$0xff] %vm580_vm2, %v680_v33 }
 0x172   : > { %v858_v35 = vpop.permute.xlu0 %857 }
 0x173   : > { %v864_v36 = vsel %vm580_vm2, %v858_v35, 0.0 }
 0x174   : > { %865 = vadd.xlane.f32.xlu1 %v864_v36  ;;  %862 = vadd.xlane.f32.xlu0 %v861_v37 }
 0x18d   : > { %v822_v38 = vpop.xlane.xlu1 %821 }
 0x18e   : > { %v826_v39 = vadd.f32 1e-18, %v822_v38 }
 0x190   : > { %2456 = vrsqrt.f32 %v826_v39  ;;  %vm834_vm4 = vweird.f32 %v826_v39 }
 0x194   : > { %v693_v40 = vpop.xlane.xlu2 %692 }
 0x195   : > { %v697_v41 = vadd.f32 1e-18, %v693_v40  ;;  %v603_v43 = vpop.xlane.xlu1 %602 }
 0x196   : > { %v2457_v44 = vpop.eup %2456  ;;  %v604_v45 = vadd.f32 1e-18, %v603_v43 }
 0x197   : > { %v829_v46 = vmul.f32 %v2457_v44, %v826_v39  ;;  %2458 = vrsqrt.f32 %v697_v41  ;;  %vm835_vm3 = vweird.f32 %v2457_v44  ;;  %vm705_vm8 = vweird.f32 %v697_v41 }
 0x198   : > { %2460 = vrsqrt.f32 %v604_v45  ;;  %vm836_vm5 = vmor %vm834_vm4, %vm835_vm3  ;;  %vm611_vm9 = vweird.f32 %v604_v45 }
 0x199   : > { %v830_v47 = vmul.f32 %v2457_v44, %v829_v46 }
 0x19b   : > { %v831_v48 = vmul.f32 0.5, %v830_v47 }
 0x19d   : > { %v2459_v49 = vpop.eup %2458  ;;  %v832_v51 = vsub.f32 1.5, %v831_v48 }
 0x19e   : > { %v2461_v52 = vpop.eup %2460  ;;  %v700_v53 = vmul.f32 %v2459_v49, %v697_v41  ;;  %vm706_vm6 = vweird.f32 %v2459_v49 }
 0x19f   : > { %v833_v54 = vmul.f32 %v2457_v44, %v832_v51  ;;  %v606_v55 = vmul.f32 %v2461_v52, %v604_v45  ;;  %vm612_vm7 = vweird.f32 %v2461_v52  ;;  %vm707_vm10 = vmor %vm705_vm8, %vm706_vm6 }
 0x1a0   : > { %v701_v56 = vmul.f32 %v2459_v49, %v700_v53  ;;  %vm613_vm11 = vmor %vm611_vm9, %vm612_vm7  ;;  %v901_v53 = vld [vmem:[#allocation2] sm:$0xff] }
 0x1a1   : > { %v837_v57 = vsel %vm836_vm5, %v2457_v44, %v833_v54  ;;  %v607_v58 = vmul.f32 %v2461_v52, %v606_v55  ;;  %v696_v59 = vpop.xlane.xlu2 %695 }
 0x1a2   : > { %v848_v60 = vmul.f32 %v837_v57, %v2864_v31  ;;  %v702_v61 = vmul.f32 0.5, %v701_v56  ;;  %v698_v62 = vadd.f32 1e-18, %v696_v59 }
 0x1a3   : > { %v608_v63 = vmul.f32 0.5, %v607_v58 }
 0x1a4   : > { %851 = vst.msk [vmem:[#allocation3 + $0x20] sm:$0xff] %vm580_vm2, %v848_v60  ;;  %v703_v0 = vsub.f32 1.5, %v702_v61  ;;  %2462 = vrsqrt.f32 %v698_v62  ;;  %vm715_vm13 = vweird.f32 %v698_v62  ;;  %v910_v60 = vld [vmem:[#allocation3 + $0x28] sm:$0xff] }
 0x1a5   : > { %v609_v2 = vsub.f32 1.5, %v608_v63 }
 0x1a6   : > { %v704_v3 = vmul.f32 %v2459_v49, %v703_v0 }
 0x1a7   : > { %v610_v4 = vmul.f32 %v2461_v52, %v609_v2 }
 0x1a8   : > { %v708_v5 = vsel %vm707_vm10, %v2459_v49, %v704_v3 }
 0x1a9   : > { %v719_v6 = vmul.f32 %v708_v5, %v2838_v50  ;;  %v614_v7 = vsel %vm613_vm11, %v2461_v52, %v610_v4  ;;  %v906_v52 = vld [vmem:[#allocation3 + $0x8] sm:$0xff] }
 0x1aa   : > { %v2463_v8 = vpop.eup %2462  ;;  %v615_v9 = vmul.f32 %v614_v7, %v2831_v42 }
 0x1ab   : > { %v710_v10 = vmul.f32 %v2463_v8, %v698_v62  ;;  %723 = vrot.lane.b32.xlu1 %v719_v6, %s2687_s20  ;;  %vm716_vm12 = vweird.f32 %v2463_v8  ;;  %v909_v61 = vld [vmem:[#allocation3 + $0x20] sm:$0xff]  ;;  %v903_v62 = vld [vmem:[#allocation2 + $0x10] sm:$0xff] }
 0x1ac   : > { %617 = vrot.lane.b32.xlu2 %v615_v9, %s2687_s20  ;;  %vm717_vm14 = vmor %vm715_vm13, %vm716_vm12 }
 0x1ad   : > { %v711_v11 = vmul.f32 %v2463_v8, %v710_v10 }
 0x1af   : > { %v712_v12 = vmul.f32 0.5, %v711_v11 }
 0x1b1   : > { %v713_v13 = vsub.f32 1.5, %v712_v12 }
 0x1b3   : > { %v714_v14 = vmul.f32 %v2463_v8, %v713_v13 }
 0x1b5   : > { %v718_v15 = vsel %vm717_vm14, %v2463_v8, %v714_v14 }
 0x1b6   : > { %v720_v16 = vmul.f32 %v718_v15, %v2845_v1 }
 0x1b8   : > { %725 = vrot.lane.b32.xlu0 %v720_v16, %s2687_s20 }
 0x1df   : > { %v771_v50 = vpop.xlane.xlu0 %770 }
 0x1e0   : > { %v772_v17 = vadd.f32 1e-18, %v771_v50 }
 0x1e2   : > { %2464 = vrsqrt.f32 %v772_v17  ;;  %vm779_vm0 = vweird.f32 %v772_v17 }
 0x1e7   : > { %v863_v42 = vpop.xlane.xlu0 %862  ;;  %v866_v18 = vpop.xlane.xlu1 %865 }
 0x1e8   : > { %v2465_v19 = vpop.eup %2464  ;;  %v867_v20 = vadd.f32 1e-18, %v863_v42  ;;  %v868_v21 = vadd.f32 1e-18, %v866_v18 }
 0x1e9   : > { %v774_v22 = vmul.f32 %v2465_v19, %v772_v17  ;;  %vm780_vm15 = vweird.f32 %v2465_v19 }
 0x1ea   : > { %2466 = vrsqrt.f32 %v867_v20  ;;  %vm781_vm1 = vmor %vm779_vm0, %vm780_vm15  ;;  %vm875_vm4 = vweird.f32 %v867_v20  ;;  %vm885_vm7 = vweird.f32 %v868_v21 }
 0x1eb   : > { %v775_v24 = vmul.f32 %v2465_v19, %v774_v22  ;;  %2468 = vrsqrt.f32 %v868_v21 }
 0x1ed   : > { %v776_v25 = vmul.f32 0.5, %v775_v24 }
 0x1ef   : > { %v777_v26 = vsub.f32 1.5, %v776_v25 }
 0x1f0   : > { %v2467_v28 = vpop.eup %2466 }
 0x1f1   : > { %v2469_v29 = vpop.eup %2468  ;;  %v870_v1 = vmul.f32 %v2467_v28, %v867_v20  ;;  %v778_v30 = vmul.f32 %v2465_v19, %v777_v26  ;;  %vm876_vm3 = vweird.f32 %v2467_v28 }
 0x1f2   : > { %v880_v32 = vmul.f32 %v2469_v29, %v868_v21  ;;  %vm877_vm5 = vmor %vm875_vm4, %vm876_vm3  ;;  %vm886_vm6 = vweird.f32 %v2469_v29  ;;  %vm2232_vm3 = vcmask 1024  }
 0x1f3   : > { %v871_v33 = vmul.f32 %v2467_v28, %v870_v1  ;;  %v782_v34 = vsel %vm781_vm1, %v2465_v19, %v778_v30  ;;  %vm887_vm8 = vmor %vm885_vm7, %vm886_vm6  ;;  %vm2229_vm1 = vcmask 1041409  }
 0x1f4   : > { %v881_v35 = vmul.f32 %v2469_v29, %v880_v32  ;;  %v783_v36 = vmul.f32 %v782_v34, %v2858_v27 }
 0x1f5   : > { %v872_v37 = vmul.f32 0.5, %v871_v33 }
 0x1f6   : > { %v882_v38 = vmul.f32 0.5, %v881_v35  ;;  %785 = vrot.lane.b32.xlu2 %v783_v36, %s2687_s20 }
 0x1f7   : > { %v873_v39 = vsub.f32 1.5, %v872_v37 }
 0x1f8   : > { %v883_v40 = vsub.f32 1.5, %v882_v38 }
 0x1f9   : > { %v874_v41 = vmul.f32 %v2467_v28, %v873_v39 }
 0x1fa   : > { %v884_v45 = vmul.f32 %v2469_v29, %v883_v40 }
 0x1fb   : > { %v878_v43 = vsel %vm877_vm5, %v2467_v28, %v874_v41 }
 0x1fc   : > { %v889_v44 = vmul.f32 %v878_v43, %v2864_v31  ;;  %v888_v27 = vsel %vm887_vm8, %v2469_v29, %v884_v45 }
 0x1fd   : > { %v890_v46 = vmul.f32 %v888_v27, %v2853_v23  ;;  %v905_v23 = vld [vmem:[#allocation3] sm:$0xff] }
 0x1fe   : > { %893 = vrot.lane.b32.xlu2 %v889_v44, %s2687_s20 }
 0x206   : > { %v618_v47 = vpop.permute.xlu2 %617  ;;  %895 = vrot.lane.b32.xlu2 %v890_v46, %s2687_s20 }
 0x207   : > { %620 = vst.msk [vmem:[#allocation2 + $0x8] sm:$0xff] %vm580_vm2, %v618_v47 }
 0x20e   : > { %v902_v54 = vld [vmem:[#allocation2 + $0x8] sm:$0xff] }
 0x21d   : > { %v724_v48 = vpop.permute.xlu1 %723 }
 0x21e   : > { %729 = vst.msk [vmem:[#allocation3 + $0x10] sm:$0xff] %vm580_vm2, %v724_v48 }
 0x225   : > { %v907_v51 = vld [vmem:[#allocation3 + $0x10] sm:$0xff] }
 0x22a   : > { %v726_v49 = vpop.permute.xlu0 %725 }
 0x22b   : > { %730 = vst.msk [vmem:[#allocation3 + $0x18] sm:$0xff] %vm580_vm2, %v726_v49 }
 0x232   : > { %v908_v31 = vld [vmem:[#allocation3 + $0x18] sm:$0xff] }
 0x233   : > { %2366 = vmatpush.xpose.msk.msrb.mxu0 %vm580_vm2, %v908_v31 }
 0x237   : > { %2367 = vmatpush.xpose.msk.msrb.mxu0 %vm580_vm2, %v907_v51 }
 0x23b   : > { %2368 = vmatpush.xpose.msk.msrb.mxu0 %vm580_vm2, %v906_v52 }
 0x23f   : > { %2369 = vmatpush.xpose.msk.msrb.mxu0 %vm580_vm2, %v905_v23 }
 0x242   : > { %2370 = vmatmul.msk.f32.vlgmr.msrb.gmra.mxu0 %vm580_vm2, %v901_v53 }
 0x24a   : > { %2371 = vmatmul.msk.f32.gmra.mxu0 %vm580_vm2, %v902_v54 }
 0x250   : > { %v786_v55 = vpop.permute.xlu2 %785 }
 0x251   : > { %788 = vst.msk [vmem:[#allocation2 + $0x18] sm:$0xff] %vm580_vm2, %v786_v55 }
 0x258   : > { %v894_v56 = vpop.permute.xlu2 %893  ;;  %v904_v63 = vld [vmem:[#allocation2 + $0x18] sm:$0xff] }
 0x259   : > { %899 = vst.msk [vmem:[#allocation3 + $0x30] sm:$0xff] %vm580_vm2, %v894_v56 }
 0x260   : > { %v896_v57 = vpop.permute.xlu2 %895  ;;  %v911_v59 = vld [vmem:[#allocation3 + $0x30] sm:$0xff] }
 0x261   : > { %900 = vst.msk [vmem:[#allocation3 + $0x38] sm:$0xff] %vm580_vm2, %v896_v57 }
 0x268   : > { %v912_v58 = vld [vmem:[#allocation3 + $0x38] sm:$0xff] }
 0x269   : > { %2372 = vmatpush.xpose.msk.msrb.mxu1 %vm580_vm2, %v912_v58 }
 0x26d   : > { %2373 = vmatpush.xpose.msk.msrb.mxu1 %vm580_vm2, %v911_v59 }
 0x271   : > { %2374 = vmatpush.xpose.msk.msrb.mxu1 %vm580_vm2, %v910_v60 }
 0x275   : > { %2375 = vmatpush.xpose.msk.msrb.mxu1 %vm580_vm2, %v909_v61 }
 0x278   : > { %2376 = vmatmul.msk.f32.vlgmr.msrb.gmra.mxu1 %vm580_vm2, %v903_v62 }
 0x280   : > { %2377 = vmatmul.msk.f32.gmra.mxu1 %vm580_vm2, %v904_v63 }
 0x2bf   : > { %v2920_v0 = vpop.f32.mrf.mxu0 }
 0x2c0   : > { %4010 = vst [vmem:[#allocation5_spill] sm:$0xff] %v2920_v0  ;;  %v2378_v2 = vadd.f32 0.1, %v2920_v0  ;;  %1015 = vrot.lane.b32.xlu1 %v2920_v0, %s2687_s20  ;;  %v995_v3 = vsel %vm580_vm2, %v2920_v0, 0.0  ;;  %v1055_v9 = vmul.f32 -20.0, %v2920_v0  ;;  %v1043_v10 = vmul.f32 20.0, %v2920_v0 }
 0x2c1   : > { %996 = vadd.xlane.f32.xlu0 %v995_v3 }
 0x2c2   : > { %v1071_v4 = vmul.f32 -50.0, %v2378_v2  ;;  %v1059_v11 = vmul.f32 1.442695, %v1055_v9  ;;  %v1047_v12 = vmul.f32 1.442695, %v1043_v10 }
 0x2c4   : > { %v1075_v5 = vmul.f32 %v2378_v2, %v1071_v4 }
 0x2c6   : > { %v1079_v6 = vmul.f32 1.442695, %v1075_v5 }
 0x2c7   : > { %v2928_v8 = vpop.f32.mrf.mxu0 }
 0x2c8   : > { %2470 = vpow2.f32 %v1079_v6  ;;  %4011 = vst [vmem:[#allocation6_spill] sm:$0xff] %v2928_v8  ;;  %v998_v14 = vsel %vm580_vm2, %v2928_v8, 0.0  ;;  %v2379_v32 = vadd.f32 0.1, %v2928_v8  ;;  %v1044_v40 = vmul.f32 20.0, %v2928_v8 }
 0x2c9   : > { %2472 = vpow2.f32 %v1059_v11  ;;  %v1056_v54 = vmul.f32 -20.0, %v2928_v8 }
 0x2ca   : > { %2474 = vpow2.f32 %v1047_v12  ;;  %v1072_v35 = vmul.f32 -50.0, %v2379_v32  ;;  %v1049_v43 = vmul.f32 1.442695, %v1044_v40 }
 0x2cb   : > { %v1061_v55 = vmul.f32 1.442695, %v1056_v54 }
 0x2cc   : > { %v1076_v38 = vmul.f32 %v2379_v32, %v1072_v35 }
 0x2ce   : > { %v2471_v7 = vpop.eup %2470  ;;  %v1081_v41 = vmul.f32 1.442695, %v1076_v38 }
 0x2cf   : > { %1126 = vrot.lane.b32.xlu2 %v2471_v7, %s2687_s20  ;;  %v2934_v13 = vpop.eup %2472  ;;  %v1087_v24 = vsel %vm580_vm2, %v2471_v7, 0.0 }
 0x2d0   : > { %v1683_v15 = vmul.f32 %v2934_v13, %v2471_v7  ;;  %v2939_v16 = vpop.eup %2474 }
 0x2d1   : > { %v1177_v17 = vmul.f32 %v2939_v16, %v2471_v7 }
 0x2d2   : > { %v1687_v50 = vmul.f32 0.01831564, %v1683_v15 }
 0x2d3   : > { %v1275_v18 = vmul.f32 %v2939_v16, %v1177_v17  ;;  %v1181_v30 = vsel %vm580_vm2, %v1177_v17, 0.0 }
 0x2d4   : > { %v1691_v42 = vsel %vm580_vm2, %v1687_v50, 0.0  ;;  %v1785_v47 = vmul.f32 %v2934_v13, %v1687_v50 }
 0x2d5   : > { %1017 = vrot.lane.b32.xlu0 %v2928_v8, %s2687_s20  ;;  %v1279_v20 = vmul.f32 0.01831564, %v1275_v18 }
 0x2d6   : > { %v2978_v31 = vmul.f32 0.00033546262, %v1785_v47 }
 0x2d7   : > { %v1283_v28 = vsel %vm580_vm2, %v1279_v20, 0.0  ;;  %v1377_v46 = vmul.f32 %v2939_v16, %v1279_v20 }
 0x2d8   : > { %v1793_v52 = vsel %vm580_vm2, %v2978_v31, 0.0 }
 0x2d9   : > { %v1381_v49 = vmul.f32 0.00033546262, %v1377_v46 }
 0x2db   : > { %v1385_v51 = vsel %vm580_vm2, %v1381_v49, 0.0  ;;  %v1479_v56 = vmul.f32 %v2939_v16, %v1381_v49 }
 0x2dd   : > { %v1483_v57 = vmul.f32 6.1442124e-06, %v1479_v56 }
 0x2df   : > { %v1581_v5 = vmul.f32 %v2939_v16, %v1483_v57 }
 0x2e1   : > { %v1585_v7 = vmul.f32 1.12535176e-07, %v1581_v5 }
 0x2e3   : > { %v1589_v10 = vsel %vm580_vm2, %v1585_v7, 0.0 }
 0x2ea   : > { %999 = vadd.xlane.f32.xlu1 %v998_v14 }
 0x2f2   : > { %1692 = vadd.xlane.f32.xlu1 %v1691_v42 }
 0x2f5   : > { %v2944_v19 = vpop.f32.mrf.mxu1 }
 0x2f6   : > { %4012 = vst [vmem:[#allocation7_spill] sm:$0xff] %v2944_v19  ;;  %v1057_v21 = vmul.f32 -20.0, %v2944_v19  ;;  %v2380_v22 = vadd.f32 0.1, %v2944_v19  ;;  %v1001_v23 = vsel %vm580_vm2, %v2944_v19, 0.0 }
 0x2f8   : > { %v1073_v25 = vmul.f32 -50.0, %v2380_v22  ;;  %1088 = vadd.xlane.f32.xlu2 %v1087_v24  ;;  %v1063_v26 = vmul.f32 1.442695, %v1057_v21 }
 0x2fa   : > { %v1077_v29 = vmul.f32 %v2380_v22, %v1073_v25  ;;  %1284 = vadd.xlane.f32.xlu1 %v1283_v28  ;;  %2476 = vpow2.f32 %v1063_v26 }
 0x2fc   : > { %v1083_v1 = vmul.f32 1.442695, %v1077_v29 }
 0x2fe   : > { %2478 = vpow2.f32 %v1083_v1  ;;  %v1487_v1 = vsel %vm580_vm2, %v1483_v57, 0.0 }
 0x2ff   : > { %1182 = vadd.xlane.f32.xlu0 %v1181_v30  ;;  %2480 = vpow2.f32 %v1081_v41 }
 0x300   : > { %v2952_v33 = vpop.eup %2476  ;;  %2482 = vpow2.f32 %v1049_v43 }
 0x301   : > { %2484 = vpow2.f32 %v1061_v55 }
 0x304   : > { %v2954_v34 = vpop.eup %2478 }
 0x305   : > { %v1685_v36 = vmul.f32 %v2954_v34, %v2952_v33  ;;  %v2481_v44 = vpop.eup %2480  ;;  %v1093_v54 = vsel %vm580_vm2, %v2954_v34, 0.0 }
 0x306   : > { %v2969_v45 = vpop.eup %2482  ;;  %v1090_v48 = vsel %vm580_vm2, %v2481_v44, 0.0 }
 0x307   : > { %v2958_v37 = vmul.f32 0.01831564, %v1685_v36  ;;  %v1178_v27 = vmul.f32 %v2969_v45, %v2481_v44  ;;  %v2990_v58 = vpop.eup %2484  ;;  %v1045_v36 = vmul.f32 20.0, %v2944_v19 }
 0x308   : > { %v1684_v59 = vmul.f32 %v2990_v58, %v2481_v44 }
 0x309   : > { %v2962_v39 = vmul.f32 %v2952_v33, %v2958_v37  ;;  %v1184_v53 = vsel %vm580_vm2, %v1178_v27, 0.0  ;;  %v1276_v62 = vmul.f32 %v2969_v45, %v1178_v27  ;;  %v1051_v40 = vmul.f32 1.442695, %v1045_v36 }
 0x30a   : > { %v1688_v60 = vmul.f32 0.01831564, %v1684_v59 }
 0x30b   : > { %v1280_v3 = vmul.f32 0.01831564, %v1276_v62 }
 0x30c   : > { %v1786_v61 = vmul.f32 %v2990_v58, %v1688_v60  ;;  %v1694_v63 = vsel %vm580_vm2, %v1688_v60, 0.0 }
 0x30d   : > { %v1378_v6 = vmul.f32 %v2969_v45, %v1280_v3  ;;  %v1286_v14 = vsel %vm580_vm2, %v1280_v3, 0.0 }
 0x30e   : > { %v2997_v2 = vmul.f32 0.00033546262, %v1786_v61 }
 0x30f   : > { %v3003_v9 = vmul.f32 0.00033546262, %v1378_v6 }
 0x310   : > { %1224 = vrot.lane.b32.xlu2 %v1177_v17, %s2687_s20  ;;  %v1796_v4 = vsel %vm580_vm2, %v2997_v2, 0.0 }
 0x311   : > { %v1480_v11 = vmul.f32 %v2969_v45, %v3003_v9 }
 0x313   : > { %1019 = vrot.lane.b32.xlu1 %v2944_v19, %s2687_s20  ;;  %1734 = vrot.lane.b32.xlu0 %v1687_v50, %s2687_s20  ;;  %v1484_v15 = vmul.f32 6.1442124e-06, %v1480_v11 }
 0x315   : > { %v1490_v16 = vsel %vm580_vm2, %v1484_v15, 0.0  ;;  %v1582_v55 = vmul.f32 %v2969_v45, %v1484_v15 }
 0x318   : > { %1326 = vrot.lane.b32.xlu2 %v1279_v20, %s2687_s20 }
 0x31b   : > { %1226 = vrot.lane.b32.xlu1 %v1178_v27, %s2687_s20  ;;  %1128 = vrot.lane.b32.xlu0 %v2481_v44, %s2687_s20 }
 0x329   : > { %v3008_v12 = vpop.permute.xlu2 %1126 }
 0x332   : > { %v3024_v18 = vpop.permute.xlu1 %1015 }
 0x334   : > { %v3031_v26 = vpop.xlane.xlu0 %996 }
 0x335   : > { %4014 = vst [vmem:[#allocation9_spill] sm:$0xff] %v3031_v26  ;;  %vm1007_vm12 = vcmp.ne.f32.partialorder %v3031_v26, 0.0 }
 0x341   : > { %1091 = vadd.xlane.f32.xlu2 %v1090_v48  ;;  %v3054_v48 = vpop.f32.mrf.mxu1 }
 0x342   : > { %4015 = vst [vmem:[#allocation10_spill] sm:$0xff] %v3054_v48 }
 0x345   : > { %1386 = vadd.xlane.f32.xlu1 %v1385_v51  ;;  %1794 = vadd.xlane.f32.xlu0 %v1793_v52 }
 0x347   : > { %v3039_v32 = vpop.permute.xlu0 %1017 }
 0x349   : > { %1002 = vadd.xlane.f32.xlu2 %v1001_v23 }
 0x351   : > { %1185 = vadd.xlane.f32.xlu2 %v1184_v53 }
 0x359   : > { %1428 = vrot.lane.b32.xlu0 %v1381_v49, %s2687_s20 }
 0x35d   : > { %v3027_v22 = vpop.xlane.xlu1 %999 }
 0x35e   : > { %1530 = vrot.lane.b32.xlu1 %v1483_v57, %s2687_s20  ;;  %4013 = vst [vmem:[#allocation8_spill] sm:$0xff] %v3027_v22  ;;  %vm1008_vm9 = vcmp.ne.f32.partialorder %v3027_v22, 0.0  ;;  %v1586_v57 = vmul.f32 1.12535176e-07, %v1582_v55 }
 0x365   : > { %v3042_v38 = vpop.xlane.xlu1 %1692 }
 0x369   : > { %1736 = vrot.lane.b32.xlu2 %v1688_v60, %s2687_s20  ;;  %v1592_v60 = vsel %vm580_vm2, %v1586_v57, 0.0 }
 0x36b   : > { %v3012_v50 = vpop.xlane.xlu2 %1088 }
 0x36d   : > { %v3050_v46 = vpop.xlane.xlu1 %1284 }
 0x372   : > { %v3044_v43 = vpop.xlane.xlu0 %1182 }
 0x373   : > { %v3015_v17 = vpop.permute.xlu2 %1224 }
 0x37b   : > { %v3019_v42 = vpop.permute.xlu2 %1326 }
 0x383   : > { %1695 = vadd.xlane.f32.xlu0 %v1694_v63  ;;  %v1697_v63 = vsel %vm580_vm2, %v2958_v37, 0.0 }
 0x385   : > { %v3056_v49 = vpop.permute.xlu0 %1734  ;;  %v3064_v52 = vpop.permute.xlu1 %1019 }
 0x388   : > { %1797 = vadd.xlane.f32.xlu1 %v1796_v4  ;;  %v2381_v4 = vadd.f32 0.1, %v3054_v48 }
 0x38a   : > { %v1074_v11 = vmul.f32 -50.0, %v2381_v4 }
 0x38d   : > { %v3068_v53 = vpop.permute.xlu0 %1128  ;;  %v3073_v56 = vpop.permute.xlu1 %1226 }
 0x390   : > { %1590 = vadd.xlane.f32.xlu1 %v1589_v10 }
 0x392   : > { %1287 = vadd.xlane.f32.xlu2 %v1286_v14 }
 0x397   : > { %1328 = vrot.lane.b32.xlu0 %v1280_v3, %s2687_s20 }
 0x398   : > { %1491 = vadd.xlane.f32.xlu1 %v1490_v16  ;;  %v1004_v16 = vsel %vm580_vm2, %v3054_v48, 0.0 }
 0x3aa   : > { %1430 = vrot.lane.b32.xlu2 %v3003_v9, %s2687_s20 }
 0x3b1   : > { %1130 = vrot.lane.b32.xlu1 %v2954_v34, %s2687_s20 }
 0x3b2   : > { %1632 = vrot.lane.b32.xlu2 %v1585_v7, %s2687_s20 }
 0x3b4   : > { %v1092_v20 = vpop.xlane.xlu2 %1091 }
 0x3b5   : > { %v1100_v21 = vadd.f32 1e-06, %v1092_v20 }
 0x3b7   : > { %2486 = vlog2.f32 %v1100_v21 }
 0x3b8   : > { %v3075_v59 = vpop.xlane.xlu0 %1794  ;;  %v3078_v61 = vpop.xlane.xlu1 %1386 }
 0x3ba   : > { %1532 = vrot.lane.b32.xlu2 %v1484_v15, %s2687_s20 }
 0x3bc   : > { %v3029_v24 = vpop.xlane.xlu2 %1002 }
 0x3bd   : > { %v2487_v25 = vpop.eup %2486  ;;  %vm1009_vm10 = vcmp.ne.f32.partialorder %v3029_v24, 0.0 }
 0x3be   : > { %v1106_v28 = vmul.f32 0.6931472, %v2487_v25  ;;  %v1046_v25 = vmul.f32 20.0, %v3054_v48 }
 0x3c0   : > { %v3036_v29 = vsel %vm1008_vm9, %v1106_v28, 0.0 }
 0x3c1   : > { %1488 = vadd.xlane.f32.xlu0 %v1487_v1 }
 0x3c4   : > { %v1186_v30 = vpop.xlane.xlu2 %1185 }
 0x3c5   : > { %v1194_v35 = vadd.f32 1e-06, %v1186_v30 }
 0x3c7   : > { %2488 = vlog2.f32 %v1194_v35 }
 0x3c8   : > { %2490 = vpow2.f32 %v1051_v40 }
 0x3cb   : > { %v3080_v62 = vpop.permute.xlu0 %1428 }
 0x3cd   : > { %v2489_v41 = vpop.eup %2488 }
 0x3ce   : > { %v1200_v44 = vmul.f32 0.6931472, %v2489_v41  ;;  %v3052_v47 = vpop.eup %2490  ;;  %v1053_v41 = vmul.f32 1.442695, %v1046_v25 }
 0x3cf   : > { %v3062_v51 = vmul.f32 %v3052_v47, %v2954_v34  ;;  %v3089_v34 = vmul.f32 0.00033546262, %v2962_v39  ;;  %v1078_v39 = vmul.f32 %v2381_v4, %v1074_v11 }
 0x3d0   : > { %v3048_v27 = vsel %vm1008_vm9, %v1200_v44, 0.0  ;;  %v3084_v3 = vpop.permute.xlu1 %1530 }
 0x3d1   : > { %v1187_v23 = vsel %vm580_vm2, %v3062_v51, 0.0  ;;  %v1277_v45 = vmul.f32 %v3052_v47, %v3062_v51  ;;  %v1799_v7 = vsel %vm580_vm2, %v3089_v34, 0.0  ;;  %v1085_v28 = vmul.f32 1.442695, %v1078_v39 }
 0x3d3   : > { %v1281_v10 = vmul.f32 0.01831564, %v1277_v45 }
 0x3d5   : > { %1021 = vrot.lane.b32.xlu0 %v3054_v48, %s2687_s20  ;;  %v1379_v39 = vmul.f32 %v3052_v47, %v1281_v10 }
 0x3db   : > { %1188 = vadd.xlane.f32.xlu1 %v1187_v23 }
 0x3e3   : > { %1094 = vadd.xlane.f32.xlu2 %v1093_v54  ;;  %v1388_v54 = vsel %vm580_vm2, %v3003_v9, 0.0 }
 0x3eb   : > { %1593 = vadd.xlane.f32.xlu2 %v1592_v60 }
 0x3f3   : > { %1698 = vadd.xlane.f32.xlu2 %v1697_v63 }
 0x3f4   : > { %1738 = vrot.lane.b32.xlu1 %v2958_v37, %s2687_s20  ;;  %v3097_v37 = vpop.permute.xlu2 %1736 }
 0x3f6   : > { %v1696_v5 = vpop.xlane.xlu0 %1695 }
 0x3f7   : > { %v1704_v6 = vadd.f32 1e-06, %v1696_v5 }
 0x3f9   : > { %2492 = vlog2.f32 %v1704_v6 }
 0x3fb   : > { %1800 = vadd.xlane.f32.xlu2 %v1799_v7  ;;  %v1798_v14 = vpop.xlane.xlu1 %1797 }
 0x3fc   : > { %v1806_v15 = vadd.f32 1e-06, %v1798_v14  ;;  %1330 = vrot.lane.b32.xlu1 %v1281_v10, %s2687_s20 }
 0x3fe   : > { %2494 = vlog2.f32 %v1806_v15 }
 0x3ff   : > { %v2493_v20 = vpop.eup %2492  ;;  %1005 = vadd.xlane.f32.xlu0 %v1004_v16  ;;  %2496 = vpow2.f32 %v1085_v28  ;;  %v1383_v16 = vmul.f32 0.00033546262, %v1379_v39 }
 0x400   : > { %v1710_v21 = vmul.f32 0.6931472, %v2493_v20 }
 0x401   : > { %v1481_v25 = vmul.f32 %v3052_v47, %v1383_v16 }
 0x402   : > { %v3104_v1 = vsel %vm1008_vm9, %v1710_v21, 0.0  ;;  %v1391_v21 = vsel %vm580_vm2, %v1383_v16, 0.0 }
 0x403   : > { %4016 = vst [vmem:[#allocation11_spill] sm:$0xff] %v3104_v1  ;;  %v3106_v30 = vpop.xlane.xlu1 %1590  ;;  %v3139_v28 = vmul.f32 6.1442124e-06, %v1481_v25 }
 0x404   : > { %v2495_v35 = vpop.eup %2494 }
 0x405   : > { %v1812_v36 = vmul.f32 0.6931472, %v2495_v35  ;;  %v1288_v40 = vpop.xlane.xlu2 %1287  ;;  %v2497_v63 = vpop.eup %2496 }
 0x406   : > { %v1296_v44 = vadd.f32 1e-06, %v1288_v40  ;;  %v1096_v15 = vsel %vm580_vm2, %v2497_v63, 0.0 }
 0x407   : > { %v3110_v23 = vsel %vm1008_vm9, %v1812_v36, 0.0  ;;  %1389 = vadd.xlane.f32.xlu0 %v1388_v54 }
 0x408   : > { %4017 = vst [vmem:[#allocation12_spill] sm:$0xff] %v3110_v23  ;;  %2498 = vlog2.f32 %v1296_v44 }
 0x409   : > { %2500 = vpow2.f32 %v1053_v41  ;;  %v1289_v41 = vsel %vm580_vm2, %v1281_v10, 0.0 }
 0x40b   : > { %v1492_v55 = vpop.xlane.xlu1 %1491 }
 0x40c   : > { %v1500_v60 = vadd.f32 1e-06, %v1492_v55 }
 0x40d   : > { %v3134_v20 = vpop.permute.xlu2 %1430 }
 0x40e   : > { %v2499_v45 = vpop.eup %2498  ;;  %2502 = vlog2.f32 %v1500_v60 }
 0x40f   : > { %v1302_v4 = vmul.f32 0.6931472, %v2499_v45  ;;  %v3114_v5 = vpop.eup %2500  ;;  %v1058_v45 = vmul.f32 -20.0, %v3054_v48 }
 0x410   : > { %v3121_v7 = vmul.f32 %v3114_v5, %v2497_v63 }
 0x411   : > { %v3118_v6 = vsel %vm1008_vm9, %v1302_v4, 0.0 }
 0x412   : > { %v1278_v35 = vmul.f32 %v3114_v5, %v3121_v7 }
 0x413   : > { %1230 = vrot.lane.b32.xlu2 %v3121_v7, %s2687_s20 }
 0x414   : > { %v2503_v9 = vpop.eup %2502  ;;  %v3149_v40 = vmul.f32 0.01831564, %v1278_v35 }
 0x415   : > { %v1506_v11 = vmul.f32 0.6931472, %v2503_v9  ;;  %v1065_v9 = vmul.f32 1.442695, %v1058_v45 }
 0x416   : > { %v1380_v55 = vmul.f32 %v3114_v5, %v3149_v40 }
 0x417   : > { %v3127_v14 = vsel %vm1008_vm9, %v1506_v11, 0.0 }
 0x418   : > { %4018 = vst [vmem:[#allocation13_spill] sm:$0xff] %v3127_v14  ;;  %v3157_v4 = vmul.f32 0.00033546262, %v1380_v55 }
 0x41b   : > { %1228 = vrot.lane.b32.xlu0 %v3062_v51, %s2687_s20  ;;  %v1493_v51 = vsel %vm580_vm2, %v3139_v28, 0.0 }
 0x423   : > { %1634 = vrot.lane.b32.xlu0 %v1586_v57, %s2687_s20  ;;  %v3143_v57 = vpop.permute.xlu2 %1632  ;;  %v3147_v36 = vpop.permute.xlu1 %1130 }
 0x426   : > { %1097 = vadd.xlane.f32.xlu1 %v1096_v15  ;;  %v1482_v15 = vmul.f32 %v3114_v5, %v3157_v4 }
 0x428   : > { %v3166_v25 = vmul.f32 6.1442124e-06, %v1482_v15 }
 0x42b   : > { %v3152_v44 = vpop.permute.xlu2 %1532 }
 0x43c   : > { %1392 = vadd.xlane.f32.xlu2 %v1391_v21 }
 0x43f   : > { %1432 = vrot.lane.b32.xlu1 %v1383_v16, %s2687_s20 }
 0x444   : > { %1494 = vadd.xlane.f32.xlu2 %v1493_v51  ;;  %v3168_v51 = vpop.permute.xlu0 %1328 }
 0x44d   : > { %1290 = vadd.xlane.f32.xlu0 %v1289_v41 }
 0x44e   : > { %v1189_v54 = vpop.xlane.xlu1 %1188 }
 0x44f   : > { %v1195_v60 = vadd.f32 1e-06, %v1189_v54 }
 0x451   : > { %2504 = vlog2.f32 %v1195_v60 }
 0x452   : > { %2506 = vpow2.f32 %v1065_v9 }
 0x456   : > { %v1095_v11 = vpop.xlane.xlu2 %1094 }
 0x457   : > { %v2505_v39 = vpop.eup %2504  ;;  %v1101_v10 = vadd.f32 1e-06, %v1095_v11  ;;  %v3180_v11 = vpop.xlane.xlu0 %1488 }
 0x458   : > { %v1202_v16 = vmul.f32 0.6931472, %v2505_v39  ;;  %v3172_v35 = vpop.eup %2506 }
 0x459   : > { %2508 = vlog2.f32 %v1101_v10  ;;  %v1686_v45 = vmul.f32 %v3172_v35, %v2497_v63 }
 0x45a   : > { %v3164_v21 = vsel %vm1009_vm10, %v1202_v16, 0.0 }
 0x45b   : > { %v3182_v15 = vmul.f32 0.01831564, %v1686_v45  ;;  %v1292_v45 = vsel %vm580_vm2, %v3149_v40, 0.0 }
 0x45c   : > { %1536 = vrot.lane.b32.xlu2 %v3166_v25, %s2687_s20 }
 0x45e   : > { %v1594_v41 = vpop.xlane.xlu2 %1593 }
 0x45f   : > { %v2509_v54 = vpop.eup %2508  ;;  %v1602_v55 = vadd.f32 1e-06, %v1594_v41  ;;  %v1700_v41 = vsel %vm580_vm2, %v3182_v15, 0.0 }
 0x460   : > { %v1108_v60 = vmul.f32 0.6931472, %v2509_v54 }
 0x461   : > { %2510 = vlog2.f32 %v1602_v55  ;;  %1132 = vrot.lane.b32.xlu0 %v2497_v63, %s2687_s20  ;;  %v1022_v55 = vpop.permute.xlu0 %1021 }
 0x462   : > { %v3177_v9 = vsel %vm1009_vm10, %v1108_v60, 0.0 }
 0x466   : > { %v1699_v39 = vpop.xlane.xlu2 %1698 }
 0x467   : > { %v2511_v10 = vpop.eup %2510  ;;  %v1705_v16 = vadd.f32 1e-06, %v1699_v39 }
 0x468   : > { %v1608_v19 = vmul.f32 0.6931472, %v2511_v10 }
 0x469   : > { %2512 = vlog2.f32 %v1705_v16  ;;  %1701 = vadd.xlane.f32.xlu1 %v1700_v41 }
 0x46a   : > { %v3188_v54 = vsel %vm1008_vm9, %v1608_v19, 0.0 }
 0x46b   : > { %4019 = vst [vmem:[#allocation14_spill] sm:$0xff] %v3188_v54 }
 0x46e   : > { %v1801_v60 = vpop.xlane.xlu2 %1800 }
 0x46f   : > { %v2513_v63 = vpop.eup %2512  ;;  %v1807_v0 = vadd.f32 1e-06, %v1801_v60 }
 0x470   : > { %v1712_v48 = vmul.f32 0.6931472, %v2513_v63 }
 0x471   : > { %2514 = vlog2.f32 %v1807_v0  ;;  %1293 = vadd.xlane.f32.xlu1 %v1292_v45  ;;  %v1138_v0 = vsel %vm580_vm2, %v3008_v12, 0.0  ;;  %v1583_v45 = vmul.f32 %v3052_v47, %v3139_v28  ;;  %v1746_v12 = vsel %vm580_vm2, %v3056_v49, 0.0 }
 0x472   : > { %v3194_v39 = vsel %vm1009_vm10, %v1712_v48, 0.0  ;;  %v3196_v10 = vpop.xlane.xlu0 %1005  ;;  %v1440_v49 = vsel %vm580_vm2, %v3080_v62, 0.0  ;;  %v1394_v62 = vsel %vm580_vm2, %v3157_v4, 0.0 }
 0x473   : > { %4020 = vst [vmem:[#allocation15_spill] sm:$0xff] %v3194_v39  ;;  %v3206_v39 = vpop.permute.xlu1 %1738  ;;  %vm1010_vm11 = vcmp.ne.f32.partialorder %v3196_v10, 0.0 }
 0x474   : > { %4021 = vst [vmem:[#allocation16_spill] sm:$0xff] %v3196_v10 }
 0x477   : > { %v2515_v16 = vpop.eup %2514 }
 0x478   : > { %v1814_v41 = vmul.f32 0.6931472, %v2515_v16 }
 0x47a   : > { %v3200_v19 = vsel %vm1009_vm10, %v1814_v41, 0.0  ;;  %v1390_v23 = vpop.xlane.xlu0 %1389  ;;  %v3212_v41 = vmul.f32 1.12535176e-07, %v1583_v45  ;;  %v1033_v45 = vsel %vm580_vm2, %v3064_v52, 0.0  ;;  %v1036_v52 = vsel %vm580_vm2, %v1022_v55, 0.0 }
 0x47b   : > { %4022 = vst [vmem:[#allocation17_spill] sm:$0xff] %v3200_v19  ;;  %v1398_v60 = vadd.f32 1e-06, %v1390_v23  ;;  %v1190_v23 = vsel %vm580_vm2, %v3121_v7, 0.0  ;;  %v3220_v47 = vpop.permute.xlu1 %1330 }
 0x47d   : > { %2516 = vlog2.f32 %v1398_v60  ;;  %v1338_v60 = vsel %vm580_vm2, %v3019_v42, 0.0 }
 0x483   : > { %v2517_v63 = vpop.eup %2516 }
 0x484   : > { %v1404_v48 = vmul.f32 0.6931472, %v2517_v63 }
 0x485   : > { %1139 = vadd.xlane.f32.xlu2 %v1138_v0 }
 0x486   : > { %v3210_v16 = vsel %vm1008_vm9, %v1404_v48, 0.0 }
 0x487   : > { %4023 = vst [vmem:[#allocation18_spill] sm:$0xff] %v3210_v16 }
 0x48a   : > { %1636 = vrot.lane.b32.xlu1 %v3212_v41, %s2687_s20 }
 0x48b   : > { %1191 = vadd.xlane.f32.xlu0 %v1190_v23  ;;  %v3235_v23 = vpop.permute.xlu2 %1230 }
 0x48d   : > { %1747 = vadd.xlane.f32.xlu2 %v1746_v12  ;;  %v1229_v12 = vpop.permute.xlu0 %1228 }
 0x495   : > { %1339 = vadd.xlane.f32.xlu2 %v1338_v60 }
 0x499   : > { %v1098_v63 = vpop.xlane.xlu1 %1097 }
 0x49a   : > { %v1102_v0 = vadd.f32 1e-06, %v1098_v63 }
 0x49c   : > { %2518 = vlog2.f32 %v1102_v0  ;;  %v1584_v0 = vmul.f32 %v3114_v5, %v3166_v25 }
 0x49d   : > { %1034 = vadd.xlane.f32.xlu2 %v1033_v45 }
 0x49e   : > { %v3248_v45 = vmul.f32 1.12535176e-07, %v1584_v0 }
 0x49f   : > { %1740 = vrot.lane.b32.xlu0 %v3182_v15, %s2687_s20 }
 0x4a0   : > { %v1598_v5 = vsel %vm580_vm2, %v3248_v45, 0.0 }
 0x4a2   : > { %v2519_v7 = vpop.eup %2518 }
 0x4a3   : > { %v1110_v48 = vmul.f32 0.6931472, %v2519_v7 }
 0x4a5   : > { %v3233_v42 = vsel %vm1010_vm11, %v1110_v48, 0.0  ;;  %1441 = vadd.xlane.f32.xlu2 %v1440_v49  ;;  %v1635_v49 = vpop.permute.xlu0 %1634 }
 0x4a7   : > { %1332 = vrot.lane.b32.xlu0 %v3149_v40, %s2687_s20  ;;  %v1644_v40 = vsel %vm580_vm2, %v3143_v57, 0.0 }
 0x4ad   : > { %1037 = vadd.xlane.f32.xlu2 %v1036_v52 }
 0x4af   : > { %v1393_v60 = vpop.xlane.xlu2 %1392  ;;  %1534 = vrot.lane.b32.xlu0 %v3139_v28, %s2687_s20 }
 0x4b0   : > { %v1399_v63 = vadd.f32 1e-06, %v1393_v60  ;;  %v1242_v60 = vsel %vm580_vm2, %v1229_v12, 0.0 }
 0x4b2   : > { %2520 = vlog2.f32 %v1399_v63 }
 0x4b4   : > { %1395 = vadd.xlane.f32.xlu1 %v1394_v62 }
 0x4b5   : > { %1645 = vadd.xlane.f32.xlu2 %v1644_v40 }
 0x4b7   : > { %v1495_v55 = vpop.xlane.xlu2 %1494 }
 0x4b8   : > { %v2521_v7 = vpop.eup %2520  ;;  %v1501_v48 = vadd.f32 1e-06, %v1495_v55  ;;  %v1027_v55 = vsel %vm580_vm2, %v3024_v18, 0.0 }
 0x4b9   : > { %v1406_v28 = vmul.f32 0.6931472, %v2521_v7 }
 0x4ba   : > { %2522 = vlog2.f32 %v1501_v48 }
 0x4bb   : > { %v3252_v52 = vsel %vm1009_vm10, %v1406_v28, 0.0  ;;  %v1239_v28 = vsel %vm580_vm2, %v3073_v56, 0.0 }
 0x4bc   : > { %4024 = vst [vmem:[#allocation19_spill] sm:$0xff] %v3252_v52  ;;  %1599 = vadd.xlane.f32.xlu1 %v1598_v5  ;;  %v1788_v5 = vmul.f32 %v3172_v35, %v3182_v15 }
 0x4bd   : > { %1243 = vadd.xlane.f32.xlu2 %v1242_v60  ;;  %v1341_v60 = vsel %vm580_vm2, %v3168_v51, 0.0  ;;  %v1144_v51 = vsel %vm580_vm2, %v3147_v36, 0.0 }
 0x4bf   : > { %v3291_v36 = vpop.permute.xlu2 %1536 }
 0x4c0   : > { %v2523_v57 = vpop.eup %2522  ;;  %v1291_v62 = vpop.xlane.xlu0 %1290 }
 0x4c1   : > { %v1508_v63 = vmul.f32 0.6931472, %v2523_v57  ;;  %v1297_v0 = vadd.f32 1e-06, %v1291_v62  ;;  %v1433_v57 = vpop.permute.xlu1 %1432  ;;  %v3274_v62 = vmul.f32 0.00033546262, %v1788_v5 }
 0x4c3   : > { %v3259_v40 = vsel %vm1009_vm10, %v1508_v63, 0.0  ;;  %2524 = vlog2.f32 %v1297_v0  ;;  %v1802_v56 = vsel %vm580_vm2, %v3274_v62, 0.0  ;;  %v1545_v0 = vsel %vm580_vm2, %v3152_v44, 0.0 }
 0x4c4   : > { %4025 = vst [vmem:[#allocation20_spill] sm:$0xff] %v3259_v40  ;;  %1028 = vadd.xlane.f32.xlu1 %v1027_v55 }
 0x4c9   : > { %v2525_v7 = vpop.eup %2524 }
 0x4ca   : > { %v1304_v48 = vmul.f32 0.6931472, %v2525_v7 }
 0x4cc   : > { %1240 = vadd.xlane.f32.xlu1 %v1239_v28  ;;  %v3267_v12 = vsel %vm1009_vm10, %v1304_v48, 0.0 }
 0x4d3   : > { %v1133_v18 = vpop.permute.xlu0 %1132 }
 0x4d4   : > { %1342 = vadd.xlane.f32.xlu1 %v1341_v60  ;;  %v1147_v63 = vsel %vm580_vm2, %v1133_v18, 0.0  ;;  %v1647_v18 = vsel %vm580_vm2, %v1635_v49, 0.0 }
 0x4d5   : > { %1148 = vadd.xlane.f32.xlu2 %v1147_v63 }
 0x4d9   : > { %1803 = vadd.xlane.f32.xlu0 %v1802_v56 }
 0x4dc   : > { %1546 = vadd.xlane.f32.xlu1 %v1545_v0  ;;  %v1702_v15 = vpop.xlane.xlu1 %1701  ;;  %v1752_v0 = vsel %vm580_vm2, %v3206_v39, 0.0 }
 0x4dd   : > { %v1706_v55 = vadd.f32 1e-06, %v1702_v15  ;;  %v1446_v15 = vsel %vm580_vm2, %v1433_v57, 0.0  ;;  %v1595_v57 = vsel %vm580_vm2, %v3212_v41, 0.0  ;;  %v1099_v41 = vadd.f32 1e-06, %v3012_v50 }
 0x4df   : > { %2526 = vlog2.f32 %v1706_v55 }
 0x4e4   : > { %1145 = vadd.xlane.f32.xlu1 %v1144_v51  ;;  %v1294_v7 = vpop.xlane.xlu1 %1293 }
 0x4e5   : > { %v2527_v48 = vpop.eup %2526  ;;  %v1298_v28 = vadd.f32 1e-06, %v1294_v7 }
 0x4e6   : > { %v1714_v5 = vmul.f32 0.6931472, %v2527_v48 }
 0x4e7   : > { %2528 = vlog2.f32 %v1298_v28 }
 0x4e8   : > { %v3284_v60 = vsel %vm1010_vm11, %v1714_v5, 0.0 }
 0x4e9   : > { %4026 = vst [vmem:[#allocation21_spill] sm:$0xff] %v3284_v60 }
 0x4ec   : > { %1648 = vadd.xlane.f32.xlu1 %v1647_v18 }
 0x4ed   : > { %v2529_v44 = vpop.eup %2528  ;;  %1434 = vrot.lane.b32.xlu0 %v3157_v4, %s2687_s20  ;;  %1838 = vrot.lane.b32.xlu2 %v2997_v2, %s2687_s20 }
 0x4ee   : > { %v1306_v63 = vmul.f32 0.6931472, %v2529_v44 }
 0x4f0   : > { %v3295_v56 = vsel %vm1010_vm11, %v1306_v63, 0.0 }
 0x4f1   : > { %4027 = vst [vmem:[#allocation22_spill] sm:$0xff] %v3295_v56 }
 0x4f4   : > { %1753 = vadd.xlane.f32.xlu1 %v1752_v0 }
 0x4f8   : > { %v1140_v49 = vpop.xlane.xlu2 %1139 }
 0x4fc   : > { %1447 = vadd.xlane.f32.xlu1 %v1446_v15 }
 0x4fe   : > { %v1192_v55 = vpop.xlane.xlu0 %1191 }
 0x4ff   : > { %v1196_v51 = vadd.f32 1e-06, %v1192_v55  ;;  %v3314_v55 = vpop.permute.xlu1 %1636 }
 0x500   : > { %v1748_v4 = vpop.xlane.xlu2 %1747 }
 0x501   : > { %2530 = vlog2.f32 %v1196_v51  ;;  %v1496_v51 = vsel %vm580_vm2, %v3166_v25, 0.0 }
 0x502   : > { %2532 = vlog2.f32 %v1099_v41 }
 0x507   : > { %v2531_v7 = vpop.eup %2530 }
 0x508   : > { %v1340_v48 = vpop.xlane.xlu2 %1339  ;;  %v1204_v28 = vmul.f32 0.6931472, %v2531_v7  ;;  %v2533_v50 = vpop.eup %2532 }
 0x509   : > { %v1350_v19 = vadd.f32 1e-06, %v1340_v48 }
 0x50a   : > { %v3302_v5 = vsel %vm1010_vm11, %v1204_v28, 0.0 }
 0x510   : > { %v3304_v18 = vpop.xlane.xlu2 %1034 }
 0x511   : > { %v1741_v44 = vpop.permute.xlu0 %1740  ;;  %vm1041_vm14 = vcmp.ne.f32.partialorder %v3304_v18, 0.0 }
 0x512   : > { %v1755_v39 = vsel %vm580_vm2, %v1741_v44, 0.0  ;;  %v1193_v44 = vadd.f32 1e-06, %v3044_v43 }
 0x514   : > { %2534 = vlog2.f32 %v1193_v44 }
 0x515   : > { %1836 = vrot.lane.b32.xlu1 %v2978_v31, %s2687_s20 }
 0x516   : > { %1756 = vadd.xlane.f32.xlu2 %v1755_v39 }
 0x517   : > { %1596 = vadd.xlane.f32.xlu0 %v1595_v57  ;;  %v1150_v57 = vadd.f32 1e-06, %v1140_v49 }
 0x518   : > { %v1442_v63 = vpop.xlane.xlu2 %1441 }
 0x519   : > { %v1333_v0 = vpop.permute.xlu0 %1332  ;;  %v1452_v25 = vadd.f32 1e-06, %v1442_v63  ;;  %v1104_v63 = vmul.f32 0.6931472, %v2533_v50 }
 0x51a   : > { %v1347_v15 = vsel %vm580_vm2, %v1333_v0, 0.0  ;;  %v1758_v0 = vadd.f32 1e-06, %v1748_v4  ;;  %v2535_v43 = vpop.eup %2534 }
 0x51b   : > { %v1198_v44 = vmul.f32 0.6931472, %v2535_v43 }
 0x51d   : > { %1842 = vrot.lane.b32.xlu1 %v3274_v62, %s2687_s20 }
 0x51e   : > { %1348 = vadd.xlane.f32.xlu2 %v1347_v15 }
 0x51f   : > { %1497 = vadd.xlane.f32.xlu0 %v1496_v51 }
 0x520   : > { %v3318_v7 = vpop.xlane.xlu2 %1037 }
 0x521   : > { %v1535_v28 = vpop.permute.xlu0 %1534  ;;  %vm1042_vm15 = vcmp.ne.f32.partialorder %v3318_v7, 0.0 }
 0x522   : > { %v1548_v39 = vsel %vm580_vm2, %v1535_v28, 0.0 }
 0x526   : > { %1549 = vadd.xlane.f32.xlu2 %v1548_v39 }
 0x527   : > { %v1396_v22 = vpop.xlane.xlu1 %1395 }
 0x528   : > { %v1400_v60 = vadd.f32 1e-06, %v1396_v22  ;;  %v1646_v15 = vpop.xlane.xlu2 %1645 }
 0x529   : > { %v1656_v51 = vadd.f32 1e-06, %v1646_v15  ;;  %v1111_v15 = vsel %vm1007_vm12, %v1104_v63, 0.0 }
 0x52a   : > { %2536 = vlog2.f32 %v1400_v60 }
 0x52b   : > { %2538 = vlog2.f32 %v1150_v57 }
 0x52c   : > { %2540 = vlog2.f32 %v1758_v0 }
 0x52d   : > { %2542 = vlog2.f32 %v1350_v19 }
 0x52e   : > { %2544 = vlog2.f32 %v1452_v25 }
 0x52f   : > { %2546 = vlog2.f32 %v1656_v51  ;;  %v1600_v28 = vpop.xlane.xlu1 %1599 }
 0x530   : > { %v2537_v49 = vpop.eup %2536  ;;  %v1604_v39 = vadd.f32 1e-06, %v1600_v28  ;;  %v1244_v56 = vpop.xlane.xlu2 %1243  ;;  %v1205_v28 = vsel %vm1007_vm12, %v1198_v44, 0.0 }
 0x531   : > { %v2539_v41 = vpop.eup %2538  ;;  %v1408_v4 = vmul.f32 0.6931472, %v2537_v49  ;;  %v1250_v22 = vadd.f32 1e-06, %v1244_v56  ;;  %v3333_v56 = vld [vmem:[%s3997_s6 + $0x80] sm:$0xff] }
 0x532   : > { %v2541_v40 = vpop.eup %2540  ;;  %2548 = vlog2.f32 %v1604_v39  ;;  %v1155_v0 = vmul.f32 0.6931472, %v2539_v41 }
 0x533   : > { %v2543_v48 = vpop.eup %2542  ;;  %v3325_v60 = vsel %vm1010_vm11, %v1408_v4, 0.0  ;;  %2550 = vlog2.f32 %v1250_v22  ;;  %1638 = vrot.lane.b32.xlu0 %v3248_v45, %s2687_s20  ;;  %v1763_v25 = vmul.f32 0.6931472, %v2541_v40  ;;  %v2384_v45 = vld [vmem:[%s3997_s6 + $0x90] sm:$0xff]  ;;  %v2386_v40 = vld [vmem:[%s3997_s6 + $0xa0] sm:$0xff] }
 0x534   : > { %4028 = vst [vmem:[#allocation23_spill] sm:$0xff] %v3325_v60  ;;  %v2545_v19 = vpop.eup %2544  ;;  %v1355_v49 = vmul.f32 0.6931472, %v2543_v48  ;;  %v1118_v48 = vmul.f32 %v3333_v56, %v1111_v15 }
 0x535   : > { %v2547_v57 = vpop.eup %2546  ;;  %v1457_v51 = vmul.f32 0.6931472, %v2545_v19 }
 0x536   : > { %v1661_v39 = vmul.f32 0.6931472, %v2547_v57 }
 0x537   : > { %v3337_v50 = vpop.xlane.xlu1 %1028 }
 0x538   : > { %v2549_v43 = vpop.eup %2548  ;;  %vm1039_vm13 = vcmp.ne.f32.partialorder %v3337_v50, 0.0 }
 0x539   : > { %v2551_v41 = vpop.eup %2550  ;;  %v1612_v4 = vmul.f32 0.6931472, %v2549_v43  ;;  %v1162_v22 = vsel %vm1039_vm13, %v1155_v0, 0.0  ;;  %v3352_v63 = vsel %vm1039_vm13, %v1763_v25, 0.0  ;;  %v3356_v19 = vsel %vm1039_vm13, %v1457_v51, 0.0 }
 0x53a   : > { %4029 = vst [vmem:[#allocation24_spill] sm:$0xff] %v3352_v63  ;;  %v1257_v44 = vmul.f32 0.6931472, %v2551_v41  ;;  %v1169_v57 = vmul.f32 %v2384_v45, %v1162_v22  ;;  %v3366_v0 = vsel %vm1039_vm13, %v1355_v49, 0.0  ;;  %v3370_v25 = vsel %vm1039_vm13, %v1661_v39, 0.0 }
 0x53b   : > { %v3362_v43 = vsel %vm1010_vm11, %v1612_v4, 0.0  ;;  %4031 = vst [vmem:[#allocation26_spill] sm:$0xff] %v3370_v25  ;;  %v1212_v51 = vmul.f32 %v2386_v40, %v1205_v28  ;;  %v3385_v28 = vld [vmem:[%s3997_s6 + $0x98] sm:$0xff] }
 0x53c   : > { %4030 = vst [vmem:[#allocation25_spill] sm:$0xff] %v3362_v43  ;;  %v1262_v15 = vsel %vm1041_vm14, %v1257_v44, 0.0  ;;  %v1173_v41 = vadd.f32 %v1169_v57, %v1118_v48  ;;  %v3391_v44 = vld [vmem:[%s3997_s6 + $0x88] sm:$0xff] }
 0x53e   : > { %v3374_v22 = vadd.f32 %v1212_v51, %v1173_v41  ;;  %v3401_v41 = vld [vmem:[%s3997_s6 + $0xa8] sm:$0xff] }
 0x53f   : > { %v3376_v60 = vpop.xlane.xlu1 %1240 }
 0x547   : > { %v3378_v52 = vpop.xlane.xlu1 %1342 }
 0x548   : > { %v1149_v4 = vpop.xlane.xlu2 %1148 }
 0x549   : > { %v1153_v43 = vadd.f32 1e-06, %v1149_v4 }
 0x54b   : > { %2552 = vlog2.f32 %v1153_v43 }
 0x54c   : > { %v1804_v49 = vpop.xlane.xlu0 %1803 }
 0x54d   : > { %v1808_v1 = vadd.f32 1e-06, %v1804_v49 }
 0x54f   : > { %v3380_v8 = vpop.xlane.xlu1 %1546  ;;  %2554 = vlog2.f32 %v1808_v1  ;;  %v1121_v1 = vmul.f32 %v3391_v44, %v3233_v42 }
 0x551   : > { %v2553_v39 = vpop.eup %2552 }
 0x552   : > { %v1161_v48 = vmul.f32 0.6931472, %v2553_v39  ;;  %v1215_v39 = vmul.f32 %v3401_v41, %v3302_v5 }
 0x554   : > { %v1165_v57 = vsel %vm1042_vm15, %v1161_v48, 0.0 }
 0x555   : > { %v2555_v43 = vpop.eup %2554  ;;  %v1172_v51 = vmul.f32 %v3385_v28, %v1165_v57  ;;  %v1030_v57 = vsel %vm580_vm2, %v3039_v32, 0.0  ;;  %v3423_v32 = vld [vmem:[%s3997_s6 + $0xb0] sm:$0xff] }
 0x556   : > { %v1816_v4 = vmul.f32 0.6931472, %v2555_v43 }
 0x557   : > { %v1146_v49 = vpop.xlane.xlu1 %1145  ;;  %v1176_v54 = vadd.f32 %v1172_v51, %v1121_v1  ;;  %v1236_v51 = vsel %vm580_vm2, %v3015_v17, 0.0 }
 0x558   : > { %v1152_v14 = vadd.f32 1e-06, %v1146_v49  ;;  %v3407_v48 = vsel %vm1010_vm11, %v1816_v4, 0.0  ;;  %v1214_v4 = vmul.f32 %v2386_v40, %v3164_v21  ;;  %v1141_v21 = vsel %vm580_vm2, %v3068_v53, 0.0 }
 0x559   : > { %v3409_v42 = vadd.f32 %v1215_v39, %v1176_v54  ;;  %v1269_v39 = vmul.f32 %v3423_v32, %v1262_v15  ;;  %v1542_v53 = vsel %vm580_vm2, %v3084_v3, 0.0 }
 0x55a   : > { %2556 = vlog2.f32 %v1152_v14  ;;  %v1120_v14 = vmul.f32 %v3333_v56, %v3177_v9  ;;  %v3432_v9 = vld [vmem:[%s3997_s6 + $0xc0] sm:$0xff] }
 0x55b   : > { %v1316_v56 = vmul.f32 %v3432_v9, %v3267_v12  ;;  %v1749_v12 = vsel %vm580_vm2, %v3097_v37, 0.0 }
 0x55d   : > { %1031 = vadd.xlane.f32.xlu0 %v1030_v57 }
 0x55f   : > { %v3413_v63 = vpop.xlane.xlu1 %1648  ;;  %v1435_v25 = vpop.permute.xlu0 %1434 }
 0x560   : > { %v2557_v43 = vpop.eup %2556  ;;  %v1449_v5 = vsel %vm580_vm2, %v1435_v25, 0.0 }
 0x561   : > { %v1159_v16 = vmul.f32 0.6931472, %v2557_v43  ;;  %1450 = vadd.xlane.f32.xlu2 %v1449_v5 }
 0x563   : > { %v1164_v1 = vsel %vm1041_vm14, %v1159_v16, 0.0 }
 0x564   : > { %v1171_v54 = vmul.f32 %v2384_v45, %v1164_v1 }
 0x565   : > { %1237 = vadd.xlane.f32.xlu0 %v1236_v51 }
 0x566   : > { %v1175_v49 = vadd.f32 %v1171_v54, %v1120_v14 }
 0x567   : > { %v1754_v25 = vpop.xlane.xlu1 %1753 }
 0x568   : > { %v1218_v16 = vadd.f32 %v1214_v4, %v1175_v49  ;;  %v1760_v57 = vadd.f32 1e-06, %v1754_v25  ;;  %v1839_v4 = vpop.permute.xlu2 %1838  ;;  %v1443_v49 = vsel %vm580_vm2, %v3134_v20, 0.0  ;;  %v1245_v20 = vsel %vm580_vm2, %v3235_v23, 0.0 }
 0x569   : > { %v1650_v23 = vsel %vm580_vm2, %v3314_v55, 0.0 }
 0x56a   : > { %2558 = vlog2.f32 %v1760_v57  ;;  %v1273_v45 = vadd.f32 %v1269_v39, %v1218_v16  ;;  %v1344_v57 = vsel %vm580_vm2, %v3220_v47, 0.0 }
 0x56c   : > { %v3436_v17 = vadd.f32 %v1316_v56, %v1273_v45 }
 0x56d   : > { %1142 = vadd.xlane.f32.xlu0 %v1141_v21 }
 0x56f   : > { %v1448_v40 = vpop.xlane.xlu1 %1447 }
 0x570   : > { %v2559_v15 = vpop.eup %2558  ;;  %v1454_v43 = vadd.f32 1e-06, %v1448_v40 }
 0x571   : > { %v1767_v5 = vmul.f32 0.6931472, %v2559_v15 }
 0x572   : > { %2560 = vlog2.f32 %v1454_v43 }
 0x573   : > { %v3442_v1 = vsel %vm1041_vm14, %v1767_v5, 0.0 }
 0x575   : > { %1750 = vadd.xlane.f32.xlu0 %v1749_v12 }
 0x578   : > { %v2561_v14 = vpop.eup %2560 }
 0x579   : > { %v1461_v54 = vmul.f32 0.6931472, %v2561_v14 }
 0x57b   : > { %v3448_v51 = vsel %vm1041_vm14, %v1461_v54, 0.0 }
 0x57d   : > { %1543 = vadd.xlane.f32.xlu0 %v1542_v53 }
 0x585   : > { %1444 = vadd.xlane.f32.xlu0 %v1443_v49 }
 0x589   : > { %v1757_v25 = vpop.xlane.xlu2 %1756 }
 0x58a   : > { %v1761_v39 = vadd.f32 1e-06, %v1757_v25  ;;  %v1597_v16 = vpop.xlane.xlu0 %1596 }
 0x58b   : > { %v1603_v37 = vadd.f32 1e-06, %v1597_v16 }
 0x58c   : > { %2562 = vlog2.f32 %v1761_v39 }
 0x58d   : > { %2564 = vlog2.f32 %v1603_v37  ;;  %1345 = vadd.xlane.f32.xlu0 %v1344_v57 }
 0x591   : > { %v1349_v56 = vpop.xlane.xlu2 %1348 }
 0x592   : > { %v2563_v45 = vpop.eup %2562  ;;  %v1353_v21 = vadd.f32 1e-06, %v1349_v56  ;;  %v1498_v3 = vpop.xlane.xlu0 %1497 }
 0x593   : > { %v2565_v40 = vpop.eup %2564  ;;  %v1769_v15 = vmul.f32 0.6931472, %v2563_v45  ;;  %v1502_v43 = vadd.f32 1e-06, %v1498_v3  ;;  %v1551_v45 = vsel %vm580_vm2, %v3291_v36, 0.0 }
 0x594   : > { %v1610_v5 = vmul.f32 0.6931472, %v2565_v40  ;;  %2566 = vlog2.f32 %v1353_v21  ;;  %v1837_v40 = vpop.permute.xlu1 %1836 }
 0x595   : > { %v3460_v12 = vsel %vm1042_vm15, %v1769_v15, 0.0  ;;  %2568 = vlog2.f32 %v1502_v43  ;;  %1246 = vadd.xlane.f32.xlu0 %v1245_v20  ;;  %v1851_v15 = vsel %vm580_vm2, %v1839_v4, 0.0  ;;  %v1889_v20 = vmul.f32 %v2952_v33, %v3089_v34 }
 0x596   : > { %v3464_v47 = vsel %vm1009_vm10, %v1610_v5, 0.0  ;;  %v1351_v4 = vadd.f32 1e-06, %v3378_v52 }
 0x597   : > { %v3489_v36 = vmul.f32 6.1442124e-06, %v1889_v20 }
 0x599   : > { %v1550_v14 = vpop.xlane.xlu2 %1549 }
 0x59a   : > { %v2567_v54 = vpop.eup %2566  ;;  %v1556_v53 = vadd.f32 1e-06, %v1550_v14  ;;  %v1901_v14 = vsel %vm580_vm2, %v3489_v36, 0.0 }
 0x59b   : > { %v2569_v49 = vpop.eup %2568  ;;  %v1361_v25 = vmul.f32 0.6931472, %v2567_v54  ;;  %v1249_v54 = vadd.f32 1e-06, %v3376_v60 }
 0x59c   : > { %v1510_v39 = vmul.f32 0.6931472, %v2569_v49  ;;  %2570 = vlog2.f32 %v1556_v53  ;;  %v1843_v43 = vpop.permute.xlu1 %1842  ;;  %v1555_v53 = vadd.f32 1e-06, %v3380_v8  ;;  %v1657_v49 = vadd.f32 1e-06, %v3413_v63 }
 0x59d   : > { %v3470_v16 = vsel %vm1042_vm15, %v1361_v25, 0.0  ;;  %1651 = vadd.xlane.f32.xlu0 %v1650_v23  ;;  %v1857_v5 = vsel %vm580_vm2, %v1843_v43, 0.0  ;;  %2572 = vlog2.f32 %v1249_v54  ;;  %v1888_v8 = vmul.f32 %v2990_v58, %v2997_v2 }
 0x59e   : > { %v3474_v37 = vsel %vm1010_vm11, %v1510_v39, 0.0  ;;  %2574 = vlog2.f32 %v1351_v4  ;;  %v1295_v43 = vadd.f32 1e-06, %v3050_v46  ;;  %v1397_v2 = vadd.f32 1e-06, %v3078_v61 }
 0x59f   : > { %2576 = vlog2.f32 %v1555_v53  ;;  %v1499_v54 = vadd.f32 1e-06, %v3180_v11  ;;  %v1848_v61 = vsel %vm580_vm2, %v1837_v40, 0.0  ;;  %v3538_v40 = vld [vmem:[%s3997_s6 + $0xd0] sm:$0xff] }
 0x5a0   : > { %2578 = vlog2.f32 %v1657_v49 }
 0x5a1   : > { %2580 = vlog2.f32 %v1295_v43 }
 0x5a2   : > { %v2571_v57 = vpop.eup %2570  ;;  %2582 = vlog2.f32 %v1397_v2  ;;  %v3545_v2 = vld [vmem:[%s3997_s6 + $0xe0] sm:$0xff] }
 0x5a3   : > { %v1563_v56 = vmul.f32 0.6931472, %v2571_v57  ;;  %v2573_v25 = vpop.eup %2572 }
 0x5a4   : > { %v1255_v57 = vmul.f32 0.6931472, %v2573_v25 }
 0x5a5   : > { %v3480_v21 = vsel %vm1041_vm14, %v1563_v56, 0.0  ;;  %v1639_v3 = vpop.permute.xlu0 %1638  ;;  %1552 = vadd.xlane.f32.xlu0 %v1551_v45 }
 0x5a6   : > { %v1653_v55 = vsel %vm580_vm2, %v1639_v3, 0.0 }
 0x5a7   : > { %1654 = vadd.xlane.f32.xlu2 %v1653_v55 }
 0x5af   : > { %1852 = vadd.xlane.f32.xlu2 %v1851_v15 }
 0x5b7   : > { %1858 = vadd.xlane.f32.xlu2 %v1857_v5  ;;  %v3519_v5 = vmul.f32 6.1442124e-06, %v1888_v8 }
 0x5b9   : > { %1840 = vrot.lane.b32.xlu0 %v3089_v34, %s2687_s20  ;;  %v2575_v34 = vpop.eup %2574 }
 0x5ba   : > { %v2577_v39 = vpop.eup %2576  ;;  %v1357_v56 = vmul.f32 0.6931472, %v2575_v34 }
 0x5bb   : > { %v2579_v23 = vpop.eup %2578  ;;  %v1561_v45 = vmul.f32 0.6931472, %v2577_v39 }
 0x5bc   : > { %v1663_v3 = vmul.f32 0.6931472, %v2579_v23  ;;  %v2581_v4 = vpop.eup %2580  ;;  %v1887_v23 = vmul.f32 %v2934_v13, %v2978_v31 }
 0x5bd   : > { %v2583_v53 = vpop.eup %2582  ;;  %v1300_v49 = vmul.f32 0.6931472, %v2581_v4 }
 0x5be   : > { %v1402_v11 = vmul.f32 0.6931472, %v2583_v53  ;;  %v3533_v8 = vmul.f32 6.1442124e-06, %v1887_v23 }
 0x5bf   : > { %1902 = vadd.xlane.f32.xlu2 %v1901_v14 }
 0x5d0   : > { %v3497_v55 = vpop.xlane.xlu0 %1031 }
 0x5d1   : > { %vm1040_vm0 = vcmp.ne.f32.partialorder %v3497_v55, 0.0 }
 0x5d2   : > { %v3504_v52 = vsel %vm1040_vm0, %v1255_v57, 0.0  ;;  %v3508_v60 = vsel %vm1040_vm0, %v1357_v56, 0.0  ;;  %v3512_v63 = vsel %vm1040_vm0, %v1561_v45, 0.0  ;;  %v3516_v15 = vsel %vm1040_vm0, %v1663_v3, 0.0 }
 0x5d3   : > { %v1307_v57 = vsel %vm1007_vm12, %v1300_v49, 0.0  ;;  %v1369_v49 = vmul.f32 %v3538_v40, %v3366_v0  ;;  %v3565_v0 = vld [vmem:[%s3997_s6 + $0x100] sm:$0xff] }
 0x5d4   : > { %v1314_v31 = vmul.f32 %v3432_v9, %v1307_v57 }
 0x5d7   : > { %1940 = vrot.lane.b32.xlu2 %v3519_v5, %s2687_s20 }
 0x5d8   : > { %v1238_v20 = vpop.xlane.xlu0 %1237 }
 0x5d9   : > { %v1248_v14 = vadd.f32 1e-06, %v1238_v20  ;;  %v1409_v20 = vsel %vm1007_vm12, %v1402_v11, 0.0 }
 0x5db   : > { %2584 = vlog2.f32 %v1248_v14 }
 0x5dc   : > { %2586 = vlog2.f32 %v1499_v54 }
 0x5e0   : > { %v1143_v25 = vpop.xlane.xlu0 %1142 }
 0x5e1   : > { %v2585_v46 = vpop.eup %2584  ;;  %v1151_v34 = vadd.f32 1e-06, %v1143_v25  ;;  %v1895_v25 = vsel %vm580_vm2, %v3533_v8, 0.0 }
 0x5e2   : > { %v1253_v39 = vmul.f32 0.6931472, %v2585_v46  ;;  %v2587_v45 = vpop.eup %2586  ;;  %v1890_v46 = vmul.f32 %v3172_v35, %v3274_v62  ;;  %v1119_v62 = vmul.f32 %v3391_v44, %v3036_v29 }
 0x5e3   : > { %2588 = vlog2.f32 %v1151_v34  ;;  %1849 = vadd.xlane.f32.xlu0 %v1848_v61  ;;  %v1416_v34 = vmul.f32 %v3545_v2, %v1409_v20 }
 0x5e4   : > { %v1260_v56 = vsel %vm1039_vm13, %v1253_v39, 0.0  ;;  %v1601_v39 = vadd.f32 1e-06, %v3106_v30 }
 0x5e5   : > { %v1267_v3 = vmul.f32 %v3423_v32, %v1260_v56  ;;  %v1504_v32 = vmul.f32 0.6931472, %v2587_v45  ;;  %v1703_v45 = vadd.f32 1e-06, %v3042_v38 }
 0x5e7   : > { %v1271_v43 = vadd.f32 %v1267_v3, %v3374_v22  ;;  %v3554_v22 = vld [vmem:[%s3997_s6 + $0xf0] sm:$0xff]  ;;  %v1511_v23 = vsel %vm1007_vm12, %v1504_v32, 0.0  ;;  %v1213_v3 = vmul.f32 %v3401_v41, %v3048_v27 }
 0x5e8   : > { %v1751_v14 = vpop.xlane.xlu0 %1750  ;;  %v1471_v30 = vmul.f32 %v3554_v22, %v3356_v19  ;;  %v1518_v29 = vmul.f32 %v3565_v0, %v1511_v23 }
 0x5e9   : > { %v2589_v54 = vpop.eup %2588  ;;  %v1318_v4 = vadd.f32 %v1314_v31, %v1271_v43  ;;  %v1759_v53 = vadd.f32 1e-06, %v1751_v14  ;;  %v3579_v31 = vmul.f32 6.1442124e-06, %v1890_v46  ;;  %v3584_v43 = vld [vmem:[%s3997_s6 + $0xb8] sm:$0xff] }
 0x5ea   : > { %v1157_v9 = vmul.f32 0.6931472, %v2589_v54  ;;  %v1268_v14 = vmul.f32 %v3584_v43, %v3504_v52  ;;  %v3607_v52 = vld [vmem:[%s3997_s6 + $0xd8] sm:$0xff] }
 0x5eb   : > { %2590 = vlog2.f32 %v1759_v53  ;;  %1896 = vadd.xlane.f32.xlu0 %v1895_v25  ;;  %v1373_v61 = vadd.f32 %v1369_v49, %v1318_v4  ;;  %v1904_v4 = vsel %vm580_vm2, %v3579_v31, 0.0  ;;  %v1805_v53 = vadd.f32 1e-06, %v3075_v59  ;;  %v3602_v25 = vld [vmem:[%s3997_s6 + $0xe8] sm:$0xff] }
 0x5ec   : > { %v1163_v57 = vsel %vm1040_vm0, %v1157_v9, 0.0  ;;  %2592 = vlog2.f32 %v1601_v39  ;;  %v4032_v39 = vld [vmem:[#allocation18_spill] sm:$0xff] }
 0x5ed   : > { %v1170_v11 = vmul.f32 %v3385_v28, %v1163_v57  ;;  %v1420_v56 = vadd.f32 %v1416_v34, %v1373_v61  ;;  %v3590_v28 = vld [vmem:[%s3997_s6 + $0xc8] sm:$0xff]  ;;  %2594 = vlog2.f32 %v1703_v45  ;;  %v1417_v61 = vmul.f32 %v3602_v25, %v4032_v39 }
 0x5ee   : > { %v1315_v49 = vmul.f32 %v3590_v28, %v3118_v6  ;;  %v1370_v6 = vmul.f32 %v3607_v52, %v3508_v60  ;;  %v4033_v39 = vld [vmem:[#allocation26_spill] sm:$0xff] }
 0x5ef   : > { %v1174_v44 = vadd.f32 %v1170_v11, %v1119_v62  ;;  %v1475_v19 = vadd.f32 %v1471_v30, %v1420_v56 }
 0x5f0   : > { %v1544_v38 = vpop.xlane.xlu0 %1543 }
 0x5f1   : > { %v2591_v20 = vpop.eup %2590  ;;  %v1217_v27 = vadd.f32 %v1213_v3, %v1174_v44  ;;  %v1554_v41 = vadd.f32 1e-06, %v1544_v38  ;;  %v1522_v32 = vadd.f32 %v1518_v29, %v1475_v19  ;;  %v3620_v44 = vld [vmem:[%s3997_s6 + $0x120] sm:$0xff]  ;;  %v3627_v19 = vld [vmem:[%s3997_s6 + $0x110] sm:$0xff] }
 0x5f2   : > { %v1765_v54 = vmul.f32 0.6931472, %v2591_v20  ;;  %v2593_v59 = vpop.eup %2592 }
 0x5f3   : > { %2596 = vlog2.f32 %v1554_v41  ;;  %1905 = vadd.xlane.f32.xlu0 %v1904_v4  ;;  %v1272_v9 = vadd.f32 %v1268_v14, %v1217_v27  ;;  %v2595_v57 = vpop.eup %2594  ;;  %v1606_v62 = vmul.f32 0.6931472, %v2593_v59  ;;  %v3635_v41 = vld [vmem:[%s3997_s6 + $0x130] sm:$0xff]  ;;  %v3641_v4 = vld [vmem:[%s3997_s6 + $0x60] sm:$0xff] }
 0x5f4   : > { %v3611_v46 = vsel %vm1040_vm0, %v1765_v54, 0.0  ;;  %2598 = vlog2.f32 %v1805_v53  ;;  %v1708_v29 = vmul.f32 0.6931472, %v2595_v57 }
 0x5f5   : > { %v1319_v34 = vadd.f32 %v1315_v49, %v1272_v9  ;;  %v1613_v60 = vsel %vm1007_vm12, %v1606_v62, 0.0 }
 0x5f6   : > { %v1620_v14 = vmul.f32 %v3620_v44, %v1613_v60  ;;  %v1715_v53 = vsel %vm1007_vm12, %v1708_v29, 0.0  ;;  %v4034_v60 = vld [vmem:[#allocation24_spill] sm:$0xff] }
 0x5f7   : > { %v1374_v23 = vadd.f32 %v1370_v6, %v1319_v34  ;;  %v1722_v57 = vmul.f32 %v3641_v4, %v1715_v53 }
 0x5f8   : > { %v1445_v30 = vpop.xlane.xlu0 %1444 }
 0x5f9   : > { %v2597_v11 = vpop.eup %2596  ;;  %v1453_v56 = vadd.f32 1e-06, %v1445_v30  ;;  %v1421_v45 = vadd.f32 %v1417_v61, %v1374_v23  ;;  %v1675_v61 = vmul.f32 %v3635_v41, %v4033_v39  ;;  %v3656_v30 = vld [vmem:[%s3997_s6 + $0x40] sm:$0xff] }
 0x5fa   : > { %v1559_v3 = vmul.f32 0.6931472, %v2597_v11  ;;  %v2599_v20 = vpop.eup %2598 }
 0x5fb   : > { %2600 = vlog2.f32 %v1453_v56  ;;  %v1810_v49 = vmul.f32 0.6931472, %v2599_v20  ;;  %v3663_v56 = vld [vmem:[%s3997_s6 + $0x108] sm:$0xff] }
 0x5fc   : > { %v1566_v38 = vsel %vm1039_vm13, %v1559_v3, 0.0  ;;  %v3668_v3 = vld [vmem:[%s3997_s6 + $0xf8] sm:$0xff] }
 0x5fd   : > { %v1573_v27 = vmul.f32 %v3627_v19, %v1566_v38  ;;  %v1817_v11 = vsel %vm1007_vm12, %v1810_v49, 0.0  ;;  %v4035_v49 = vld [vmem:[#allocation13_spill] sm:$0xff] }
 0x5fe   : > { %v1824_v53 = vmul.f32 %v3656_v30, %v1817_v11 }
 0x5ff   : > { %v1577_v54 = vadd.f32 %v1573_v27, %v1522_v32  ;;  %v3650_v32 = vld [vmem:[%s3997_s6 + $0x70] sm:$0xff] }
 0x600   : > { %v1346_v9 = vpop.xlane.xlu0 %1345  ;;  %v1777_v38 = vmul.f32 %v3650_v32, %v4034_v60 }
 0x601   : > { %v2601_v59 = vpop.eup %2600  ;;  %v1352_v34 = vadd.f32 1e-06, %v1346_v9  ;;  %v1624_v6 = vadd.f32 %v1620_v14, %v1577_v54  ;;  %v3678_v14 = vld [vmem:[%s3997_s6 + $0x118] sm:$0xff]  ;;  %v1451_v54 = vpop.xlane.xlu2 %1450  ;;  %v1519_v9 = vmul.f32 %v3663_v56, %v4035_v49 }
 0x602   : > { %v1459_v23 = vmul.f32 0.6931472, %v2601_v59 }
 0x603   : > { %2602 = vlog2.f32 %v1352_v34  ;;  %v1679_v62 = vadd.f32 %v1675_v61, %v1624_v6  ;;  %v3688_v6 = vld [vmem:[%s3997_s6 + $0x128] sm:$0xff]  ;;  %v1574_v61 = vmul.f32 %v3678_v14, %v3512_v63 }
 0x604   : > { %v1465_v29 = vsel %vm1040_vm0, %v1459_v23, 0.0  ;;  %v3704_v63 = vld [vmem:[%s3997_s6 + $0x68] sm:$0xff] }
 0x605   : > { %v1472_v20 = vmul.f32 %v3668_v3, %v1465_v29  ;;  %v1726_v27 = vadd.f32 %v1722_v57, %v1679_v62  ;;  %v1455_v57 = vadd.f32 1e-06, %v1451_v54 }
 0x607   : > { %1942 = vrot.lane.b32.xlu0 %v3489_v36, %s2687_s20  ;;  %v1476_v59 = vadd.f32 %v1472_v20, %v1421_v45  ;;  %v1781_v34 = vadd.f32 %v1777_v38, %v1726_v27  ;;  %v3697_v45 = vld [vmem:[%s3997_s6 + $0x138] sm:$0xff]  ;;  %v4037_v38 = vld [vmem:[#allocation14_spill] sm:$0xff] }
 0x608   : > { %v1247_v39 = vpop.xlane.xlu0 %1246  ;;  %v1621_v20 = vmul.f32 %v3688_v6, %v4037_v38 }
 0x609   : > { %v2603_v23 = vpop.eup %2602  ;;  %v1251_v62 = vadd.f32 1e-06, %v1247_v39  ;;  %v1523_v11 = vadd.f32 %v1519_v9, %v1476_v59  ;;  %v3692_v29 = vadd.f32 %v1824_v53, %v1781_v34  ;;  %v1676_v9 = vmul.f32 %v3697_v45, %v3516_v15  ;;  %v4038_v59 = vld [vmem:[#allocation6_spill] sm:$0xff]  ;;  %v4039_v39 = vld [vmem:[#allocation11_spill] sm:$0xff] }
 0x60a   : > { %v1359_v60 = vmul.f32 0.6931472, %v2603_v23  ;;  %v2421_v34 = vadd.f32 -1.0, %v4038_v59  ;;  %v3717_v23 = vld [vmem:[%s3997_s6 + $0x48] sm:$0xff]  ;;  %v1473_v15 = vmul.f32 %v3554_v22, %v3448_v51 }
 0x60b   : > { %4036 = vst [vmem:[#allocation18_spill] sm:$0xff] %v3692_v29  ;;  %2604 = vlog2.f32 %v1251_v62  ;;  %v1578_v27 = vadd.f32 %v1574_v61, %v1523_v11  ;;  %v1723_v61 = vmul.f32 %v3704_v63, %v4039_v39  ;;  %v4040_v62 = vld [vmem:[#allocation19_spill] sm:$0xff]  ;;  %v4042_v39 = vld [vmem:[#allocation20_spill] sm:$0xff] }
 0x60c   : > { %v1364_v54 = vsel %vm1041_vm14, %v1359_v60, 0.0  ;;  %2606 = vlog2.f32 %v1455_v57  ;;  %v1418_v11 = vmul.f32 %v3545_v2, %v4040_v62  ;;  %v3729_v60 = vld [vmem:[%s3997_s6 + $0x78] sm:$0xff]  ;;  %v1520_v62 = vmul.f32 %v3565_v0, %v4042_v39 }
 0x60d   : > { %v1371_v53 = vmul.f32 %v3538_v40, %v1364_v54  ;;  %v1625_v49 = vadd.f32 %v1621_v20, %v1578_v27  ;;  %v1990_v20 = vmul.f32 %v2990_v58, %v3519_v5 }
 0x60f   : > { %v1375_v57 = vadd.f32 %v1371_v53, %v3436_v17  ;;  %1944 = vrot.lane.b32.xlu0 %v3579_v31, %s2687_s20  ;;  %v1680_v40 = vadd.f32 %v1676_v9, %v1625_v49  ;;  %v1778_v17 = vmul.f32 %v3729_v60, %v3611_v46  ;;  %v2095_v49 = vmul.f32 -500000.0, %v2421_v34  ;;  %v4041_v9 = vld [vmem:[#allocation12_spill] sm:$0xff] }
 0x610   : > { %v1652_v38 = vpop.xlane.xlu0 %1651  ;;  %v1825_v51 = vmul.f32 %v3717_v23, %v4041_v9  ;;  %v3741_v29 = vmul.f32 1.12535176e-07, %v1990_v20  ;;  %v1575_v46 = vmul.f32 %v3627_v19, %v3480_v21  ;;  %v4044_v21 = vld [vmem:[#allocation10_spill] sm:$0xff] }
 0x611   : > { %v2605_v27 = vpop.eup %2604  ;;  %v1422_v2 = vadd.f32 %v1418_v11, %v1375_v57  ;;  %v1658_v54 = vadd.f32 1e-06, %v1652_v38  ;;  %v1727_v53 = vadd.f32 %v1723_v61, %v1680_v40  ;;  %v2099_v40 = vmul.f32 %v2421_v34, %v2095_v49  ;;  %v4045_v49 = vld [vmem:[#allocation23_spill] sm:$0xff] }
 0x612   : > { %v1259_v22 = vmul.f32 0.6931472, %v2605_v27  ;;  %v2607_v59 = vpop.eup %2606  ;;  %v4043_v27 = vld [vmem:[#allocation22_spill] sm:$0xff]  ;;  %v2423_v19 = vadd.f32 -1.0, %v4044_v21  ;;  %v1372_v34 = vmul.f32 %v3607_v52, %v3470_v16  ;;  %v1419_v9 = vmul.f32 %v3602_v25, %v4045_v49 }
 0x613   : > { %v1477_v10 = vadd.f32 %v1473_v15, %v1422_v2  ;;  %2608 = vlog2.f32 %v1658_v54  ;;  %v1782_v26 = vadd.f32 %v1778_v17, %v1727_v53  ;;  %v1463_v38 = vmul.f32 0.6931472, %v2607_v59 }
 0x614   : > { %v1263_v58 = vsel %vm1042_vm15, %v1259_v22, 0.0  ;;  %v1317_v0 = vmul.f32 %v3590_v28, %v4043_v27  ;;  %v1622_v15 = vmul.f32 %v3620_v44, %v3464_v47  ;;  %v2104_v47 = vmul.f32 1.442695, %v2099_v40 }
 0x615   : > { %v1270_v61 = vmul.f32 %v3584_v43, %v1263_v58  ;;  %v1524_v11 = vadd.f32 %v1520_v62, %v1477_v10  ;;  %v3746_v57 = vadd.f32 %v1825_v51, %v1782_v26  ;;  %v1992_v26 = vmul.f32 %v3172_v35, %v3579_v31  ;;  %v4046_v62 = vld [vmem:[#allocation15_spill] sm:$0xff] }
 0x616   : > { %v2097_v35 = vmul.f32 -500000.0, %v2423_v19  ;;  %v1724_v58 = vmul.f32 %v3641_v4, %v4046_v62  ;;  %v1521_v25 = vmul.f32 %v3663_v56, %v3474_v37  ;;  %v4047_v4 = vld [vmem:[#allocation17_spill] sm:$0xff] }
 0x617   : > { %v1274_v17 = vadd.f32 %v1270_v61, %v3409_v42  ;;  %v1579_v20 = vadd.f32 %v1575_v46, %v1524_v11  ;;  %2041 = vrot.lane.b32.xlu0 %v3741_v29, %s2687_s20  ;;  %v1467_v42 = vsel %vm1042_vm15, %v1463_v38, 0.0  ;;  %v3766_v16 = vmul.f32 1.12535176e-07, %v1992_v26 }
 0x618   : > { %v1553_v43 = vpop.xlane.xlu0 %1552  ;;  %v1474_v52 = vmul.f32 %v3668_v3, %v1467_v42  ;;  %v2101_v11 = vmul.f32 %v2423_v19, %v2097_v35  ;;  %v1779_v3 = vmul.f32 %v3650_v32, %v3442_v1 }
 0x619   : > { %v2609_v10 = vpop.eup %2608  ;;  %v1321_v28 = vadd.f32 %v1317_v0, %v1274_v17  ;;  %v1626_v2 = vadd.f32 %v1622_v15, %v1579_v20  ;;  %v1557_v54 = vadd.f32 1e-06, %v1553_v43  ;;  %v1826_v17 = vmul.f32 %v3656_v30, %v4047_v4  ;;  %v4051_v4 = vld [vmem:[#allocation7_spill] sm:$0xff] }
 0x61a   : > { %v1665_v44 = vmul.f32 0.6931472, %v2609_v10  ;;  %v1655_v53 = vpop.xlane.xlu2 %1654  ;;  %v2108_v20 = vmul.f32 1.442695, %v2101_v11  ;;  %v4048_v10 = vld [vmem:[#allocation25_spill] sm:$0xff] }
 0x61b   : > { %v1376_v51 = vadd.f32 %v1372_v34, %v1321_v28  ;;  %2610 = vlog2.f32 %v1557_v54  ;;  %v1659_v22 = vadd.f32 1e-06, %v1655_v53  ;;  %v1623_v30 = vmul.f32 %v3688_v6, %v4048_v10  ;;  %v2413_v6 = vld [vmem:[%s3997_s6 + $0x58] sm:$0xff]  ;;  %v2412_v10 = vld [vmem:[%s3997_s6 + $0x50] sm:$0xff] }
 0x61c   : > { %v1670_v31 = vsel %vm1041_vm14, %v1665_v44, 0.0 }
 0x61d   : > { %v1677_v59 = vmul.f32 %v3635_v41, %v1670_v31  ;;  %v1423_v39 = vadd.f32 %v1419_v9, %v1376_v51  ;;  %2612 = vlog2.f32 %v1659_v22  ;;  %v1780_v22 = vmul.f32 %v3729_v60, %v3460_v12 }
 0x61e   : > { %2614 = vpow2.f32 %v2104_v47  ;;  %v4049_v47 = vld [vmem:[#allocation21_spill] sm:$0xff]  ;;  %v1827_v31 = vmul.f32 %v3717_v23, %v3407_v48 }
 0x61f   : > { %v1681_v46 = vadd.f32 %v1677_v59, %v1626_v2  ;;  %v1478_v61 = vadd.f32 %v1474_v52, %v1423_v39  ;;  %2045 = vrot.lane.b32.xlu0 %v3766_v16, %s2687_s20  ;;  %v1725_v42 = vmul.f32 %v3704_v63, %v4049_v47 }
 0x621   : > { %v2611_v40 = vpop.eup %2610  ;;  %v1728_v41 = vadd.f32 %v1724_v58, %v1681_v46  ;;  %v1525_v38 = vadd.f32 %v1521_v25, %v1478_v61  ;;  %v1898_v46 = vsel %vm580_vm2, %v3519_v5, 0.0  ;;  %v1989_v5 = vmul.f32 %v2934_v13, %v3533_v8 }
 0x622   : > { %v1565_v27 = vmul.f32 0.6931472, %v2611_v40  ;;  %v1853_v0 = vpop.xlane.xlu2 %1852 }
 0x623   : > { %v2613_v15 = vpop.eup %2612  ;;  %v1861_v37 = vadd.f32 1e-06, %v1853_v0  ;;  %v1783_v56 = vadd.f32 %v1779_v3, %v1728_v41  ;;  %v4050_v3 = vld [vmem:[#allocation5_spill] sm:$0xff] }
 0x624   : > { %v1569_v21 = vsel %vm1042_vm15, %v1565_v27, 0.0  ;;  %v1667_v43 = vmul.f32 0.6931472, %v2613_v15  ;;  %v3785_v1 = vpop.eup %2614  ;;  %v2420_v41 = vadd.f32 -1.0, %v4050_v3  ;;  %v3826_v27 = vmul.f32 1.12535176e-07, %v1989_v5 }
 0x625   : > { %v1576_v19 = vmul.f32 %v3678_v14, %v1569_v21  ;;  %2616 = vlog2.f32 %v1861_v37  ;;  %v3783_v26 = vadd.f32 %v1826_v17, %v1783_v56  ;;  %v2422_v17 = vadd.f32 -1.0, %v4051_v4 }
 0x626   : > { %v1671_v32 = vsel %vm1042_vm15, %v1667_v43, 0.0  ;;  %2618 = vpow2.f32 %v2108_v20  ;;  %v1991_v56 = vmul.f32 %v2952_v33, %v3489_v36 }
 0x627   : > { %v1580_v34 = vadd.f32 %v1576_v19, %v1525_v38  ;;  %2155 = vrot.lane.b32.xlu0 %v3785_v1, %s2687_s20  ;;  %v1678_v2 = vmul.f32 %v3697_v45, %v1671_v32  ;;  %v2094_v38 = vmul.f32 -500000.0, %v2420_v41  ;;  %v2096_v21 = vmul.f32 -500000.0, %v2422_v17 }
 0x628   : > { %v3833_v43 = vmul.f32 1.12535176e-07, %v1991_v56 }
 0x629   : > { %v1627_v28 = vadd.f32 %v1623_v30, %v1580_v34  ;;  %v2098_v15 = vmul.f32 %v2420_v41, %v2094_v38  ;;  %v2100_v19 = vmul.f32 %v2422_v17, %v2096_v21 }
 0x62a   : > { %v1859_v14 = vpop.xlane.xlu2 %1858 }
 0x62b   : > { %v2617_v54 = vpop.eup %2616  ;;  %v1682_v44 = vadd.f32 %v1678_v2, %v1627_v28  ;;  %v1863_v53 = vadd.f32 1e-06, %v1859_v14  ;;  %v1841_v49 = vpop.permute.xlu0 %1840  ;;  %v2102_v20 = vmul.f32 1.442695, %v2098_v15  ;;  %v2106_v36 = vmul.f32 1.442695, %v2100_v19 }
 0x62c   : > { %v1867_v9 = vmul.f32 0.6931472, %v2617_v54  ;;  %v1854_v51 = vsel %vm580_vm2, %v1841_v49, 0.0  ;;  %v3802_v45 = vpop.eup %2618  ;;  %v4052_v2 = vld [vmem:[#allocation18_spill] sm:$0xff] }
 0x62d   : > { %v1729_v35 = vadd.f32 %v1725_v42, %v1682_v44  ;;  %2620 = vlog2.f32 %v1863_v53  ;;  %1855 = vadd.xlane.f32.xlu1 %v1854_v51  ;;  %v2414_v53 = vld [vmem:[%s3997_s6 + $0x20] sm:$0xff] }
 0x62e   : > { %v1873_v63 = vsel %vm1040_vm0, %v1867_v9, 0.0 }
 0x62f   : > { %v1880_v52 = vmul.f32 %v2413_v6, %v1873_v63  ;;  %v1784_v59 = vadd.f32 %v1780_v22, %v1729_v35  ;;  %2159 = vrot.lane.b32.xlu0 %v3802_v45, %s2687_s20  ;;  %v2415_v63 = vld [vmem:[%s3997_s6 + $0x28] sm:$0xff] }
 0x631   : > { %v3811_v39 = vadd.f32 %v1880_v52, %v3746_v57  ;;  %v1831_v12 = vadd.f32 %v1827_v31, %v1784_v59 }
 0x632   : > { %v1903_v60 = vpop.xlane.xlu2 %1902 }
 0x633   : > { %v2621_v62 = vpop.eup %2620  ;;  %v1909_v58 = vadd.f32 1e-06, %v1903_v60 }
 0x634   : > { %v1871_v25 = vmul.f32 0.6931472, %v2621_v62 }
 0x635   : > { %2622 = vlog2.f32 %v1909_v58  ;;  %1899 = vadd.xlane.f32.xlu1 %v1898_v46 }
 0x636   : > { %v1875_v48 = vsel %vm1042_vm15, %v1871_v25, 0.0 }
 0x637   : > { %v1882_v23 = vmul.f32 %v2413_v6, %v1875_v48 }
 0x639   : > { %v1886_v61 = vadd.f32 %v1882_v23, %v1831_v12 }
 0x63b   : > { %v2623_v11 = vpop.eup %2622 }
 0x63c   : > { %v1916_v40 = vmul.f32 0.6931472, %v2623_v11  ;;  %v1941_v11 = vpop.permute.xlu2 %1940 }
 0x63e   : > { %v3819_v57 = vsel %vm1009_vm10, %v1916_v40, 0.0  ;;  %v1953_v40 = vsel %vm580_vm2, %v1941_v11, 0.0 }
 0x64e   : > { %1938 = vrot.lane.b32.xlu1 %v3533_v8, %s2687_s20 }
 0x656   : > { %2039 = vrot.lane.b32.xlu1 %v3826_v27, %s2687_s20  ;;  %v1850_v0 = vpop.xlane.xlu0 %1849 }
 0x657   : > { %v1860_v37 = vadd.f32 1e-06, %v1850_v0 }
 0x659   : > { %2624 = vlog2.f32 %v1860_v37  ;;  %v1928_v37 = vmul.f32 %v2414_v53, %v3819_v57 }
 0x65a   : > { %2626 = vpow2.f32 %v2102_v20 }
 0x65e   : > { %2043 = vrot.lane.b32.xlu1 %v3833_v43, %s2687_s20  ;;  %v1897_v13 = vpop.xlane.xlu0 %1896 }
 0x65f   : > { %v2625_v8 = vpop.eup %2624  ;;  %v1907_v32 = vadd.f32 1e-06, %v1897_v13 }
 0x660   : > { %v1865_v30 = vmul.f32 0.6931472, %v2625_v8  ;;  %v2627_v28 = vpop.eup %2626 }
 0x661   : > { %2628 = vlog2.f32 %v1907_v32  ;;  %v2110_v23 = vsel %vm580_vm2, %v2627_v28, 0.0 }
 0x662   : > { %v1872_v33 = vsel %vm1039_vm13, %v1865_v30, 0.0  ;;  %2630 = vpow2.f32 %v2106_v36 }
 0x663   : > { %v1879_v34 = vmul.f32 %v2412_v10, %v1872_v33 }
 0x665   : > { %v1883_v14 = vadd.f32 %v1879_v34, %v4052_v2  ;;  %v1997_v2 = vsel %vm580_vm2, %v3826_v27, 0.0 }
 0x666   : > { %2153 = vrot.lane.b32.xlu1 %v2627_v28, %s2687_s20  ;;  %v1906_v54 = vpop.xlane.xlu0 %1905 }
 0x667   : > { %v2629_v47 = vpop.eup %2628  ;;  %v1910_v42 = vadd.f32 1e-06, %v1906_v54 }
 0x668   : > { %v1912_v44 = vmul.f32 0.6931472, %v2629_v47  ;;  %v2631_v51 = vpop.eup %2630 }
 0x669   : > { %2632 = vlog2.f32 %v1910_v42  ;;  %v2116_v54 = vsel %vm580_vm2, %v2631_v51, 0.0 }
 0x66a   : > { %v1919_v6 = vsel %vm1007_vm12, %v1912_v44, 0.0 }
 0x66b   : > { %v1926_v9 = vmul.f32 %v2414_v53, %v1919_v6  ;;  %v2003_v6 = vsel %vm580_vm2, %v3833_v43, 0.0 }
 0x66d   : > { %v3849_v22 = vadd.f32 %v1926_v9, %v1883_v14  ;;  %v2000_v14 = vsel %vm580_vm2, %v3741_v29, 0.0  ;;  %v2006_v29 = vsel %vm580_vm2, %v3766_v16, 0.0 }
 0x66e   : > { %2157 = vrot.lane.b32.xlu1 %v2631_v51, %s2687_s20  ;;  %s2338_s20 = sshll.u32 %s4059_s30, 1 }
 0x66f   : > { %v2633_v35 = vpop.eup %2632  ;;  %s384_s7 = scalar_lea.vmem %s3999_s8, %s2338_s20 }
 0x670   : > { %v1918_v31 = vmul.f32 0.6931472, %v2633_v35 }
 0x672   : > { %v1922_v59 = vsel %vm1010_vm11, %v1918_v31, 0.0  ;;  %v2416_v31 = vld [vmem:[%s3997_s6 + $0x30] sm:$0xff] }
 0x673   : > { %v1929_v12 = vmul.f32 %v2415_v63, %v1922_v59  ;;  %v2113_v59 = vsel %vm580_vm2, %v3785_v1, 0.0  ;;  %v2417_v1 = vld [vmem:[%s3997_s6 + $0x38] sm:$0xff] }
 0x675   : > { %v3857_v60 = vadd.f32 %v1929_v12, %v1886_v61  ;;  %v2119_v61 = vsel %vm580_vm2, %v3802_v45, 0.0 }
 0x679   : > { %v1943_v62 = vpop.permute.xlu0 %1942 }
 0x67a   : > { %v1956_v58 = vsel %vm580_vm2, %v1943_v62, 0.0 }
 0x67b   : > { %1957 = vadd.xlane.f32.xlu0 %v1956_v58 }
 0x681   : > { %v1945_v25 = vpop.permute.xlu0 %1944 }
 0x689   : > { %v2042_v46 = vpop.permute.xlu0 %2041 }
 0x68a   : > { %v2054_v48 = vsel %vm580_vm2, %v2042_v46, 0.0 }
 0x68b   : > { %2055 = vadd.xlane.f32.xlu0 %v2054_v48 }
 0x693   : > { %2111 = vadd.xlane.f32.xlu0 %v2110_v23 }
 0x698   : > { %1954 = vadd.xlane.f32.xlu1 %v1953_v40 }
 0x69b   : > { %2120 = vadd.xlane.f32.xlu0 %v2119_v61 }
 0x6a0   : > { %v1856_v3 = vpop.xlane.xlu1 %1855 }
 0x6a1   : > { %v1862_v41 = vadd.f32 1e-06, %v1856_v3 }
 0x6a3   : > { %2634 = vlog2.f32 %v1862_v41 }
 0x6a8   : > { %v1900_v5 = vpop.xlane.xlu1 %1899 }
 0x6a9   : > { %v2635_v38 = vpop.eup %2634  ;;  %v1908_v0 = vadd.f32 1e-06, %v1900_v5 }
 0x6aa   : > { %v1869_v15 = vmul.f32 0.6931472, %v2635_v38 }
 0x6ab   : > { %2636 = vlog2.f32 %v1908_v0 }
 0x6ac   : > { %v1874_v4 = vsel %vm1041_vm14, %v1869_v15, 0.0 }
 0x6ad   : > { %v1881_v17 = vmul.f32 %v2412_v10, %v1874_v4  ;;  %v1959_v10 = vsel %vm580_vm2, %v1945_v25, 0.0 }
 0x6af   : > { %v1885_v56 = vadd.f32 %v1881_v17, %v3783_v26  ;;  %v2046_v26 = vpop.permute.xlu0 %2045 }
 0x6b0   : > { %v2060_v28 = vsel %vm580_vm2, %v2046_v26, 0.0 }
 0x6b1   : > { %v2637_v20 = vpop.eup %2636  ;;  %v1932_v21 = vadd.f32 %v1928_v37, %v1885_v56 }
 0x6b2   : > { %v1914_v45 = vmul.f32 0.6931472, %v2637_v20 }
 0x6b4   : > { %v1920_v8 = vsel %vm1008_vm9, %v1914_v45, 0.0 }
 0x6b5   : > { %v1927_v19 = vmul.f32 %v2415_v63, %v1920_v8 }
 0x6b7   : > { %v1931_v32 = vadd.f32 %v1927_v19, %v3811_v39  ;;  %v2156_v47 = vpop.permute.xlu0 %2155 }
 0x6b8   : > { %v2168_v44 = vsel %vm580_vm2, %v2156_v47, 0.0  ;;  %v3920_v47 = vld [vmem:[%s3997_s6 + $0x10] sm:$0xff] }
 0x6bf   : > { %v2160_v27 = vpop.permute.xlu0 %2159 }
 0x6c0   : > { %v1939_v30 = vpop.permute.xlu1 %1938  ;;  %v2174_v25 = vsel %vm580_vm2, %v2160_v27, 0.0 }
 0x6c1   : > { %v1950_v33 = vsel %vm580_vm2, %v1939_v30, 0.0 }
 0x6c2   : > { %1951 = vadd.xlane.f32.xlu2 %v1950_v33 }
 0x6c8   : > { %v2040_v36 = vpop.permute.xlu1 %2039 }
 0x6c9   : > { %v2051_v57 = vsel %vm580_vm2, %v2040_v36, 0.0 }
 0x6ca   : > { %1960 = vadd.xlane.f32.xlu2 %v1959_v10  ;;  %2052 = vadd.xlane.f32.xlu1 %v2051_v57 }
 0x6d0   : > { %v2044_v34 = vpop.permute.xlu1 %2043 }
 0x6d1   : > { %v2057_v35 = vsel %vm580_vm2, %v2044_v34, 0.0 }
 0x6d2   : > { %1998 = vadd.xlane.f32.xlu2 %v1997_v2  ;;  %2061 = vadd.xlane.f32.xlu1 %v2060_v28 }
 0x6d8   : > { %v2154_v39 = vpop.permute.xlu1 %2153 }
 0x6d9   : > { %v2165_v58 = vsel %vm580_vm2, %v2154_v39, 0.0 }
 0x6da   : > { %2001 = vadd.xlane.f32.xlu2 %v2000_v14  ;;  %2117 = vadd.xlane.f32.xlu1 %v2116_v54  ;;  %v2025_v14 = vld [vmem:[%s3997_s6] sm:$0xff] }
 0x6e0   : > { %v2158_v42 = vpop.permute.xlu1 %2157 }
 0x6e1   : > { %v2171_v53 = vsel %vm580_vm2, %v2158_v42, 0.0  ;;  %vm2204_vm2 = vcmask 7168  }
 0x6e2   : > { %2004 = vadd.xlane.f32.xlu2 %v2003_v6  ;;  %2169 = vadd.xlane.f32.xlu1 %v2168_v44 }
 0x6e3   : > { %2172 = vadd.xlane.f32.xlu0 %v2171_v53 }
 0x6ea   : > { %2007 = vadd.xlane.f32.xlu2 %v2006_v29 }
 0x6ee   : > { %v1958_v9 = vpop.xlane.xlu0 %1957 }
 0x6ef   : > { %v1964_v51 = vadd.f32 1e-06, %v1958_v9 }
 0x6f1   : > { %2638 = vlog2.f32 %v1964_v51 }
 0x6f2   : > { %2058 = vadd.xlane.f32.xlu2 %v2057_v35 }
 0x6f7   : > { %v2639_v63 = vpop.eup %2638 }
 0x6f8   : > { %v1971_v43 = vmul.f32 0.6931472, %v2639_v63 }
 0x6fa   : > { %v1976_v12 = vsel %vm1041_vm14, %v1971_v43, 0.0  ;;  %2114 = vadd.xlane.f32.xlu2 %v2113_v59  ;;  %v2026_v59 = vld [vmem:[%s3997_s6 + $0x8] sm:$0xff] }
 0x6fb   : > { %v1983_v16 = vmul.f32 %v2416_v31, %v1976_v12 }
 0x6fd   : > { %v3895_v62 = vadd.f32 %v1983_v16, %v1932_v21 }
 0x6fe   : > { %v2056_v21 = vpop.xlane.xlu0 %2055 }
 0x6ff   : > { %v2064_v33 = vadd.f32 1e-06, %v2056_v21 }
 0x702   : > { %2166 = vadd.xlane.f32.xlu2 %v2165_v58  ;;  %v2419_v58 = vld [vmem:[%s3997_s6 + $0x18] sm:$0xff] }
 0x706   : > { %v3912_v34 = vpop.xlane.xlu0 %2111 }
 0x70a   : > { %2175 = vadd.xlane.f32.xlu2 %v2174_v25 }
 0x70b   : > { %v1955_v46 = vpop.xlane.xlu1 %1954 }
 0x70c   : > { %v1963_v48 = vadd.f32 1e-06, %v1955_v46 }
 0x70e   : > { %2640 = vlog2.f32 %v1963_v48  ;;  %v2121_v43 = vpop.xlane.xlu0 %2120 }
 0x70f   : > { %v2125_v48 = vadd.f32 1e-06, %v2121_v43 }
 0x714   : > { %v2641_v23 = vpop.eup %2640 }
 0x715   : > { %v1969_v11 = vmul.f32 0.6931472, %v2641_v23 }
 0x717   : > { %v1975_v40 = vsel %vm1040_vm0, %v1969_v11, 0.0 }
 0x718   : > { %v1982_v61 = vmul.f32 %v2417_v1, %v1975_v40 }
 0x71a   : > { %v1986_v3 = vadd.f32 %v1982_v61, %v1931_v32 }
 0x735   : > { %v1952_v41 = vpop.xlane.xlu2 %1951 }
 0x736   : > { %v1962_v5 = vadd.f32 1e-06, %v1952_v41 }
 0x738   : > { %2642 = vlog2.f32 %v1962_v5 }
 0x73d   : > { %v1961_v38 = vpop.xlane.xlu2 %1960  ;;  %v2053_v0 = vpop.xlane.xlu1 %2052 }
 0x73e   : > { %v2643_v15 = vpop.eup %2642  ;;  %v1965_v4 = vadd.f32 1e-06, %v1961_v38  ;;  %v2063_v37 = vadd.f32 1e-06, %v2053_v0 }
 0x73f   : > { %v1967_v17 = vmul.f32 0.6931472, %v2643_v15 }
 0x740   : > { %2644 = vlog2.f32 %v1965_v4 }
 0x741   : > { %v1974_v56 = vsel %vm1039_vm13, %v1967_v17, 0.0  ;;  %2646 = vlog2.f32 %v2063_v37 }
 0x742   : > { %v1981_v20 = vmul.f32 %v2416_v31, %v1974_v56 }
 0x744   : > { %v1985_v45 = vadd.f32 %v1981_v20, %v3849_v22 }
 0x745   : > { %v1999_v8 = vpop.xlane.xlu2 %1998  ;;  %v2062_v44 = vpop.xlane.xlu1 %2061 }
 0x746   : > { %v2645_v19 = vpop.eup %2644  ;;  %v2009_v32 = vadd.f32 1e-06, %v1999_v8  ;;  %v2066_v16 = vadd.f32 1e-06, %v2062_v44 }
 0x747   : > { %v1973_v30 = vmul.f32 0.6931472, %v2645_v19  ;;  %v2647_v10 = vpop.eup %2646 }
 0x748   : > { %2648 = vlog2.f32 %v2009_v32  ;;  %v2068_v28 = vmul.f32 0.6931472, %v2647_v10 }
 0x749   : > { %v1977_v36 = vsel %vm1042_vm15, %v1973_v30, 0.0  ;;  %2650 = vlog2.f32 %v2064_v33 }
 0x74a   : > { %v1984_v57 = vmul.f32 %v2417_v1, %v1977_v36 }
 0x74c   : > { %v3910_v26 = vadd.f32 %v1984_v57, %v3857_v60  ;;  %v2075_v60 = vsel %vm1039_vm13, %v2068_v28, 0.0 }
 0x74d   : > { %v2002_v22 = vpop.xlane.xlu2 %2001  ;;  %v2082_v27 = vmul.f32 %v3920_v47, %v2075_v60  ;;  %v2118_v1 = vpop.xlane.xlu1 %2117 }
 0x74e   : > { %v2649_v2 = vpop.eup %2648  ;;  %v2010_v39 = vadd.f32 1e-06, %v2002_v22  ;;  %v2124_v4 = vadd.f32 1e-06, %v2118_v1 }
 0x74f   : > { %v2014_v54 = vmul.f32 0.6931472, %v2649_v2  ;;  %v2651_v53 = vpop.eup %2650 }
 0x750   : > { %2652 = vlog2.f32 %v2010_v39  ;;  %v2070_v9 = vmul.f32 0.6931472, %v2651_v53  ;;  %v2425_v39 = vld [vmem:[%s3997_s6 + $0x148] sm:$0xff] }
 0x751   : > { %v2021_v42 = vsel %vm1007_vm12, %v2014_v54, 0.0 }
 0x752   : > { %v2027_v6 = vmul.f32 %v2025_v14, %v2021_v42  ;;  %v2076_v25 = vsel %vm1040_vm0, %v2070_v9, 0.0 }
 0x753   : > { %v2083_v11 = vmul.f32 %v2419_v58, %v2076_v25 }
 0x754   : > { %v2031_v29 = vadd.f32 %v2027_v6, %v1985_v45 }
 0x755   : > { %v2005_v51 = vpop.xlane.xlu2 %2004  ;;  %v2170_v8 = vpop.xlane.xlu1 %2169 }
 0x756   : > { %v2653_v35 = vpop.eup %2652  ;;  %v3927_v63 = vadd.f32 %v2082_v27, %v2031_v29  ;;  %v2011_v31 = vadd.f32 1e-06, %v2005_v51  ;;  %v2173_v15 = vpop.xlane.xlu0 %2172  ;;  %v2178_v10 = vadd.f32 1e-06, %v2170_v8 }
 0x757   : > { %v2016_v12 = vmul.f32 0.6931472, %v2653_v35  ;;  %v2179_v20 = vadd.f32 1e-06, %v2173_v15 }
 0x758   : > { %2654 = vlog2.f32 %v2011_v31 }
 0x759   : > { %v2022_v46 = vsel %vm1008_vm9, %v2016_v12, 0.0  ;;  %2656 = vlog2.f32 %v2066_v16  ;;  %v2426_v12 = vld [vmem:[%s3997_s6 + $0x150] sm:$0xff] }
 0x75a   : > { %v2028_v23 = vmul.f32 %v2026_v59, %v2022_v46  ;;  %2658 = vlog2.f32 %v2125_v48 }
 0x75c   : > { %v2032_v40 = vadd.f32 %v2028_v23, %v1986_v3 }
 0x75d   : > { %v2008_v61 = vpop.xlane.xlu2 %2007 }
 0x75e   : > { %v2655_v41 = vpop.eup %2654  ;;  %v2012_v5 = vadd.f32 1e-06, %v2008_v61  ;;  %v3939_v38 = vadd.f32 %v2083_v11, %v2032_v40 }
 0x75f   : > { %v2018_v0 = vmul.f32 0.6931472, %v2655_v41  ;;  %v2657_v37 = vpop.eup %2656 }
 0x760   : > { %2660 = vlog2.f32 %v2012_v5  ;;  %v2659_v21 = vpop.eup %2658  ;;  %v2074_v45 = vmul.f32 0.6931472, %v2657_v37  ;;  %v2427_v5 = vld [vmem:[%s3997_s6 + $0x158] sm:$0xff] }
 0x761   : > { %v2023_v17 = vsel %vm1009_vm10, %v2018_v0, 0.0  ;;  %2662 = vlog2.f32 %v2124_v4  ;;  %v2133_v33 = vmul.f32 0.6931472, %v2659_v21 }
 0x762   : > { %v2029_v56 = vmul.f32 %v2025_v14, %v2023_v17  ;;  %2664 = vlog2.f32 %v2179_v20  ;;  %v2078_v57 = vsel %vm1042_vm15, %v2074_v45, 0.0 }
 0x763   : > { %v2137_v14 = vsel %vm1010_vm11, %v2133_v33, 0.0  ;;  %v2085_v60 = vmul.f32 %v2419_v58, %v2078_v57 }
 0x764   : > { %v2033_v3 = vadd.f32 %v2029_v56, %v3895_v62  ;;  %v2122_v62 = vadd.f32 1e-06, %v3912_v34  ;;  %v2144_v27 = vmul.f32 %v2425_v39, %v2137_v14 }
 0x765   : > { %v2059_v19 = vpop.xlane.xlu2 %2058 }
 0x766   : > { %v2661_v32 = vpop.eup %2660  ;;  %v2065_v30 = vadd.f32 1e-06, %v2059_v19 }
 0x767   : > { %v2020_v36 = vmul.f32 0.6931472, %v2661_v32  ;;  %v2663_v22 = vpop.eup %2662 }
 0x768   : > { %2666 = vlog2.f32 %v2065_v30  ;;  %v2665_v54 = vpop.eup %2664  ;;  %v2131_v44 = vmul.f32 0.6931472, %v2663_v22 }
 0x769   : > { %v2024_v28 = vsel %vm1010_vm11, %v2020_v36, 0.0  ;;  %2668 = vlog2.f32 %v2178_v10  ;;  %v2186_v34 = vmul.f32 0.6931472, %v2665_v54 }
 0x76a   : > { %v2030_v2 = vmul.f32 %v2026_v59, %v2024_v28  ;;  %2670 = vlog2.f32 %v2122_v62  ;;  %v2136_v52 = vsel %vm1009_vm10, %v2131_v44, 0.0  ;;  %v2424_v59 = vld [vmem:[%s3997_s6 + $0x140] sm:$0xff] }
 0x76b   : > { %v2191_v16 = vsel %vm1041_vm14, %v2186_v34, 0.0  ;;  %v2143_v58 = vmul.f32 %v2424_v59, %v2136_v52 }
 0x76c   : > { %v2034_v42 = vadd.f32 %v2030_v2, %v3910_v26  ;;  %v2198_v1 = vmul.f32 %v2426_v12, %v2191_v16 }
 0x76d   : > { %v2115_v53 = vpop.xlane.xlu2 %2114 }
 0x76e   : > { %v2667_v6 = vpop.eup %2666  ;;  %v2089_v29 = vadd.f32 %v2085_v60, %v2034_v42  ;;  %v2123_v9 = vadd.f32 1e-06, %v2115_v53 }
 0x76f   : > { %v2072_v51 = vmul.f32 0.6931472, %v2667_v6  ;;  %v2669_v43 = vpop.eup %2668 }
 0x770   : > { %2672 = vlog2.f32 %v2123_v9  ;;  %v2148_v35 = vadd.f32 %v2144_v27, %v2089_v29  ;;  %v2671_v25 = vpop.eup %2670  ;;  %v2184_v46 = vmul.f32 0.6931472, %v2669_v43  ;;  %v2224_v27 = vstv %s2223_s28 }
 0x771   : > { %v2077_v31 = vsel %vm1041_vm14, %v2072_v51, 0.0  ;;  %v2127_v41 = vmul.f32 0.6931472, %v2671_v25 }
 0x772   : > { %v2084_v26 = vmul.f32 %v3920_v47, %v2077_v31  ;;  %v2190_v18 = vsel %vm1040_vm0, %v2184_v46, 0.0 }
 0x773   : > { %v2197_v4 = vmul.f32 %v2427_v5, %v2190_v18  ;;  %v2134_v37 = vsel %vm1007_vm12, %v2127_v41, 0.0 }
 0x774   : > { %v2088_v24 = vadd.f32 %v2084_v26, %v2033_v3  ;;  %v2141_v8 = vmul.f32 %v2424_v59, %v2134_v37 }
 0x775   : > { %v2167_v48 = vpop.xlane.xlu2 %2166 }
 0x776   : > { %v2673_v23 = vpop.eup %2672  ;;  %v2147_v11 = vadd.f32 %v2143_v58, %v2088_v24  ;;  %v2177_v47 = vadd.f32 1e-06, %v2167_v48  ;;  %v2145_v13 = vadd.f32 %v2141_v8, %v3927_v63 }
 0x777   : > { %v2129_v40 = vmul.f32 0.6931472, %v2673_v23 }
 0x778   : > { %v2202_v61 = vadd.f32 %v2198_v1, %v2147_v11  ;;  %2674 = vlog2.f32 %v2177_v47 }
 0x779   : > { %v2135_v0 = vsel %vm1008_vm9, %v2129_v40, 0.0 }
 0x77a   : > { %v2142_v15 = vmul.f32 %v2425_v39, %v2135_v0  ;;  %v2214_v62 = vsel %vm2204_vm2, %v2202_v61, 0.0 }
 0x77c   : > { %v2146_v17 = vadd.f32 %v2142_v15, %v3939_v38 }
 0x77d   : > { %v2176_v56 = vpop.xlane.xlu2 %2175 }
 0x77e   : > { %v2675_v20 = vpop.eup %2674  ;;  %v2201_v21 = vadd.f32 %v2197_v4, %v2146_v17  ;;  %v2180_v3 = vadd.f32 1e-06, %v2176_v56 }
 0x77f   : > { %v2182_v45 = vmul.f32 0.6931472, %v2675_v20 }
 0x780   : > { %2676 = vlog2.f32 %v2180_v3  ;;  %v2206_v49 = vsel %vm2204_vm2, %v2201_v21, 0.0 }
 0x781   : > { %v2189_v55 = vsel %vm1039_vm13, %v2182_v45, 0.0 }
 0x782   : > { %v2196_v19 = vmul.f32 %v2426_v12, %v2189_v55 }
 0x784   : > { %v2200_v32 = vadd.f32 %v2196_v19, %v2145_v13 }
 0x786   : > { %v2677_v30 = vpop.eup %2676  ;;  %v2205_v38 = vsel %vm2204_vm2, %v2200_v32, 0.0 }
 0x787   : > { %v2207_v33 = vadd.f32 %v2206_v49, %v2205_v38  ;;  %v2188_v36 = vmul.f32 0.6931472, %v2677_v30 }
 0x789   : > { %v2208_v10 = vrot.slane %v2207_v33, 4  ;;  %v2192_v57 = vsel %vm1042_vm15, %v2188_v36, 0.0 }
 0x78a   : > { %v2199_v28 = vmul.f32 %v2427_v5, %v2192_v57 }
 0x78b   : > { %v2209_v22 = vadd.f32 %v2208_v10, %v2207_v33 }
 0x78c   : > { %v2203_v50 = vadd.f32 %v2199_v28, %v2148_v35 }
 0x78d   : > { %v2210_v2 = vrot.slane %v2209_v22, 2 }
 0x78e   : > { %v2215_v63 = vsel %vm2204_vm2, %v2203_v50, 0.0 }
 0x78f   : > { %v2216_v39 = vadd.f32 %v2215_v63, %v2214_v62  ;;  %v2211_v14 = vadd.f32 %v2210_v2, %v2209_v22 }
 0x791   : > { %v2217_v54 = vrot.slane %v2216_v39, 4  ;;  %v2212_v42 = vrot.slane %v2211_v14, 1 }
 0x793   : > { %v2218_v60 = vadd.f32 %v2217_v54, %v2216_v39  ;;  %v2213_v6 = vadd.f32 %v2212_v42, %v2211_v14 }
 0x795   : > { %v2219_v44 = vrot.slane %v2218_v60, 2  ;;  %v2225_v9 = vadd.f32 %v2224_v27, %v2213_v6 }
 0x797   : > { %v2220_v53 = vadd.f32 %v2219_v44, %v2218_v60 }
 0x799   : > { %v2221_v7 = vrot.slane %v2220_v53, 1 }
 0x79b   : > { %v2222_v29 = vadd.f32 %v2221_v7, %v2220_v53 }
 0x79d   : > { %v2226_v34 = vadd.f32 %v2224_v27, %v2222_v29 }
 0x79f   : > { %v2230_v51 = vsel %vm2229_vm1, %v2226_v34, %v2225_v9 }
 0x7a0   : > { %2233 = vst.msk [vmem:[%s384_s7] sm:$0x3] %vm2232_vm3, %v2230_v51 }
 0x7a1 PF: > { %s19_s29 = sadd.s32 1, %s2684_s29  }
 0x7a2   : > { %p16_p5 = scmp.ge.s32.totalorder %s19_s29, 4  }
 0x7a4   :  { %18 = sbr.rel (!%p16_p5) target bundleno = 2 (0x2), region = 117 }

</bundles_post_ra>
